<compile_context>
chip_gen: v5e
topology: v5e:2x2
jax: 0.10.0
libtpu: 0.0.40
codegen_flags: <defaults>
</compile_context>

<pallas_src>
import math
import numpy as np
import jax
import jax.numpy as jnp
from jax import lax
from jax.experimental import pallas as pl
from jax.experimental.pallas import tpu as pltpu

# ----------------------------------------------------------------------------
# Config (VGG_adv with vgg_name='vgg11', w=1 -> channels scaled by w/16)
# ----------------------------------------------------------------------------
CFG_VGG11 = [64, 'M', 128, 'M', 256, 256, 'M', 512, 512, 'M', 512, 512, 'M']
W_SCALE = 1
SCALED_CFG = [x if x == 'M' else int(W_SCALE / 16 * x) for x in CFG_VGG11]
IN_CHANNELS = 3
FINAL_CHANNELS = int(512 * W_SCALE / 16)   # 32
NUM_CLASSES = 10
BASE = 32                                  # input spatial size (self.base = 32)
BN_EPS = 1e-5
LANE = 128                                 # lane-dense padding target


# ----------------------------------------------------------------------------
# In-kernel helper
# ----------------------------------------------------------------------------
def _lane_tile(v, reps):
    """(1, C) -> (1, reps*C) via log2(reps) lane concats (reps is a power of 2)."""
    out = v
    r = 1
    while r < reps:
        out = jnp.concatenate([out, out], axis=1)
        r *= 2
    return out


# ----------------------------------------------------------------------------
# The single fused kernel (runs once per batch tile)
# ----------------------------------------------------------------------------
def _fused_vgg_kernel(*refs):
    """refs = [x2d,
               per conv layer: (m_all, gamma, beta, s_mat),
               per pool layer: (ce, re),
               fc_w, fc_b, out]

    x2d  : (nb*32, 128) f32 packed activations A[n*H+y, x*C+c] (lanes 96..127 = 0).
    m_all: (K, 3*W*Cout) bf16 banded conv weights, [M_ky0 | M_ky1 | M_ky2].
    ce   : (W*C, (W/2)*C) bf16 0/1 even-x lane compaction.
    re   : (nb*H/2, nb*H) bf16 0/1 even-row selection.
    s_mat: (W*Cout, Cout) f32 packed-lane -> channel summation.
    """
    out_ref = refs[-1]
    x_ref = refs[0]
    nb = x_ref.shape[0] // BASE

    a = x_ref[...]                     # f32, stays VMEM-resident the whole way
    h = BASE
    ch = IN_CHANNELS
    idx = 1
    mask_cache = {}

    for item in SCALED_CFG:
        if item == 'M':
            ce = refs[idx][...]
            re = refs[idx + 1][...]
            idx += 2
            # max over the x pair (wrapped lanes are never selected by ce)
            zp = jnp.maximum(a, jnp.roll(a, -ch, axis=1))
            zc = jnp.dot(zp.astype(jnp.bfloat16), ce,
                         preferred_element_type=jnp.float32)
            # max over the y pair (wrapped rows are never selected by re)
            zr = jnp.maximum(zc, jnp.roll(zc, -1, axis=0))
            # TODO(synk): replace this even-row selection matmul with a strided
            #             sublane pick once verified to lower; it is bf16 and
            #             bounded by the batch tile, so cost stays modest.
            a = jnp.dot(re, zr.astype(jnp.bfloat16),
                        preferred_element_type=jnp.float32)
            h //= 2
        else:
            cout = item
            w_sp = h
            rows = nb * h
            lanes = w_sp * cout
            m_all = refs[idx][...]
            gamma = refs[idx + 1][...]
            beta = refs[idx + 2][...]
            s_mat = refs[idx + 3][...]
            idx += 4

            # --- conv 3x3 pad=1: one wide bf16 MXU matmul (all 3 ky taps),
            #     then +/-1-row taps via rolls + per-image boundary masks. ---
            ab = a.astype(jnp.bfloat16)
            t_all = jnp.dot(ab, m_all, preferred_element_type=jnp.float32)
            t0 = t_all[:, :lanes]
            t1 = t_all[:, lanes:2 * lanes]
            t2 = t_all[:, 2 * lanes:]
            key = (rows, h)
            if key not in mask_cache:
                r_idx = lax.broadcasted_iota(jnp.int32, (rows, 1), 0)
                mask_cache[key] = ((r_idx % h) != 0, (r_idx % h) != (h - 1))
            not_first, not_last = mask_cache[key]
            z = (t1
                 + jnp.where(not_first, jnp.roll(t0, 1, axis=0), 0.0)
                 + jnp.where(not_last, jnp.roll(t2, -1, axis=0), 0.0))
            # (conv bias omitted: cancelled exactly by BN mean subtraction)

            # --- BatchNorm2d (training-mode batch stats), one moments matmul ---
            moments = jnp.concatenate(
                [jnp.sum(z, axis=0, keepdims=True),
                 jnp.sum(z * z, axis=0, keepdims=True)], axis=0)       # (2, lanes)
            red = jnp.dot(moments, s_mat, preferred_element_type=jnp.float32)
            count = jnp.float32(rows * w_sp)
            mean = red[0:1, :] / count
            var = jnp.maximum(red[1:2, :] / count - mean * mean, 0.0)   # clamp >= 0
            scale = gamma * lax.rsqrt(var + BN_EPS)
            shift = beta - mean * scale
            scale_p = _lane_tile(scale, w_sp)       # (1, lanes), no MXU expand
            shift_p = _lane_tile(shift, w_sp)

            # --- ReLU ---
            a = jnp.maximum(z * scale_p + shift_p, 0.0)
            ch = cout

    # nn.AvgPool2d(1,1) is the identity.  Spatial is 1x1 -> a == (nb, 32) features,
    # matching PyTorch's out.view(N, -1).
    fc_w = refs[idx][...]                   # (32, 128) f32, zero-padded beyond class 10
    fc_b = refs[idx + 1][...]               # (1, 128)  f32
    out_ref[...] = jnp.dot(a, fc_w, preferred_element_type=jnp.float32) + fc_b


# ----------------------------------------------------------------------------
# Host-side parameter re-layout (pure numpy, done once at trace time)
# ----------------------------------------------------------------------------
def _conv_band_matrix(w, w_sp, pad_k_to=None):
    """w: (3,3,Cin,Cout) -> (K, 3*W*Cout) bf16; K = W*Cin (optionally zero-padded).

    Column block ky holds M_ky with M_ky[(x+kx-1)*Cin+ci, x*Cout+co] = w[ky,kx,ci,co]
    (out-of-range kx dropped -> x padding).  The 3 ky taps are concatenated so the
    conv is a single wide MXU matmul.
    """
    w_np = np.asarray(w, np.float32)
    cin, cout = w_np.shape[2], w_np.shape[3]
    mats = []
    for ky in range(3):
        m = np.zeros((w_sp * cin, w_sp * cout), np.float32)
        for kx in range(3):
            eye = np.eye(w_sp, k=1 - kx, dtype=np.float32)
            m += np.kron(eye, w_np[ky, kx])
        mats.append(m)
    m_all = np.concatenate(mats, axis=1)
    if pad_k_to is not None and pad_k_to > m_all.shape[0]:
        m_all = np.pad(m_all, ((0, pad_k_to - m_all.shape[0]), (0, 0)))
    return jnp.asarray(m_all, jnp.bfloat16)


def _bn_sum_matrix(w_sp, cout):
    """0/1 f32 matrix mapping packed lane (x*C+c) -> channel c (kept f32: it
    contracts f32 moment sums, and the matmul is tiny)."""
    lanes = w_sp * cout
    s = np.zeros((lanes, cout), np.float32)
    s[np.arange(lanes), np.arange(lanes) % cout] = 1.0
    return jnp.asarray(s)


def _pool_matrices(h, c, nb):
    """bf16 0/1 selections: ce (even-x lane compaction), re (even-row selection)."""
    w_sp = h
    lanes_in, lanes_out = w_sp * c, (w_sp // 2) * c
    ce = np.zeros((lanes_in, lanes_out), np.float32)
    m = np.arange(lanes_out)
    ce[(m // c) * 2 * c + (m % c), m] = 1.0
    rows, rows_o = nb * h, nb * (h // 2)
    re = np.zeros((rows_o, rows), np.float32)
    q = np.arange(rows_o)
    re[q, (q // (h // 2)) * h + 2 * (q % (h // 2))] = 1.0
    return jnp.asarray(ce, jnp.bfloat16), jnp.asarray(re, jnp.bfloat16)


# ----------------------------------------------------------------------------
# Forward pass (mirrors VGG_adv.forward) — one pallas_call, batch-row grid
# ----------------------------------------------------------------------------
def vgg_adv_forward(x_nchw, params, *, batch_tile=32):
    n = x_nchw.shape[0]
    nb = min(batch_tile, n)
    if n % nb:
        nb = math.gcd(n, nb)
    if nb != n and nb % 8 != 0:
        nb = n                       # keep the (8,128)-aligned output block rule

    x = jnp.transpose(x_nchw, (0, 2, 3, 1)).astype(jnp.float32)      # NCHW -> NHWC
    x2d = x.reshape(n * BASE, BASE * IN_CHANNELS)                    # rows=(n,y), lanes=(x,c)
    x2d = jnp.pad(x2d, ((0, 0), (0, LANE - BASE * IN_CHANNELS)))     # 96 -> 128 lanes

    inputs = [x2d]
    in_specs = [pl.BlockSpec((nb * BASE, LANE), lambda i: (i, 0))]

    def const_spec(shape):
        return pl.BlockSpec(shape, lambda i: (0, 0))

    h = BASE
    ch = IN_CHANNELS
    ci = 0
    for item in SCALED_CFG:
        if item == 'M':
            ce, re = _pool_matrices(h, ch, nb)
            inputs += [ce, re]
            in_specs += [const_spec(ce.shape), const_spec(re.shape)]
            h //= 2
        else:
            w, gamma, beta = params['convs'][ci]
            m_all = _conv_band_matrix(w, h, pad_k_to=LANE if ci == 0 else None)
            s_mat = _bn_sum_matrix(h, item)
            inputs += [m_all, gamma.reshape(1, -1), beta.reshape(1, -1), s_mat]
            in_specs += [const_spec(m_all.shape), const_spec((1, item)),
                         const_spec((1, item)), const_spec(s_mat.shape)]
            ch = item
            ci += 1

    # Lane-dense FC: pad the 10 outputs to 128 lanes; slice outside the kernel.
    fc_w = jnp.zeros((FINAL_CHANNELS, LANE), jnp.float32).at[:, :NUM_CLASSES].set(params['fc_w'])
    fc_b = jnp.zeros((1, LANE), jnp.float32).at[0, :NUM_CLASSES].set(params['fc_b'])
    inputs += [fc_w, fc_b]
    in_specs += [const_spec(fc_w.shape), const_spec(fc_b.shape)]

    out = pl.pallas_call(
        _fused_vgg_kernel,
        grid=(n // nb,),
        out_shape=jax.ShapeDtypeStruct((n, LANE), jnp.float32),
        in_specs=in_specs,
        out_specs=pl.BlockSpec((nb, LANE), lambda i: (i, 0)),
        compiler_params=pltpu.CompilerParams(
            dimension_semantics=("parallel",),
            vmem_limit_bytes=48 * 1024 * 1024),
    )(*inputs)
    return out[:, :NUM_CLASSES]


# ----------------------------------------------------------------------------
# Pure-JAX f32 reference (for a tolerance check: conv/pool operands are bf16
# in the kernel, so expect ~1e-2-level deviations)
# ----------------------------------------------------------------------------
def vgg_adv_reference(x_nchw, params):
    x = jnp.transpose(x_nchw, (0, 2, 3, 1)).astype(jnp.float32)
    ci = 0
    for item in SCALED_CFG:
        if item == 'M':
            n_, h_, w_, c_ = x.shape
            x = x.reshape(n_, h_ // 2, 2, w_ // 2, 2, c_).max(axis=(2, 4))
        else:
            w, gamma, beta = params['convs'][ci]
            ci += 1
            y = lax.conv_general_dilated(
                x, w, window_strides=(1, 1), padding='SAME',
                dimension_numbers=('NHWC', 'HWIO', 'NHWC'))
            mean = jnp.mean(y, axis=(0, 1, 2))
            var = jnp.mean(jnp.square(y - mean), axis=(0, 1, 2))
            x = jnp.maximum((y - mean) * lax.rsqrt(var + BN_EPS) * gamma + beta, 0.0)
    feat = x.reshape(x.shape[0], -1)
    return feat @ params['fc_w'] + params['fc_b']


# ----------------------------------------------------------------------------
# Parameter init (deterministic, synthetic).  Conv bias omitted: a per-channel
# constant is exactly cancelled by the train-mode BN mean subtraction.
# ----------------------------------------------------------------------------
def init_params(key):
    convs = []
    in_ch = IN_CHANNELS
    for item in SCALED_CFG:
        if item == 'M':
            continue
        out_ch = item
        key, kw, kg, kb = jax.random.split(key, 4)
        fan_in = 9 * in_ch
        w = jax.random.normal(kw, (3, 3, in_ch, out_ch), jnp.float32) * (fan_in ** -0.5)
        gamma = 1.0 + 0.1 * jax.random.normal(kg, (out_ch,), jnp.float32)
        beta = 0.1 * jax.random.normal(kb, (out_ch,), jnp.float32)
        convs.append((w, gamma, beta))
        in_ch = out_ch
    key, kfw, kfb = jax.random.split(key, 3)
    fc_w = jax.random.normal(kfw, (FINAL_CHANNELS, NUM_CLASSES), jnp.float32) * (FINAL_CHANNELS ** -0.5)
    fc_b = jax.random.normal(kfb, (NUM_CLASSES,), jnp.float32) * 0.05
    return {'convs': convs, 'fc_w': fc_w, 'fc_b': fc_b}


# ----------------------------------------------------------------------------
if __name__ == "__main__":
    key = jax.random.PRNGKey(0)
    key, kx, kp = jax.random.split(key, 3)
    # PyTorch-style NCHW input: (batch=2, channels=3, 32, 32)  (32 = self.base)
    x = jax.random.normal(kx, (2, IN_CHANNELS, BASE, BASE), jnp.float32)
    params = init_params(kp)

    fwd = jax.jit(lambda inp: vgg_adv_forward(inp, params))
    logits = fwd(x)
    jax.block_until_ready(logits)
    assert logits.shape == (2, NUM_CLASSES)
    assert bool(jnp.all(jnp.isfinite(logits)))

    # Correctness vs. f32 reference (bf16 conv/pool operands -> loose tolerance).
    ref = vgg_adv_reference(x, params)
    err = float(jnp.max(jnp.abs(logits - ref)))
    tol = 5e-2 + 5e-2 * float(jnp.max(jnp.abs(ref)))
    assert err < tol, f"kernel vs f32 reference mismatch: {err} (tol {tol})"
    print("KERNEL_OK")
</pallas_src>

<mosaic_0001>
module attributes {stable_mosaic.version = 11 : i64} {
  func.func @_fused_vgg_kernel(%arg0: i32, %arg1: memref<64x128xf32, #tpu.memory_space<vmem>>, %arg2: memref<128x384xbf16, #tpu.memory_space<vmem>>, %arg3: memref<1x4xf32, #tpu.memory_space<vmem>>, %arg4: memref<1x4xf32, #tpu.memory_space<vmem>>, %arg5: memref<128x4xf32, #tpu.memory_space<vmem>>, %arg6: memref<128x64xbf16, #tpu.memory_space<vmem>>, %arg7: memref<32x64xbf16, #tpu.memory_space<vmem>>, %arg8: memref<64x384xbf16, #tpu.memory_space<vmem>>, %arg9: memref<1x8xf32, #tpu.memory_space<vmem>>, %arg10: memref<1x8xf32, #tpu.memory_space<vmem>>, %arg11: memref<128x8xf32, #tpu.memory_space<vmem>>, %arg12: memref<128x64xbf16, #tpu.memory_space<vmem>>, %arg13: memref<16x32xbf16, #tpu.memory_space<vmem>>, %arg14: memref<64x384xbf16, #tpu.memory_space<vmem>>, %arg15: memref<1x16xf32, #tpu.memory_space<vmem>>, %arg16: memref<1x16xf32, #tpu.memory_space<vmem>>, %arg17: memref<128x16xf32, #tpu.memory_space<vmem>>, %arg18: memref<128x384xbf16, #tpu.memory_space<vmem>>, %arg19: memref<1x16xf32, #tpu.memory_space<vmem>>, %arg20: memref<1x16xf32, #tpu.memory_space<vmem>>, %arg21: memref<128x16xf32, #tpu.memory_space<vmem>>, %arg22: memref<128x64xbf16, #tpu.memory_space<vmem>>, %arg23: memref<8x16xbf16, #tpu.memory_space<vmem>>, %arg24: memref<64x384xbf16, #tpu.memory_space<vmem>>, %arg25: memref<1x32xf32, #tpu.memory_space<vmem>>, %arg26: memref<1x32xf32, #tpu.memory_space<vmem>>, %arg27: memref<128x32xf32, #tpu.memory_space<vmem>>, %arg28: memref<128x384xbf16, #tpu.memory_space<vmem>>, %arg29: memref<1x32xf32, #tpu.memory_space<vmem>>, %arg30: memref<1x32xf32, #tpu.memory_space<vmem>>, %arg31: memref<128x32xf32, #tpu.memory_space<vmem>>, %arg32: memref<128x64xbf16, #tpu.memory_space<vmem>>, %arg33: memref<4x8xbf16, #tpu.memory_space<vmem>>, %arg34: memref<64x192xbf16, #tpu.memory_space<vmem>>, %arg35: memref<1x32xf32, #tpu.memory_space<vmem>>, %arg36: memref<1x32xf32, #tpu.memory_space<vmem>>, %arg37: memref<64x32xf32, #tpu.memory_space<vmem>>, %arg38: memref<64x192xbf16, #tpu.memory_space<vmem>>, %arg39: memref<1x32xf32, #tpu.memory_space<vmem>>, %arg40: memref<1x32xf32, #tpu.memory_space<vmem>>, %arg41: memref<64x32xf32, #tpu.memory_space<vmem>>, %arg42: memref<64x32xbf16, #tpu.memory_space<vmem>>, %arg43: memref<2x4xbf16, #tpu.memory_space<vmem>>, %arg44: memref<32x128xf32, #tpu.memory_space<vmem>>, %arg45: memref<1x128xf32, #tpu.memory_space<vmem>>, %arg46: memref<2x128xf32, #tpu.memory_space<vmem>>) attributes {dimension_semantics = [#tpu.dimension_semantics<parallel>], iteration_bounds = array<i64: 1>, scalar_prefetch = 0 : i64, scratch_operands = 0 : i64, tpu.core_type = #tpu.core_type<tc>, window_params = [{transform_indices = @transform_0, window_bounds = array<i64: 64, 128>}, {pipeline_mode = #tpu.pipeline_mode<synchronous>, transform_indices = @transform_1, window_bounds = array<i64: 128, 384>}, {pipeline_mode = #tpu.pipeline_mode<synchronous>, transform_indices = @transform_2, window_bounds = array<i64: 1, 4>}, {pipeline_mode = #tpu.pipeline_mode<synchronous>, transform_indices = @transform_3, window_bounds = array<i64: 1, 4>}, {pipeline_mode = #tpu.pipeline_mode<synchronous>, transform_indices = @transform_4, window_bounds = array<i64: 128, 4>}, {pipeline_mode = #tpu.pipeline_mode<synchronous>, transform_indices = @transform_5, window_bounds = array<i64: 128, 64>}, {pipeline_mode = #tpu.pipeline_mode<synchronous>, transform_indices = @transform_6, window_bounds = array<i64: 32, 64>}, {pipeline_mode = #tpu.pipeline_mode<synchronous>, transform_indices = @transform_7, window_bounds = array<i64: 64, 384>}, {pipeline_mode = #tpu.pipeline_mode<synchronous>, transform_indices = @transform_8, window_bounds = array<i64: 1, 8>}, {pipeline_mode = #tpu.pipeline_mode<synchronous>, transform_indices = @transform_9, window_bounds = array<i64: 1, 8>}, {pipeline_mode = #tpu.pipeline_mode<synchronous>, transform_indices = @transform_10, window_bounds = array<i64: 128, 8>}, {pipeline_mode = #tpu.pipeline_mode<synchronous>, transform_indices = @transform_11, window_bounds = array<i64: 128, 64>}, {pipeline_mode = #tpu.pipeline_mode<synchronous>, transform_indices = @transform_12, window_bounds = array<i64: 16, 32>}, {pipeline_mode = #tpu.pipeline_mode<synchronous>, transform_indices = @transform_13, window_bounds = array<i64: 64, 384>}, {pipeline_mode = #tpu.pipeline_mode<synchronous>, transform_indices = @transform_14, window_bounds = array<i64: 1, 16>}, {pipeline_mode = #tpu.pipeline_mode<synchronous>, transform_indices = @transform_15, window_bounds = array<i64: 1, 16>}, {pipeline_mode = #tpu.pipeline_mode<synchronous>, transform_indices = @transform_16, window_bounds = array<i64: 128, 16>}, {pipeline_mode = #tpu.pipeline_mode<synchronous>, transform_indices = @transform_17, window_bounds = array<i64: 128, 384>}, {pipeline_mode = #tpu.pipeline_mode<synchronous>, transform_indices = @transform_18, window_bounds = array<i64: 1, 16>}, {pipeline_mode = #tpu.pipeline_mode<synchronous>, transform_indices = @transform_19, window_bounds = array<i64: 1, 16>}, {pipeline_mode = #tpu.pipeline_mode<synchronous>, transform_indices = @transform_20, window_bounds = array<i64: 128, 16>}, {pipeline_mode = #tpu.pipeline_mode<synchronous>, transform_indices = @transform_21, window_bounds = array<i64: 128, 64>}, {pipeline_mode = #tpu.pipeline_mode<synchronous>, transform_indices = @transform_22, window_bounds = array<i64: 8, 16>}, {pipeline_mode = #tpu.pipeline_mode<synchronous>, transform_indices = @transform_23, window_bounds = array<i64: 64, 384>}, {pipeline_mode = #tpu.pipeline_mode<synchronous>, transform_indices = @transform_24, window_bounds = array<i64: 1, 32>}, {pipeline_mode = #tpu.pipeline_mode<synchronous>, transform_indices = @transform_25, window_bounds = array<i64: 1, 32>}, {pipeline_mode = #tpu.pipeline_mode<synchronous>, transform_indices = @transform_26, window_bounds = array<i64: 128, 32>}, {pipeline_mode = #tpu.pipeline_mode<synchronous>, transform_indices = @transform_27, window_bounds = array<i64: 128, 384>}, {pipeline_mode = #tpu.pipeline_mode<synchronous>, transform_indices = @transform_28, window_bounds = array<i64: 1, 32>}, {pipeline_mode = #tpu.pipeline_mode<synchronous>, transform_indices = @transform_29, window_bounds = array<i64: 1, 32>}, {pipeline_mode = #tpu.pipeline_mode<synchronous>, transform_indices = @transform_30, window_bounds = array<i64: 128, 32>}, {pipeline_mode = #tpu.pipeline_mode<synchronous>, transform_indices = @transform_31, window_bounds = array<i64: 128, 64>}, {pipeline_mode = #tpu.pipeline_mode<synchronous>, transform_indices = @transform_32, window_bounds = array<i64: 4, 8>}, {pipeline_mode = #tpu.pipeline_mode<synchronous>, transform_indices = @transform_33, window_bounds = array<i64: 64, 192>}, {pipeline_mode = #tpu.pipeline_mode<synchronous>, transform_indices = @transform_34, window_bounds = array<i64: 1, 32>}, {pipeline_mode = #tpu.pipeline_mode<synchronous>, transform_indices = @transform_35, window_bounds = array<i64: 1, 32>}, {pipeline_mode = #tpu.pipeline_mode<synchronous>, transform_indices = @transform_36, window_bounds = array<i64: 64, 32>}, {pipeline_mode = #tpu.pipeline_mode<synchronous>, transform_indices = @transform_37, window_bounds = array<i64: 64, 192>}, {pipeline_mode = #tpu.pipeline_mode<synchronous>, transform_indices = @transform_38, window_bounds = array<i64: 1, 32>}, {pipeline_mode = #tpu.pipeline_mode<synchronous>, transform_indices = @transform_39, window_bounds = array<i64: 1, 32>}, {pipeline_mode = #tpu.pipeline_mode<synchronous>, transform_indices = @transform_40, window_bounds = array<i64: 64, 32>}, {pipeline_mode = #tpu.pipeline_mode<synchronous>, transform_indices = @transform_41, window_bounds = array<i64: 64, 32>}, {pipeline_mode = #tpu.pipeline_mode<synchronous>, transform_indices = @transform_42, window_bounds = array<i64: 2, 4>}, {pipeline_mode = #tpu.pipeline_mode<synchronous>, transform_indices = @transform_43, window_bounds = array<i64: 32, 128>}, {pipeline_mode = #tpu.pipeline_mode<synchronous>, transform_indices = @transform_44, window_bounds = array<i64: 1, 128>}, {transform_indices = @transform_45, window_bounds = array<i64: 2, 128>}]} {
    %c0 = arith.constant 0 : index
    %c0_0 = arith.constant 0 : index
    %0 = vector.load %arg1[%c0, %c0_0] : memref<64x128xf32, #tpu.memory_space<vmem>>, vector<64x128xf32>
    %c0_1 = arith.constant 0 : index
    %c0_2 = arith.constant 0 : index
    %1 = vector.load %arg2[%c0_1, %c0_2] : memref<128x384xbf16, #tpu.memory_space<vmem>>, vector<128x384xbf16>
    %c0_3 = arith.constant 0 : index
    %c0_4 = arith.constant 0 : index
    %2 = vector.load %arg3[%c0_3, %c0_4] : memref<1x4xf32, #tpu.memory_space<vmem>>, vector<1x4xf32>
    %c0_5 = arith.constant 0 : index
    %c0_6 = arith.constant 0 : index
    %3 = vector.load %arg4[%c0_5, %c0_6] : memref<1x4xf32, #tpu.memory_space<vmem>>, vector<1x4xf32>
    %c0_7 = arith.constant 0 : index
    %c0_8 = arith.constant 0 : index
    %4 = vector.load %arg5[%c0_7, %c0_8] : memref<128x4xf32, #tpu.memory_space<vmem>>, vector<128x4xf32>
    %5 = arith.truncf %0 : vector<64x128xf32> to vector<64x128xbf16>
    %cst = arith.constant dense<0.000000e+00> : vector<64x384xf32>
    %6 = tpu.matmul %5, %1, %cst {dimension_numbers = #tpu.dot_dimension_numbers<[1], [0], [0], [1], [0, 0, 1, 1], [], []>} : vector<64x128xbf16>, vector<128x384xbf16>, vector<64x384xf32> -> vector<64x384xf32>
    %7 = vector.extract_strided_slice %6 {offsets = [0, 0], sizes = [64, 128], strides = [1, 1]} : vector<64x384xf32> to vector<64x128xf32>
    %8 = vector.extract_strided_slice %6 {offsets = [0, 128], sizes = [64, 128], strides = [1, 1]} : vector<64x384xf32> to vector<64x128xf32>
    %9 = vector.extract_strided_slice %6 {offsets = [0, 256], sizes = [64, 128], strides = [1, 1]} : vector<64x384xf32> to vector<64x128xf32>
    %10 = tpu.iota {dimensions = array<i32: 0>} : vector<64x1xi32>
    %c32_i32 = arith.constant 32 : i32
    %c0_i32 = arith.constant 0 : i32
    %11 = arith.cmpi eq, %c32_i32, %c0_i32 : i32
    %c1_i32 = arith.constant 1 : i32
    %12 = arith.select %11, %c1_i32, %c32_i32 : i32
    %13 = vector.broadcast %12 : i32 to vector<64x1xi32>
    %14 = arith.remsi %10, %13 : vector<64x1xi32>
    %c0_i32_9 = arith.constant 0 : i32
    %15 = vector.broadcast %c0_i32_9 : i32 to vector<64x1xi32>
    %16 = arith.cmpi ne, %14, %15 : vector<64x1xi32>
    %c0_i32_10 = arith.constant 0 : i32
    %17 = vector.broadcast %c0_i32_10 : i32 to vector<64x1xi32>
    %18 = arith.cmpi slt, %14, %17 : vector<64x1xi32>
    %c0_i32_11 = arith.constant 0 : i32
    %19 = arith.cmpi slt, %12, %c0_i32_11 : i32
    %20 = vector.broadcast %19 : i1 to vector<64x1xi1>
    %21 = vector.broadcast %20 : vector<64x1xi1> to vector<64x1xi1>
    %22 = arith.xori %18, %21 : vector<64x1xi1>
    %23 = arith.andi %22, %16 : vector<64x1xi1>
    %24 = vector.broadcast %12 : i32 to vector<64x1xi32>
    %25 = arith.addi %14, %24 : vector<64x1xi32>
    %26 = arith.select %23, %25, %14 : vector<64x1xi1>, vector<64x1xi32>
    %c0_i32_12 = arith.constant 0 : i32
    %27 = vector.broadcast %c0_i32_12 : i32 to vector<64x1xi32>
    %28 = arith.cmpi ne, %26, %27 : vector<64x1xi32>
    %c32_i32_13 = arith.constant 32 : i32
    %c0_i32_14 = arith.constant 0 : i32
    %29 = arith.cmpi eq, %c32_i32_13, %c0_i32_14 : i32
    %c1_i32_15 = arith.constant 1 : i32
    %30 = arith.select %29, %c1_i32_15, %c32_i32_13 : i32
    %31 = vector.broadcast %30 : i32 to vector<64x1xi32>
    %32 = arith.remsi %10, %31 : vector<64x1xi32>
    %c0_i32_16 = arith.constant 0 : i32
    %33 = vector.broadcast %c0_i32_16 : i32 to vector<64x1xi32>
    %34 = arith.cmpi ne, %32, %33 : vector<64x1xi32>
    %c0_i32_17 = arith.constant 0 : i32
    %35 = vector.broadcast %c0_i32_17 : i32 to vector<64x1xi32>
    %36 = arith.cmpi slt, %32, %35 : vector<64x1xi32>
    %c0_i32_18 = arith.constant 0 : i32
    %37 = arith.cmpi slt, %30, %c0_i32_18 : i32
    %38 = vector.broadcast %37 : i1 to vector<64x1xi1>
    %39 = vector.broadcast %38 : vector<64x1xi1> to vector<64x1xi1>
    %40 = arith.xori %36, %39 : vector<64x1xi1>
    %41 = arith.andi %40, %34 : vector<64x1xi1>
    %42 = vector.broadcast %30 : i32 to vector<64x1xi32>
    %43 = arith.addi %32, %42 : vector<64x1xi32>
    %44 = arith.select %41, %43, %32 : vector<64x1xi1>, vector<64x1xi32>
    %c31_i32 = arith.constant 31 : i32
    %45 = vector.broadcast %c31_i32 : i32 to vector<64x1xi32>
    %46 = arith.cmpi ne, %44, %45 : vector<64x1xi32>
    %47 = vector.extract_strided_slice %7 {offsets = [63, 0], sizes = [1, 128], strides = [1, 1]} : vector<64x128xf32> to vector<1x128xf32>
    %48 = vector.extract_strided_slice %7 {offsets = [0, 0], sizes = [63, 128], strides = [1, 1]} : vector<64x128xf32> to vector<63x128xf32>
    %49 = tpu.concatenate %47, %48 in 0 : vector<1x128xf32>, vector<63x128xf32> -> vector<64x128xf32>
    %cst_19 = arith.constant 0.000000e+00 : f32
    %50 = vector.shape_cast %28 : vector<64x1xi1> to vector<64x1xi1>
    %51 = vector.broadcast %50 : vector<64x1xi1> to vector<64x128xi1>
    %52 = vector.broadcast %cst_19 : f32 to vector<64x128xf32>
    %53 = arith.select %51, %49, %52 : vector<64x128xi1>, vector<64x128xf32>
    %54 = arith.addf %8, %53 : vector<64x128xf32>
    %55 = vector.extract_strided_slice %9 {offsets = [1, 0], sizes = [63, 128], strides = [1, 1]} : vector<64x128xf32> to vector<63x128xf32>
    %56 = vector.extract_strided_slice %9 {offsets = [0, 0], sizes = [1, 128], strides = [1, 1]} : vector<64x128xf32> to vector<1x128xf32>
    %57 = tpu.concatenate %55, %56 in 0 : vector<63x128xf32>, vector<1x128xf32> -> vector<64x128xf32>
    %cst_20 = arith.constant 0.000000e+00 : f32
    %58 = vector.shape_cast %46 : vector<64x1xi1> to vector<64x1xi1>
    %59 = vector.broadcast %58 : vector<64x1xi1> to vector<64x128xi1>
    %60 = vector.broadcast %cst_20 : f32 to vector<64x128xf32>
    %61 = arith.select %59, %57, %60 : vector<64x128xi1>, vector<64x128xf32>
    %62 = arith.addf %54, %61 : vector<64x128xf32>
    %cst_21 = arith.constant dense<0.000000e+00> : vector<128xf32>
    %63 = vector.multi_reduction <add>, %62, %cst_21 [0] : vector<64x128xf32> to vector<128xf32>
    %64 = vector.shape_cast %63 : vector<128xf32> to vector<1x128xf32>
    %65 = arith.mulf %62, %62 : vector<64x128xf32>
    %cst_22 = arith.constant dense<0.000000e+00> : vector<128xf32>
    %66 = vector.multi_reduction <add>, %65, %cst_22 [0] : vector<64x128xf32> to vector<128xf32>
    %67 = vector.shape_cast %66 : vector<128xf32> to vector<1x128xf32>
    %68 = tpu.concatenate %64, %67 in 0 : vector<1x128xf32>, vector<1x128xf32> -> vector<2x128xf32>
    %cst_23 = arith.constant dense<0.000000e+00> : vector<2x4xf32>
    %69 = tpu.matmul %68, %4, %cst_23 {dimension_numbers = #tpu.dot_dimension_numbers<[1], [0], [0], [1], [0, 0, 1, 1], [], []>} : vector<2x128xf32>, vector<128x4xf32>, vector<2x4xf32> -> vector<2x4xf32>
    %70 = vector.extract_strided_slice %69 {offsets = [0, 0], sizes = [1, 4], strides = [1, 1]} : vector<2x4xf32> to vector<1x4xf32>
    %cst_24 = arith.constant 2.048000e+03 : f32
    %71 = vector.broadcast %cst_24 : f32 to vector<1x4xf32>
    %72 = arith.divf %70, %71 : vector<1x4xf32>
    %73 = vector.extract_strided_slice %69 {offsets = [1, 0], sizes = [1, 4], strides = [1, 1]} : vector<2x4xf32> to vector<1x4xf32>
    %cst_25 = arith.constant 2.048000e+03 : f32
    %74 = vector.broadcast %cst_25 : f32 to vector<1x4xf32>
    %75 = arith.divf %73, %74 : vector<1x4xf32>
    %76 = arith.mulf %72, %72 : vector<1x4xf32>
    %77 = arith.subf %75, %76 : vector<1x4xf32>
    %cst_26 = arith.constant 0.000000e+00 : f32
    %78 = vector.broadcast %cst_26 : f32 to vector<1x4xf32>
    %79 = arith.maximumf %77, %78 : vector<1x4xf32>
    %cst_27 = arith.constant 9.99999974E-6 : f32
    %80 = vector.broadcast %cst_27 : f32 to vector<1x4xf32>
    %81 = arith.addf %79, %80 : vector<1x4xf32>
    %82 = math.rsqrt %81 : vector<1x4xf32>
    %83 = arith.mulf %2, %82 : vector<1x4xf32>
    %84 = arith.mulf %72, %83 : vector<1x4xf32>
    %85 = arith.subf %3, %84 : vector<1x4xf32>
    %86 = tpu.concatenate %83, %83 in 1 : vector<1x4xf32>, vector<1x4xf32> -> vector<1x8xf32>
    %87 = tpu.concatenate %86, %86 in 1 : vector<1x8xf32>, vector<1x8xf32> -> vector<1x16xf32>
    %88 = tpu.concatenate %87, %87 in 1 : vector<1x16xf32>, vector<1x16xf32> -> vector<1x32xf32>
    %89 = tpu.concatenate %88, %88 in 1 : vector<1x32xf32>, vector<1x32xf32> -> vector<1x64xf32>
    %90 = tpu.concatenate %89, %89 in 1 : vector<1x64xf32>, vector<1x64xf32> -> vector<1x128xf32>
    %91 = tpu.concatenate %85, %85 in 1 : vector<1x4xf32>, vector<1x4xf32> -> vector<1x8xf32>
    %92 = tpu.concatenate %91, %91 in 1 : vector<1x8xf32>, vector<1x8xf32> -> vector<1x16xf32>
    %93 = tpu.concatenate %92, %92 in 1 : vector<1x16xf32>, vector<1x16xf32> -> vector<1x32xf32>
    %94 = tpu.concatenate %93, %93 in 1 : vector<1x32xf32>, vector<1x32xf32> -> vector<1x64xf32>
    %95 = tpu.concatenate %94, %94 in 1 : vector<1x64xf32>, vector<1x64xf32> -> vector<1x128xf32>
    %96 = vector.broadcast %90 : vector<1x128xf32> to vector<64x128xf32>
    %97 = arith.mulf %62, %96 : vector<64x128xf32>
    %98 = vector.broadcast %95 : vector<1x128xf32> to vector<64x128xf32>
    %99 = arith.addf %97, %98 : vector<64x128xf32>
    %cst_28 = arith.constant 0.000000e+00 : f32
    %100 = vector.broadcast %cst_28 : f32 to vector<64x128xf32>
    %101 = arith.maximumf %99, %100 : vector<64x128xf32>
    %c0_29 = arith.constant 0 : index
    %c0_30 = arith.constant 0 : index
    %102 = vector.load %arg6[%c0_29, %c0_30] : memref<128x64xbf16, #tpu.memory_space<vmem>>, vector<128x64xbf16>
    %c0_31 = arith.constant 0 : index
    %c0_32 = arith.constant 0 : index
    %103 = vector.load %arg7[%c0_31, %c0_32] : memref<32x64xbf16, #tpu.memory_space<vmem>>, vector<32x64xbf16>
    %104 = vector.extract_strided_slice %101 {offsets = [0, 4], sizes = [64, 124], strides = [1, 1]} : vector<64x128xf32> to vector<64x124xf32>
    %105 = vector.extract_strided_slice %101 {offsets = [0, 0], sizes = [64, 4], strides = [1, 1]} : vector<64x128xf32> to vector<64x4xf32>
    %106 = tpu.concatenate %104, %105 in 1 : vector<64x124xf32>, vector<64x4xf32> -> vector<64x128xf32>
    %107 = arith.maximumf %101, %106 : vector<64x128xf32>
    %108 = arith.truncf %107 : vector<64x128xf32> to vector<64x128xbf16>
    %cst_33 = arith.constant dense<0.000000e+00> : vector<64x64xf32>
    %109 = tpu.matmul %108, %102, %cst_33 {dimension_numbers = #tpu.dot_dimension_numbers<[1], [0], [0], [1], [0, 0, 1, 1], [], []>} : vector<64x128xbf16>, vector<128x64xbf16>, vector<64x64xf32> -> vector<64x64xf32>
    %110 = vector.extract_strided_slice %109 {offsets = [1, 0], sizes = [63, 64], strides = [1, 1]} : vector<64x64xf32> to vector<63x64xf32>
    %111 = vector.extract_strided_slice %109 {offsets = [0, 0], sizes = [1, 64], strides = [1, 1]} : vector<64x64xf32> to vector<1x64xf32>
    %112 = tpu.concatenate %110, %111 in 0 : vector<63x64xf32>, vector<1x64xf32> -> vector<64x64xf32>
    %113 = arith.maximumf %109, %112 : vector<64x64xf32>
    %114 = arith.truncf %113 : vector<64x64xf32> to vector<64x64xbf16>
    %cst_34 = arith.constant dense<0.000000e+00> : vector<32x64xf32>
    %115 = tpu.matmul %103, %114, %cst_34 {dimension_numbers = #tpu.dot_dimension_numbers<[1], [0], [0], [1], [0, 0, 1, 1], [], []>} : vector<32x64xbf16>, vector<64x64xbf16>, vector<32x64xf32> -> vector<32x64xf32>
    %c0_35 = arith.constant 0 : index
    %c0_36 = arith.constant 0 : index
    %116 = vector.load %arg8[%c0_35, %c0_36] : memref<64x384xbf16, #tpu.memory_space<vmem>>, vector<64x384xbf16>
    %c0_37 = arith.constant 0 : index
    %c0_38 = arith.constant 0 : index
    %117 = vector.load %arg9[%c0_37, %c0_38] : memref<1x8xf32, #tpu.memory_space<vmem>>, vector<1x8xf32>
    %c0_39 = arith.constant 0 : index
    %c0_40 = arith.constant 0 : index
    %118 = vector.load %arg10[%c0_39, %c0_40] : memref<1x8xf32, #tpu.memory_space<vmem>>, vector<1x8xf32>
    %c0_41 = arith.constant 0 : index
    %c0_42 = arith.constant 0 : index
    %119 = vector.load %arg11[%c0_41, %c0_42] : memref<128x8xf32, #tpu.memory_space<vmem>>, vector<128x8xf32>
    %120 = arith.truncf %115 : vector<32x64xf32> to vector<32x64xbf16>
    %cst_43 = arith.constant dense<0.000000e+00> : vector<32x384xf32>
    %121 = tpu.matmul %120, %116, %cst_43 {dimension_numbers = #tpu.dot_dimension_numbers<[1], [0], [0], [1], [0, 0, 1, 1], [], []>} : vector<32x64xbf16>, vector<64x384xbf16>, vector<32x384xf32> -> vector<32x384xf32>
    %122 = vector.extract_strided_slice %121 {offsets = [0, 0], sizes = [32, 128], strides = [1, 1]} : vector<32x384xf32> to vector<32x128xf32>
    %123 = vector.extract_strided_slice %121 {offsets = [0, 128], sizes = [32, 128], strides = [1, 1]} : vector<32x384xf32> to vector<32x128xf32>
    %124 = vector.extract_strided_slice %121 {offsets = [0, 256], sizes = [32, 128], strides = [1, 1]} : vector<32x384xf32> to vector<32x128xf32>
    %125 = tpu.iota {dimensions = array<i32: 0>} : vector<32x1xi32>
    %c16_i32 = arith.constant 16 : i32
    %c0_i32_44 = arith.constant 0 : i32
    %126 = arith.cmpi eq, %c16_i32, %c0_i32_44 : i32
    %c1_i32_45 = arith.constant 1 : i32
    %127 = arith.select %126, %c1_i32_45, %c16_i32 : i32
    %128 = vector.broadcast %127 : i32 to vector<32x1xi32>
    %129 = arith.remsi %125, %128 : vector<32x1xi32>
    %c0_i32_46 = arith.constant 0 : i32
    %130 = vector.broadcast %c0_i32_46 : i32 to vector<32x1xi32>
    %131 = arith.cmpi ne, %129, %130 : vector<32x1xi32>
    %c0_i32_47 = arith.constant 0 : i32
    %132 = vector.broadcast %c0_i32_47 : i32 to vector<32x1xi32>
    %133 = arith.cmpi slt, %129, %132 : vector<32x1xi32>
    %c0_i32_48 = arith.constant 0 : i32
    %134 = arith.cmpi slt, %127, %c0_i32_48 : i32
    %135 = vector.broadcast %134 : i1 to vector<32x1xi1>
    %136 = vector.broadcast %135 : vector<32x1xi1> to vector<32x1xi1>
    %137 = arith.xori %133, %136 : vector<32x1xi1>
    %138 = arith.andi %137, %131 : vector<32x1xi1>
    %139 = vector.broadcast %127 : i32 to vector<32x1xi32>
    %140 = arith.addi %129, %139 : vector<32x1xi32>
    %141 = arith.select %138, %140, %129 : vector<32x1xi1>, vector<32x1xi32>
    %c0_i32_49 = arith.constant 0 : i32
    %142 = vector.broadcast %c0_i32_49 : i32 to vector<32x1xi32>
    %143 = arith.cmpi ne, %141, %142 : vector<32x1xi32>
    %c16_i32_50 = arith.constant 16 : i32
    %c0_i32_51 = arith.constant 0 : i32
    %144 = arith.cmpi eq, %c16_i32_50, %c0_i32_51 : i32
    %c1_i32_52 = arith.constant 1 : i32
    %145 = arith.select %144, %c1_i32_52, %c16_i32_50 : i32
    %146 = vector.broadcast %145 : i32 to vector<32x1xi32>
    %147 = arith.remsi %125, %146 : vector<32x1xi32>
    %c0_i32_53 = arith.constant 0 : i32
    %148 = vector.broadcast %c0_i32_53 : i32 to vector<32x1xi32>
    %149 = arith.cmpi ne, %147, %148 : vector<32x1xi32>
    %c0_i32_54 = arith.constant 0 : i32
    %150 = vector.broadcast %c0_i32_54 : i32 to vector<32x1xi32>
    %151 = arith.cmpi slt, %147, %150 : vector<32x1xi32>
    %c0_i32_55 = arith.constant 0 : i32
    %152 = arith.cmpi slt, %145, %c0_i32_55 : i32
    %153 = vector.broadcast %152 : i1 to vector<32x1xi1>
    %154 = vector.broadcast %153 : vector<32x1xi1> to vector<32x1xi1>
    %155 = arith.xori %151, %154 : vector<32x1xi1>
    %156 = arith.andi %155, %149 : vector<32x1xi1>
    %157 = vector.broadcast %145 : i32 to vector<32x1xi32>
    %158 = arith.addi %147, %157 : vector<32x1xi32>
    %159 = arith.select %156, %158, %147 : vector<32x1xi1>, vector<32x1xi32>
    %c15_i32 = arith.constant 15 : i32
    %160 = vector.broadcast %c15_i32 : i32 to vector<32x1xi32>
    %161 = arith.cmpi ne, %159, %160 : vector<32x1xi32>
    %162 = vector.extract_strided_slice %122 {offsets = [31, 0], sizes = [1, 128], strides = [1, 1]} : vector<32x128xf32> to vector<1x128xf32>
    %163 = vector.extract_strided_slice %122 {offsets = [0, 0], sizes = [31, 128], strides = [1, 1]} : vector<32x128xf32> to vector<31x128xf32>
    %164 = tpu.concatenate %162, %163 in 0 : vector<1x128xf32>, vector<31x128xf32> -> vector<32x128xf32>
    %cst_56 = arith.constant 0.000000e+00 : f32
    %165 = vector.shape_cast %143 : vector<32x1xi1> to vector<32x1xi1>
    %166 = vector.broadcast %165 : vector<32x1xi1> to vector<32x128xi1>
    %167 = vector.broadcast %cst_56 : f32 to vector<32x128xf32>
    %168 = arith.select %166, %164, %167 : vector<32x128xi1>, vector<32x128xf32>
    %169 = arith.addf %123, %168 : vector<32x128xf32>
    %170 = vector.extract_strided_slice %124 {offsets = [1, 0], sizes = [31, 128], strides = [1, 1]} : vector<32x128xf32> to vector<31x128xf32>
    %171 = vector.extract_strided_slice %124 {offsets = [0, 0], sizes = [1, 128], strides = [1, 1]} : vector<32x128xf32> to vector<1x128xf32>
    %172 = tpu.concatenate %170, %171 in 0 : vector<31x128xf32>, vector<1x128xf32> -> vector<32x128xf32>
    %cst_57 = arith.constant 0.000000e+00 : f32
    %173 = vector.shape_cast %161 : vector<32x1xi1> to vector<32x1xi1>
    %174 = vector.broadcast %173 : vector<32x1xi1> to vector<32x128xi1>
    %175 = vector.broadcast %cst_57 : f32 to vector<32x128xf32>
    %176 = arith.select %174, %172, %175 : vector<32x128xi1>, vector<32x128xf32>
    %177 = arith.addf %169, %176 : vector<32x128xf32>
    %cst_58 = arith.constant dense<0.000000e+00> : vector<128xf32>
    %178 = vector.multi_reduction <add>, %177, %cst_58 [0] : vector<32x128xf32> to vector<128xf32>
    %179 = vector.shape_cast %178 : vector<128xf32> to vector<1x128xf32>
    %180 = arith.mulf %177, %177 : vector<32x128xf32>
    %cst_59 = arith.constant dense<0.000000e+00> : vector<128xf32>
    %181 = vector.multi_reduction <add>, %180, %cst_59 [0] : vector<32x128xf32> to vector<128xf32>
    %182 = vector.shape_cast %181 : vector<128xf32> to vector<1x128xf32>
    %183 = tpu.concatenate %179, %182 in 0 : vector<1x128xf32>, vector<1x128xf32> -> vector<2x128xf32>
    %cst_60 = arith.constant dense<0.000000e+00> : vector<2x8xf32>
    %184 = tpu.matmul %183, %119, %cst_60 {dimension_numbers = #tpu.dot_dimension_numbers<[1], [0], [0], [1], [0, 0, 1, 1], [], []>} : vector<2x128xf32>, vector<128x8xf32>, vector<2x8xf32> -> vector<2x8xf32>
    %185 = vector.extract_strided_slice %184 {offsets = [0, 0], sizes = [1, 8], strides = [1, 1]} : vector<2x8xf32> to vector<1x8xf32>
    %cst_61 = arith.constant 5.120000e+02 : f32
    %186 = vector.broadcast %cst_61 : f32 to vector<1x8xf32>
    %187 = arith.divf %185, %186 : vector<1x8xf32>
    %188 = vector.extract_strided_slice %184 {offsets = [1, 0], sizes = [1, 8], strides = [1, 1]} : vector<2x8xf32> to vector<1x8xf32>
    %cst_62 = arith.constant 5.120000e+02 : f32
    %189 = vector.broadcast %cst_62 : f32 to vector<1x8xf32>
    %190 = arith.divf %188, %189 : vector<1x8xf32>
    %191 = arith.mulf %187, %187 : vector<1x8xf32>
    %192 = arith.subf %190, %191 : vector<1x8xf32>
    %cst_63 = arith.constant 0.000000e+00 : f32
    %193 = vector.broadcast %cst_63 : f32 to vector<1x8xf32>
    %194 = arith.maximumf %192, %193 : vector<1x8xf32>
    %cst_64 = arith.constant 9.99999974E-6 : f32
    %195 = vector.broadcast %cst_64 : f32 to vector<1x8xf32>
    %196 = arith.addf %194, %195 : vector<1x8xf32>
    %197 = math.rsqrt %196 : vector<1x8xf32>
    %198 = arith.mulf %117, %197 : vector<1x8xf32>
    %199 = arith.mulf %187, %198 : vector<1x8xf32>
    %200 = arith.subf %118, %199 : vector<1x8xf32>
    %201 = tpu.concatenate %198, %198 in 1 : vector<1x8xf32>, vector<1x8xf32> -> vector<1x16xf32>
    %202 = tpu.concatenate %201, %201 in 1 : vector<1x16xf32>, vector<1x16xf32> -> vector<1x32xf32>
    %203 = tpu.concatenate %202, %202 in 1 : vector<1x32xf32>, vector<1x32xf32> -> vector<1x64xf32>
    %204 = tpu.concatenate %203, %203 in 1 : vector<1x64xf32>, vector<1x64xf32> -> vector<1x128xf32>
    %205 = tpu.concatenate %200, %200 in 1 : vector<1x8xf32>, vector<1x8xf32> -> vector<1x16xf32>
    %206 = tpu.concatenate %205, %205 in 1 : vector<1x16xf32>, vector<1x16xf32> -> vector<1x32xf32>
    %207 = tpu.concatenate %206, %206 in 1 : vector<1x32xf32>, vector<1x32xf32> -> vector<1x64xf32>
    %208 = tpu.concatenate %207, %207 in 1 : vector<1x64xf32>, vector<1x64xf32> -> vector<1x128xf32>
    %209 = vector.broadcast %204 : vector<1x128xf32> to vector<32x128xf32>
    %210 = arith.mulf %177, %209 : vector<32x128xf32>
    %211 = vector.broadcast %208 : vector<1x128xf32> to vector<32x128xf32>
    %212 = arith.addf %210, %211 : vector<32x128xf32>
    %cst_65 = arith.constant 0.000000e+00 : f32
    %213 = vector.broadcast %cst_65 : f32 to vector<32x128xf32>
    %214 = arith.maximumf %212, %213 : vector<32x128xf32>
    %c0_66 = arith.constant 0 : index
    %c0_67 = arith.constant 0 : index
    %215 = vector.load %arg12[%c0_66, %c0_67] : memref<128x64xbf16, #tpu.memory_space<vmem>>, vector<128x64xbf16>
    %c0_68 = arith.constant 0 : index
    %c0_69 = arith.constant 0 : index
    %216 = vector.load %arg13[%c0_68, %c0_69] : memref<16x32xbf16, #tpu.memory_space<vmem>>, vector<16x32xbf16>
    %217 = vector.extract_strided_slice %214 {offsets = [0, 8], sizes = [32, 120], strides = [1, 1]} : vector<32x128xf32> to vector<32x120xf32>
    %218 = vector.extract_strided_slice %214 {offsets = [0, 0], sizes = [32, 8], strides = [1, 1]} : vector<32x128xf32> to vector<32x8xf32>
    %219 = tpu.concatenate %217, %218 in 1 : vector<32x120xf32>, vector<32x8xf32> -> vector<32x128xf32>
    %220 = arith.maximumf %214, %219 : vector<32x128xf32>
    %221 = arith.truncf %220 : vector<32x128xf32> to vector<32x128xbf16>
    %cst_70 = arith.constant dense<0.000000e+00> : vector<32x64xf32>
    %222 = tpu.matmul %221, %215, %cst_70 {dimension_numbers = #tpu.dot_dimension_numbers<[1], [0], [0], [1], [0, 0, 1, 1], [], []>} : vector<32x128xbf16>, vector<128x64xbf16>, vector<32x64xf32> -> vector<32x64xf32>
    %223 = vector.extract_strided_slice %222 {offsets = [1, 0], sizes = [31, 64], strides = [1, 1]} : vector<32x64xf32> to vector<31x64xf32>
    %224 = vector.extract_strided_slice %222 {offsets = [0, 0], sizes = [1, 64], strides = [1, 1]} : vector<32x64xf32> to vector<1x64xf32>
    %225 = tpu.concatenate %223, %224 in 0 : vector<31x64xf32>, vector<1x64xf32> -> vector<32x64xf32>
    %226 = arith.maximumf %222, %225 : vector<32x64xf32>
    %227 = arith.truncf %226 : vector<32x64xf32> to vector<32x64xbf16>
    %cst_71 = arith.constant dense<0.000000e+00> : vector<16x64xf32>
    %228 = tpu.matmul %216, %227, %cst_71 {dimension_numbers = #tpu.dot_dimension_numbers<[1], [0], [0], [1], [0, 0, 1, 1], [], []>} : vector<16x32xbf16>, vector<32x64xbf16>, vector<16x64xf32> -> vector<16x64xf32>
    %c0_72 = arith.constant 0 : index
    %c0_73 = arith.constant 0 : index
    %229 = vector.load %arg14[%c0_72, %c0_73] : memref<64x384xbf16, #tpu.memory_space<vmem>>, vector<64x384xbf16>
    %c0_74 = arith.constant 0 : index
    %c0_75 = arith.constant 0 : index
    %230 = vector.load %arg15[%c0_74, %c0_75] : memref<1x16xf32, #tpu.memory_space<vmem>>, vector<1x16xf32>
    %c0_76 = arith.constant 0 : index
    %c0_77 = arith.constant 0 : index
    %231 = vector.load %arg16[%c0_76, %c0_77] : memref<1x16xf32, #tpu.memory_space<vmem>>, vector<1x16xf32>
    %c0_78 = arith.constant 0 : index
    %c0_79 = arith.constant 0 : index
    %232 = vector.load %arg17[%c0_78, %c0_79] : memref<128x16xf32, #tpu.memory_space<vmem>>, vector<128x16xf32>
    %233 = arith.truncf %228 : vector<16x64xf32> to vector<16x64xbf16>
    %cst_80 = arith.constant dense<0.000000e+00> : vector<16x384xf32>
    %234 = tpu.matmul %233, %229, %cst_80 {dimension_numbers = #tpu.dot_dimension_numbers<[1], [0], [0], [1], [0, 0, 1, 1], [], []>} : vector<16x64xbf16>, vector<64x384xbf16>, vector<16x384xf32> -> vector<16x384xf32>
    %235 = vector.extract_strided_slice %234 {offsets = [0, 0], sizes = [16, 128], strides = [1, 1]} : vector<16x384xf32> to vector<16x128xf32>
    %236 = vector.extract_strided_slice %234 {offsets = [0, 128], sizes = [16, 128], strides = [1, 1]} : vector<16x384xf32> to vector<16x128xf32>
    %237 = vector.extract_strided_slice %234 {offsets = [0, 256], sizes = [16, 128], strides = [1, 1]} : vector<16x384xf32> to vector<16x128xf32>
    %238 = tpu.iota {dimensions = array<i32: 0>} : vector<16x1xi32>
    %c8_i32 = arith.constant 8 : i32
    %c0_i32_81 = arith.constant 0 : i32
    %239 = arith.cmpi eq, %c8_i32, %c0_i32_81 : i32
    %c1_i32_82 = arith.constant 1 : i32
    %240 = arith.select %239, %c1_i32_82, %c8_i32 : i32
    %241 = vector.broadcast %240 : i32 to vector<16x1xi32>
    %242 = arith.remsi %238, %241 : vector<16x1xi32>
    %c0_i32_83 = arith.constant 0 : i32
    %243 = vector.broadcast %c0_i32_83 : i32 to vector<16x1xi32>
    %244 = arith.cmpi ne, %242, %243 : vector<16x1xi32>
    %c0_i32_84 = arith.constant 0 : i32
    %245 = vector.broadcast %c0_i32_84 : i32 to vector<16x1xi32>
    %246 = arith.cmpi slt, %242, %245 : vector<16x1xi32>
    %c0_i32_85 = arith.constant 0 : i32
    %247 = arith.cmpi slt, %240, %c0_i32_85 : i32
    %248 = vector.broadcast %247 : i1 to vector<16x1xi1>
    %249 = vector.broadcast %248 : vector<16x1xi1> to vector<16x1xi1>
    %250 = arith.xori %246, %249 : vector<16x1xi1>
    %251 = arith.andi %250, %244 : vector<16x1xi1>
    %252 = vector.broadcast %240 : i32 to vector<16x1xi32>
    %253 = arith.addi %242, %252 : vector<16x1xi32>
    %254 = arith.select %251, %253, %242 : vector<16x1xi1>, vector<16x1xi32>
    %c0_i32_86 = arith.constant 0 : i32
    %255 = vector.broadcast %c0_i32_86 : i32 to vector<16x1xi32>
    %256 = arith.cmpi ne, %254, %255 : vector<16x1xi32>
    %c8_i32_87 = arith.constant 8 : i32
    %c0_i32_88 = arith.constant 0 : i32
    %257 = arith.cmpi eq, %c8_i32_87, %c0_i32_88 : i32
    %c1_i32_89 = arith.constant 1 : i32
    %258 = arith.select %257, %c1_i32_89, %c8_i32_87 : i32
    %259 = vector.broadcast %258 : i32 to vector<16x1xi32>
    %260 = arith.remsi %238, %259 : vector<16x1xi32>
    %c0_i32_90 = arith.constant 0 : i32
    %261 = vector.broadcast %c0_i32_90 : i32 to vector<16x1xi32>
    %262 = arith.cmpi ne, %260, %261 : vector<16x1xi32>
    %c0_i32_91 = arith.constant 0 : i32
    %263 = vector.broadcast %c0_i32_91 : i32 to vector<16x1xi32>
    %264 = arith.cmpi slt, %260, %263 : vector<16x1xi32>
    %c0_i32_92 = arith.constant 0 : i32
    %265 = arith.cmpi slt, %258, %c0_i32_92 : i32
    %266 = vector.broadcast %265 : i1 to vector<16x1xi1>
    %267 = vector.broadcast %266 : vector<16x1xi1> to vector<16x1xi1>
    %268 = arith.xori %264, %267 : vector<16x1xi1>
    %269 = arith.andi %268, %262 : vector<16x1xi1>
    %270 = vector.broadcast %258 : i32 to vector<16x1xi32>
    %271 = arith.addi %260, %270 : vector<16x1xi32>
    %272 = arith.select %269, %271, %260 : vector<16x1xi1>, vector<16x1xi32>
    %c7_i32 = arith.constant 7 : i32
    %273 = vector.broadcast %c7_i32 : i32 to vector<16x1xi32>
    %274 = arith.cmpi ne, %272, %273 : vector<16x1xi32>
    %275 = vector.extract_strided_slice %235 {offsets = [15, 0], sizes = [1, 128], strides = [1, 1]} : vector<16x128xf32> to vector<1x128xf32>
    %276 = vector.extract_strided_slice %235 {offsets = [0, 0], sizes = [15, 128], strides = [1, 1]} : vector<16x128xf32> to vector<15x128xf32>
    %277 = tpu.concatenate %275, %276 in 0 : vector<1x128xf32>, vector<15x128xf32> -> vector<16x128xf32>
    %cst_93 = arith.constant 0.000000e+00 : f32
    %278 = vector.shape_cast %256 : vector<16x1xi1> to vector<16x1xi1>
    %279 = vector.broadcast %278 : vector<16x1xi1> to vector<16x128xi1>
    %280 = vector.broadcast %cst_93 : f32 to vector<16x128xf32>
    %281 = arith.select %279, %277, %280 : vector<16x128xi1>, vector<16x128xf32>
    %282 = arith.addf %236, %281 : vector<16x128xf32>
    %283 = vector.extract_strided_slice %237 {offsets = [1, 0], sizes = [15, 128], strides = [1, 1]} : vector<16x128xf32> to vector<15x128xf32>
    %284 = vector.extract_strided_slice %237 {offsets = [0, 0], sizes = [1, 128], strides = [1, 1]} : vector<16x128xf32> to vector<1x128xf32>
    %285 = tpu.concatenate %283, %284 in 0 : vector<15x128xf32>, vector<1x128xf32> -> vector<16x128xf32>
    %cst_94 = arith.constant 0.000000e+00 : f32
    %286 = vector.shape_cast %274 : vector<16x1xi1> to vector<16x1xi1>
    %287 = vector.broadcast %286 : vector<16x1xi1> to vector<16x128xi1>
    %288 = vector.broadcast %cst_94 : f32 to vector<16x128xf32>
    %289 = arith.select %287, %285, %288 : vector<16x128xi1>, vector<16x128xf32>
    %290 = arith.addf %282, %289 : vector<16x128xf32>
    %cst_95 = arith.constant dense<0.000000e+00> : vector<128xf32>
    %291 = vector.multi_reduction <add>, %290, %cst_95 [0] : vector<16x128xf32> to vector<128xf32>
    %292 = vector.shape_cast %291 : vector<128xf32> to vector<1x128xf32>
    %293 = arith.mulf %290, %290 : vector<16x128xf32>
    %cst_96 = arith.constant dense<0.000000e+00> : vector<128xf32>
    %294 = vector.multi_reduction <add>, %293, %cst_96 [0] : vector<16x128xf32> to vector<128xf32>
    %295 = vector.shape_cast %294 : vector<128xf32> to vector<1x128xf32>
    %296 = tpu.concatenate %292, %295 in 0 : vector<1x128xf32>, vector<1x128xf32> -> vector<2x128xf32>
    %cst_97 = arith.constant dense<0.000000e+00> : vector<2x16xf32>
    %297 = tpu.matmul %296, %232, %cst_97 {dimension_numbers = #tpu.dot_dimension_numbers<[1], [0], [0], [1], [0, 0, 1, 1], [], []>} : vector<2x128xf32>, vector<128x16xf32>, vector<2x16xf32> -> vector<2x16xf32>
    %298 = vector.extract_strided_slice %297 {offsets = [0, 0], sizes = [1, 16], strides = [1, 1]} : vector<2x16xf32> to vector<1x16xf32>
    %cst_98 = arith.constant 1.280000e+02 : f32
    %299 = vector.broadcast %cst_98 : f32 to vector<1x16xf32>
    %300 = arith.divf %298, %299 : vector<1x16xf32>
    %301 = vector.extract_strided_slice %297 {offsets = [1, 0], sizes = [1, 16], strides = [1, 1]} : vector<2x16xf32> to vector<1x16xf32>
    %cst_99 = arith.constant 1.280000e+02 : f32
    %302 = vector.broadcast %cst_99 : f32 to vector<1x16xf32>
    %303 = arith.divf %301, %302 : vector<1x16xf32>
    %304 = arith.mulf %300, %300 : vector<1x16xf32>
    %305 = arith.subf %303, %304 : vector<1x16xf32>
    %cst_100 = arith.constant 0.000000e+00 : f32
    %306 = vector.broadcast %cst_100 : f32 to vector<1x16xf32>
    %307 = arith.maximumf %305, %306 : vector<1x16xf32>
    %cst_101 = arith.constant 9.99999974E-6 : f32
    %308 = vector.broadcast %cst_101 : f32 to vector<1x16xf32>
    %309 = arith.addf %307, %308 : vector<1x16xf32>
    %310 = math.rsqrt %309 : vector<1x16xf32>
    %311 = arith.mulf %230, %310 : vector<1x16xf32>
    %312 = arith.mulf %300, %311 : vector<1x16xf32>
    %313 = arith.subf %231, %312 : vector<1x16xf32>
    %314 = tpu.concatenate %311, %311 in 1 : vector<1x16xf32>, vector<1x16xf32> -> vector<1x32xf32>
    %315 = tpu.concatenate %314, %314 in 1 : vector<1x32xf32>, vector<1x32xf32> -> vector<1x64xf32>
    %316 = tpu.concatenate %315, %315 in 1 : vector<1x64xf32>, vector<1x64xf32> -> vector<1x128xf32>
    %317 = tpu.concatenate %313, %313 in 1 : vector<1x16xf32>, vector<1x16xf32> -> vector<1x32xf32>
    %318 = tpu.concatenate %317, %317 in 1 : vector<1x32xf32>, vector<1x32xf32> -> vector<1x64xf32>
    %319 = tpu.concatenate %318, %318 in 1 : vector<1x64xf32>, vector<1x64xf32> -> vector<1x128xf32>
    %320 = vector.broadcast %316 : vector<1x128xf32> to vector<16x128xf32>
    %321 = arith.mulf %290, %320 : vector<16x128xf32>
    %322 = vector.broadcast %319 : vector<1x128xf32> to vector<16x128xf32>
    %323 = arith.addf %321, %322 : vector<16x128xf32>
    %cst_102 = arith.constant 0.000000e+00 : f32
    %324 = vector.broadcast %cst_102 : f32 to vector<16x128xf32>
    %325 = arith.maximumf %323, %324 : vector<16x128xf32>
    %c0_103 = arith.constant 0 : index
    %c0_104 = arith.constant 0 : index
    %326 = vector.load %arg18[%c0_103, %c0_104] : memref<128x384xbf16, #tpu.memory_space<vmem>>, vector<128x384xbf16>
    %c0_105 = arith.constant 0 : index
    %c0_106 = arith.constant 0 : index
    %327 = vector.load %arg19[%c0_105, %c0_106] : memref<1x16xf32, #tpu.memory_space<vmem>>, vector<1x16xf32>
    %c0_107 = arith.constant 0 : index
    %c0_108 = arith.constant 0 : index
    %328 = vector.load %arg20[%c0_107, %c0_108] : memref<1x16xf32, #tpu.memory_space<vmem>>, vector<1x16xf32>
    %c0_109 = arith.constant 0 : index
    %c0_110 = arith.constant 0 : index
    %329 = vector.load %arg21[%c0_109, %c0_110] : memref<128x16xf32, #tpu.memory_space<vmem>>, vector<128x16xf32>
    %330 = arith.truncf %325 : vector<16x128xf32> to vector<16x128xbf16>
    %cst_111 = arith.constant dense<0.000000e+00> : vector<16x384xf32>
    %331 = tpu.matmul %330, %326, %cst_111 {dimension_numbers = #tpu.dot_dimension_numbers<[1], [0], [0], [1], [0, 0, 1, 1], [], []>} : vector<16x128xbf16>, vector<128x384xbf16>, vector<16x384xf32> -> vector<16x384xf32>
    %332 = vector.extract_strided_slice %331 {offsets = [0, 0], sizes = [16, 128], strides = [1, 1]} : vector<16x384xf32> to vector<16x128xf32>
    %333 = vector.extract_strided_slice %331 {offsets = [0, 128], sizes = [16, 128], strides = [1, 1]} : vector<16x384xf32> to vector<16x128xf32>
    %334 = vector.extract_strided_slice %331 {offsets = [0, 256], sizes = [16, 128], strides = [1, 1]} : vector<16x384xf32> to vector<16x128xf32>
    %335 = vector.extract_strided_slice %332 {offsets = [15, 0], sizes = [1, 128], strides = [1, 1]} : vector<16x128xf32> to vector<1x128xf32>
    %336 = vector.extract_strided_slice %332 {offsets = [0, 0], sizes = [15, 128], strides = [1, 1]} : vector<16x128xf32> to vector<15x128xf32>
    %337 = tpu.concatenate %335, %336 in 0 : vector<1x128xf32>, vector<15x128xf32> -> vector<16x128xf32>
    %cst_112 = arith.constant 0.000000e+00 : f32
    %338 = vector.shape_cast %256 : vector<16x1xi1> to vector<16x1xi1>
    %339 = vector.broadcast %338 : vector<16x1xi1> to vector<16x128xi1>
    %340 = vector.broadcast %cst_112 : f32 to vector<16x128xf32>
    %341 = arith.select %339, %337, %340 : vector<16x128xi1>, vector<16x128xf32>
    %342 = arith.addf %333, %341 : vector<16x128xf32>
    %343 = vector.extract_strided_slice %334 {offsets = [1, 0], sizes = [15, 128], strides = [1, 1]} : vector<16x128xf32> to vector<15x128xf32>
    %344 = vector.extract_strided_slice %334 {offsets = [0, 0], sizes = [1, 128], strides = [1, 1]} : vector<16x128xf32> to vector<1x128xf32>
    %345 = tpu.concatenate %343, %344 in 0 : vector<15x128xf32>, vector<1x128xf32> -> vector<16x128xf32>
    %cst_113 = arith.constant 0.000000e+00 : f32
    %346 = vector.shape_cast %274 : vector<16x1xi1> to vector<16x1xi1>
    %347 = vector.broadcast %346 : vector<16x1xi1> to vector<16x128xi1>
    %348 = vector.broadcast %cst_113 : f32 to vector<16x128xf32>
    %349 = arith.select %347, %345, %348 : vector<16x128xi1>, vector<16x128xf32>
    %350 = arith.addf %342, %349 : vector<16x128xf32>
    %cst_114 = arith.constant dense<0.000000e+00> : vector<128xf32>
    %351 = vector.multi_reduction <add>, %350, %cst_114 [0] : vector<16x128xf32> to vector<128xf32>
    %352 = vector.shape_cast %351 : vector<128xf32> to vector<1x128xf32>
    %353 = arith.mulf %350, %350 : vector<16x128xf32>
    %cst_115 = arith.constant dense<0.000000e+00> : vector<128xf32>
    %354 = vector.multi_reduction <add>, %353, %cst_115 [0] : vector<16x128xf32> to vector<128xf32>
    %355 = vector.shape_cast %354 : vector<128xf32> to vector<1x128xf32>
    %356 = tpu.concatenate %352, %355 in 0 : vector<1x128xf32>, vector<1x128xf32> -> vector<2x128xf32>
    %cst_116 = arith.constant dense<0.000000e+00> : vector<2x16xf32>
    %357 = tpu.matmul %356, %329, %cst_116 {dimension_numbers = #tpu.dot_dimension_numbers<[1], [0], [0], [1], [0, 0, 1, 1], [], []>} : vector<2x128xf32>, vector<128x16xf32>, vector<2x16xf32> -> vector<2x16xf32>
    %358 = vector.extract_strided_slice %357 {offsets = [0, 0], sizes = [1, 16], strides = [1, 1]} : vector<2x16xf32> to vector<1x16xf32>
    %cst_117 = arith.constant 1.280000e+02 : f32
    %359 = vector.broadcast %cst_117 : f32 to vector<1x16xf32>
    %360 = arith.divf %358, %359 : vector<1x16xf32>
    %361 = vector.extract_strided_slice %357 {offsets = [1, 0], sizes = [1, 16], strides = [1, 1]} : vector<2x16xf32> to vector<1x16xf32>
    %cst_118 = arith.constant 1.280000e+02 : f32
    %362 = vector.broadcast %cst_118 : f32 to vector<1x16xf32>
    %363 = arith.divf %361, %362 : vector<1x16xf32>
    %364 = arith.mulf %360, %360 : vector<1x16xf32>
    %365 = arith.subf %363, %364 : vector<1x16xf32>
    %cst_119 = arith.constant 0.000000e+00 : f32
    %366 = vector.broadcast %cst_119 : f32 to vector<1x16xf32>
    %367 = arith.maximumf %365, %366 : vector<1x16xf32>
    %cst_120 = arith.constant 9.99999974E-6 : f32
    %368 = vector.broadcast %cst_120 : f32 to vector<1x16xf32>
    %369 = arith.addf %367, %368 : vector<1x16xf32>
    %370 = math.rsqrt %369 : vector<1x16xf32>
    %371 = arith.mulf %327, %370 : vector<1x16xf32>
    %372 = arith.mulf %360, %371 : vector<1x16xf32>
    %373 = arith.subf %328, %372 : vector<1x16xf32>
    %374 = tpu.concatenate %371, %371 in 1 : vector<1x16xf32>, vector<1x16xf32> -> vector<1x32xf32>
    %375 = tpu.concatenate %374, %374 in 1 : vector<1x32xf32>, vector<1x32xf32> -> vector<1x64xf32>
    %376 = tpu.concatenate %375, %375 in 1 : vector<1x64xf32>, vector<1x64xf32> -> vector<1x128xf32>
    %377 = tpu.concatenate %373, %373 in 1 : vector<1x16xf32>, vector<1x16xf32> -> vector<1x32xf32>
    %378 = tpu.concatenate %377, %377 in 1 : vector<1x32xf32>, vector<1x32xf32> -> vector<1x64xf32>
    %379 = tpu.concatenate %378, %378 in 1 : vector<1x64xf32>, vector<1x64xf32> -> vector<1x128xf32>
    %380 = vector.broadcast %376 : vector<1x128xf32> to vector<16x128xf32>
    %381 = arith.mulf %350, %380 : vector<16x128xf32>
    %382 = vector.broadcast %379 : vector<1x128xf32> to vector<16x128xf32>
    %383 = arith.addf %381, %382 : vector<16x128xf32>
    %cst_121 = arith.constant 0.000000e+00 : f32
    %384 = vector.broadcast %cst_121 : f32 to vector<16x128xf32>
    %385 = arith.maximumf %383, %384 : vector<16x128xf32>
    %c0_122 = arith.constant 0 : index
    %c0_123 = arith.constant 0 : index
    %386 = vector.load %arg22[%c0_122, %c0_123] : memref<128x64xbf16, #tpu.memory_space<vmem>>, vector<128x64xbf16>
    %c0_124 = arith.constant 0 : index
    %c0_125 = arith.constant 0 : index
    %387 = vector.load %arg23[%c0_124, %c0_125] : memref<8x16xbf16, #tpu.memory_space<vmem>>, vector<8x16xbf16>
    %388 = vector.extract_strided_slice %385 {offsets = [0, 16], sizes = [16, 112], strides = [1, 1]} : vector<16x128xf32> to vector<16x112xf32>
    %389 = vector.extract_strided_slice %385 {offsets = [0, 0], sizes = [16, 16], strides = [1, 1]} : vector<16x128xf32> to vector<16x16xf32>
    %390 = tpu.concatenate %388, %389 in 1 : vector<16x112xf32>, vector<16x16xf32> -> vector<16x128xf32>
    %391 = arith.maximumf %385, %390 : vector<16x128xf32>
    %392 = arith.truncf %391 : vector<16x128xf32> to vector<16x128xbf16>
    %cst_126 = arith.constant dense<0.000000e+00> : vector<16x64xf32>
    %393 = tpu.matmul %392, %386, %cst_126 {dimension_numbers = #tpu.dot_dimension_numbers<[1], [0], [0], [1], [0, 0, 1, 1], [], []>} : vector<16x128xbf16>, vector<128x64xbf16>, vector<16x64xf32> -> vector<16x64xf32>
    %394 = vector.extract_strided_slice %393 {offsets = [1, 0], sizes = [15, 64], strides = [1, 1]} : vector<16x64xf32> to vector<15x64xf32>
    %395 = vector.extract_strided_slice %393 {offsets = [0, 0], sizes = [1, 64], strides = [1, 1]} : vector<16x64xf32> to vector<1x64xf32>
    %396 = tpu.concatenate %394, %395 in 0 : vector<15x64xf32>, vector<1x64xf32> -> vector<16x64xf32>
    %397 = arith.maximumf %393, %396 : vector<16x64xf32>
    %398 = arith.truncf %397 : vector<16x64xf32> to vector<16x64xbf16>
    %cst_127 = arith.constant dense<0.000000e+00> : vector<8x64xf32>
    %399 = tpu.matmul %387, %398, %cst_127 {dimension_numbers = #tpu.dot_dimension_numbers<[1], [0], [0], [1], [0, 0, 1, 1], [], []>} : vector<8x16xbf16>, vector<16x64xbf16>, vector<8x64xf32> -> vector<8x64xf32>
    %c0_128 = arith.constant 0 : index
    %c0_129 = arith.constant 0 : index
    %400 = vector.load %arg24[%c0_128, %c0_129] : memref<64x384xbf16, #tpu.memory_space<vmem>>, vector<64x384xbf16>
    %c0_130 = arith.constant 0 : index
    %c0_131 = arith.constant 0 : index
    %401 = vector.load %arg25[%c0_130, %c0_131] : memref<1x32xf32, #tpu.memory_space<vmem>>, vector<1x32xf32>
    %c0_132 = arith.constant 0 : index
    %c0_133 = arith.constant 0 : index
    %402 = vector.load %arg26[%c0_132, %c0_133] : memref<1x32xf32, #tpu.memory_space<vmem>>, vector<1x32xf32>
    %c0_134 = arith.constant 0 : index
    %c0_135 = arith.constant 0 : index
    %403 = vector.load %arg27[%c0_134, %c0_135] : memref<128x32xf32, #tpu.memory_space<vmem>>, vector<128x32xf32>
    %404 = arith.truncf %399 : vector<8x64xf32> to vector<8x64xbf16>
    %cst_136 = arith.constant dense<0.000000e+00> : vector<8x384xf32>
    %405 = tpu.matmul %404, %400, %cst_136 {dimension_numbers = #tpu.dot_dimension_numbers<[1], [0], [0], [1], [0, 0, 1, 1], [], []>} : vector<8x64xbf16>, vector<64x384xbf16>, vector<8x384xf32> -> vector<8x384xf32>
    %406 = vector.extract_strided_slice %405 {offsets = [0, 0], sizes = [8, 128], strides = [1, 1]} : vector<8x384xf32> to vector<8x128xf32>
    %407 = vector.extract_strided_slice %405 {offsets = [0, 128], sizes = [8, 128], strides = [1, 1]} : vector<8x384xf32> to vector<8x128xf32>
    %408 = vector.extract_strided_slice %405 {offsets = [0, 256], sizes = [8, 128], strides = [1, 1]} : vector<8x384xf32> to vector<8x128xf32>
    %409 = tpu.iota {dimensions = array<i32: 0>} : vector<8x1xi32>
    %c4_i32 = arith.constant 4 : i32
    %c0_i32_137 = arith.constant 0 : i32
    %410 = arith.cmpi eq, %c4_i32, %c0_i32_137 : i32
    %c1_i32_138 = arith.constant 1 : i32
    %411 = arith.select %410, %c1_i32_138, %c4_i32 : i32
    %412 = vector.broadcast %411 : i32 to vector<8x1xi32>
    %413 = arith.remsi %409, %412 : vector<8x1xi32>
    %c0_i32_139 = arith.constant 0 : i32
    %414 = vector.broadcast %c0_i32_139 : i32 to vector<8x1xi32>
    %415 = arith.cmpi ne, %413, %414 : vector<8x1xi32>
    %c0_i32_140 = arith.constant 0 : i32
    %416 = vector.broadcast %c0_i32_140 : i32 to vector<8x1xi32>
    %417 = arith.cmpi slt, %413, %416 : vector<8x1xi32>
    %c0_i32_141 = arith.constant 0 : i32
    %418 = arith.cmpi slt, %411, %c0_i32_141 : i32
    %419 = vector.broadcast %418 : i1 to vector<8x1xi1>
    %420 = vector.broadcast %419 : vector<8x1xi1> to vector<8x1xi1>
    %421 = arith.xori %417, %420 : vector<8x1xi1>
    %422 = arith.andi %421, %415 : vector<8x1xi1>
    %423 = vector.broadcast %411 : i32 to vector<8x1xi32>
    %424 = arith.addi %413, %423 : vector<8x1xi32>
    %425 = arith.select %422, %424, %413 : vector<8x1xi1>, vector<8x1xi32>
    %c0_i32_142 = arith.constant 0 : i32
    %426 = vector.broadcast %c0_i32_142 : i32 to vector<8x1xi32>
    %427 = arith.cmpi ne, %425, %426 : vector<8x1xi32>
    %c4_i32_143 = arith.constant 4 : i32
    %c0_i32_144 = arith.constant 0 : i32
    %428 = arith.cmpi eq, %c4_i32_143, %c0_i32_144 : i32
    %c1_i32_145 = arith.constant 1 : i32
    %429 = arith.select %428, %c1_i32_145, %c4_i32_143 : i32
    %430 = vector.broadcast %429 : i32 to vector<8x1xi32>
    %431 = arith.remsi %409, %430 : vector<8x1xi32>
    %c0_i32_146 = arith.constant 0 : i32
    %432 = vector.broadcast %c0_i32_146 : i32 to vector<8x1xi32>
    %433 = arith.cmpi ne, %431, %432 : vector<8x1xi32>
    %c0_i32_147 = arith.constant 0 : i32
    %434 = vector.broadcast %c0_i32_147 : i32 to vector<8x1xi32>
    %435 = arith.cmpi slt, %431, %434 : vector<8x1xi32>
    %c0_i32_148 = arith.constant 0 : i32
    %436 = arith.cmpi slt, %429, %c0_i32_148 : i32
    %437 = vector.broadcast %436 : i1 to vector<8x1xi1>
    %438 = vector.broadcast %437 : vector<8x1xi1> to vector<8x1xi1>
    %439 = arith.xori %435, %438 : vector<8x1xi1>
    %440 = arith.andi %439, %433 : vector<8x1xi1>
    %441 = vector.broadcast %429 : i32 to vector<8x1xi32>
    %442 = arith.addi %431, %441 : vector<8x1xi32>
    %443 = arith.select %440, %442, %431 : vector<8x1xi1>, vector<8x1xi32>
    %c3_i32 = arith.constant 3 : i32
    %444 = vector.broadcast %c3_i32 : i32 to vector<8x1xi32>
    %445 = arith.cmpi ne, %443, %444 : vector<8x1xi32>
    %446 = vector.extract_strided_slice %406 {offsets = [7, 0], sizes = [1, 128], strides = [1, 1]} : vector<8x128xf32> to vector<1x128xf32>
    %447 = vector.extract_strided_slice %406 {offsets = [0, 0], sizes = [7, 128], strides = [1, 1]} : vector<8x128xf32> to vector<7x128xf32>
    %448 = tpu.concatenate %446, %447 in 0 : vector<1x128xf32>, vector<7x128xf32> -> vector<8x128xf32>
    %cst_149 = arith.constant 0.000000e+00 : f32
    %449 = vector.shape_cast %427 : vector<8x1xi1> to vector<8x1xi1>
    %450 = vector.broadcast %449 : vector<8x1xi1> to vector<8x128xi1>
    %451 = vector.broadcast %cst_149 : f32 to vector<8x128xf32>
    %452 = arith.select %450, %448, %451 : vector<8x128xi1>, vector<8x128xf32>
    %453 = arith.addf %407, %452 : vector<8x128xf32>
    %454 = vector.extract_strided_slice %408 {offsets = [1, 0], sizes = [7, 128], strides = [1, 1]} : vector<8x128xf32> to vector<7x128xf32>
    %455 = vector.extract_strided_slice %408 {offsets = [0, 0], sizes = [1, 128], strides = [1, 1]} : vector<8x128xf32> to vector<1x128xf32>
    %456 = tpu.concatenate %454, %455 in 0 : vector<7x128xf32>, vector<1x128xf32> -> vector<8x128xf32>
    %cst_150 = arith.constant 0.000000e+00 : f32
    %457 = vector.shape_cast %445 : vector<8x1xi1> to vector<8x1xi1>
    %458 = vector.broadcast %457 : vector<8x1xi1> to vector<8x128xi1>
    %459 = vector.broadcast %cst_150 : f32 to vector<8x128xf32>
    %460 = arith.select %458, %456, %459 : vector<8x128xi1>, vector<8x128xf32>
    %461 = arith.addf %453, %460 : vector<8x128xf32>
    %cst_151 = arith.constant dense<0.000000e+00> : vector<128xf32>
    %462 = vector.multi_reduction <add>, %461, %cst_151 [0] : vector<8x128xf32> to vector<128xf32>
    %463 = vector.shape_cast %462 : vector<128xf32> to vector<1x128xf32>
    %464 = arith.mulf %461, %461 : vector<8x128xf32>
    %cst_152 = arith.constant dense<0.000000e+00> : vector<128xf32>
    %465 = vector.multi_reduction <add>, %464, %cst_152 [0] : vector<8x128xf32> to vector<128xf32>
    %466 = vector.shape_cast %465 : vector<128xf32> to vector<1x128xf32>
    %467 = tpu.concatenate %463, %466 in 0 : vector<1x128xf32>, vector<1x128xf32> -> vector<2x128xf32>
    %cst_153 = arith.constant dense<0.000000e+00> : vector<2x32xf32>
    %468 = tpu.matmul %467, %403, %cst_153 {dimension_numbers = #tpu.dot_dimension_numbers<[1], [0], [0], [1], [0, 0, 1, 1], [], []>} : vector<2x128xf32>, vector<128x32xf32>, vector<2x32xf32> -> vector<2x32xf32>
    %469 = vector.extract_strided_slice %468 {offsets = [0, 0], sizes = [1, 32], strides = [1, 1]} : vector<2x32xf32> to vector<1x32xf32>
    %cst_154 = arith.constant 3.200000e+01 : f32
    %470 = vector.broadcast %cst_154 : f32 to vector<1x32xf32>
    %471 = arith.divf %469, %470 : vector<1x32xf32>
    %472 = vector.extract_strided_slice %468 {offsets = [1, 0], sizes = [1, 32], strides = [1, 1]} : vector<2x32xf32> to vector<1x32xf32>
    %cst_155 = arith.constant 3.200000e+01 : f32
    %473 = vector.broadcast %cst_155 : f32 to vector<1x32xf32>
    %474 = arith.divf %472, %473 : vector<1x32xf32>
    %475 = arith.mulf %471, %471 : vector<1x32xf32>
    %476 = arith.subf %474, %475 : vector<1x32xf32>
    %cst_156 = arith.constant 0.000000e+00 : f32
    %477 = vector.broadcast %cst_156 : f32 to vector<1x32xf32>
    %478 = arith.maximumf %476, %477 : vector<1x32xf32>
    %cst_157 = arith.constant 9.99999974E-6 : f32
    %479 = vector.broadcast %cst_157 : f32 to vector<1x32xf32>
    %480 = arith.addf %478, %479 : vector<1x32xf32>
    %481 = math.rsqrt %480 : vector<1x32xf32>
    %482 = arith.mulf %401, %481 : vector<1x32xf32>
    %483 = arith.mulf %471, %482 : vector<1x32xf32>
    %484 = arith.subf %402, %483 : vector<1x32xf32>
    %485 = tpu.concatenate %482, %482 in 1 : vector<1x32xf32>, vector<1x32xf32> -> vector<1x64xf32>
    %486 = tpu.concatenate %485, %485 in 1 : vector<1x64xf32>, vector<1x64xf32> -> vector<1x128xf32>
    %487 = tpu.concatenate %484, %484 in 1 : vector<1x32xf32>, vector<1x32xf32> -> vector<1x64xf32>
    %488 = tpu.concatenate %487, %487 in 1 : vector<1x64xf32>, vector<1x64xf32> -> vector<1x128xf32>
    %489 = vector.broadcast %486 : vector<1x128xf32> to vector<8x128xf32>
    %490 = arith.mulf %461, %489 : vector<8x128xf32>
    %491 = vector.broadcast %488 : vector<1x128xf32> to vector<8x128xf32>
    %492 = arith.addf %490, %491 : vector<8x128xf32>
    %cst_158 = arith.constant 0.000000e+00 : f32
    %493 = vector.broadcast %cst_158 : f32 to vector<8x128xf32>
    %494 = arith.maximumf %492, %493 : vector<8x128xf32>
    %c0_159 = arith.constant 0 : index
    %c0_160 = arith.constant 0 : index
    %495 = vector.load %arg28[%c0_159, %c0_160] : memref<128x384xbf16, #tpu.memory_space<vmem>>, vector<128x384xbf16>
    %c0_161 = arith.constant 0 : index
    %c0_162 = arith.constant 0 : index
    %496 = vector.load %arg29[%c0_161, %c0_162] : memref<1x32xf32, #tpu.memory_space<vmem>>, vector<1x32xf32>
    %c0_163 = arith.constant 0 : index
    %c0_164 = arith.constant 0 : index
    %497 = vector.load %arg30[%c0_163, %c0_164] : memref<1x32xf32, #tpu.memory_space<vmem>>, vector<1x32xf32>
    %c0_165 = arith.constant 0 : index
    %c0_166 = arith.constant 0 : index
    %498 = vector.load %arg31[%c0_165, %c0_166] : memref<128x32xf32, #tpu.memory_space<vmem>>, vector<128x32xf32>
    %499 = arith.truncf %494 : vector<8x128xf32> to vector<8x128xbf16>
    %cst_167 = arith.constant dense<0.000000e+00> : vector<8x384xf32>
    %500 = tpu.matmul %499, %495, %cst_167 {dimension_numbers = #tpu.dot_dimension_numbers<[1], [0], [0], [1], [0, 0, 1, 1], [], []>} : vector<8x128xbf16>, vector<128x384xbf16>, vector<8x384xf32> -> vector<8x384xf32>
    %501 = vector.extract_strided_slice %500 {offsets = [0, 0], sizes = [8, 128], strides = [1, 1]} : vector<8x384xf32> to vector<8x128xf32>
    %502 = vector.extract_strided_slice %500 {offsets = [0, 128], sizes = [8, 128], strides = [1, 1]} : vector<8x384xf32> to vector<8x128xf32>
    %503 = vector.extract_strided_slice %500 {offsets = [0, 256], sizes = [8, 128], strides = [1, 1]} : vector<8x384xf32> to vector<8x128xf32>
    %504 = vector.extract_strided_slice %501 {offsets = [7, 0], sizes = [1, 128], strides = [1, 1]} : vector<8x128xf32> to vector<1x128xf32>
    %505 = vector.extract_strided_slice %501 {offsets = [0, 0], sizes = [7, 128], strides = [1, 1]} : vector<8x128xf32> to vector<7x128xf32>
    %506 = tpu.concatenate %504, %505 in 0 : vector<1x128xf32>, vector<7x128xf32> -> vector<8x128xf32>
    %cst_168 = arith.constant 0.000000e+00 : f32
    %507 = vector.shape_cast %427 : vector<8x1xi1> to vector<8x1xi1>
    %508 = vector.broadcast %507 : vector<8x1xi1> to vector<8x128xi1>
    %509 = vector.broadcast %cst_168 : f32 to vector<8x128xf32>
    %510 = arith.select %508, %506, %509 : vector<8x128xi1>, vector<8x128xf32>
    %511 = arith.addf %502, %510 : vector<8x128xf32>
    %512 = vector.extract_strided_slice %503 {offsets = [1, 0], sizes = [7, 128], strides = [1, 1]} : vector<8x128xf32> to vector<7x128xf32>
    %513 = vector.extract_strided_slice %503 {offsets = [0, 0], sizes = [1, 128], strides = [1, 1]} : vector<8x128xf32> to vector<1x128xf32>
    %514 = tpu.concatenate %512, %513 in 0 : vector<7x128xf32>, vector<1x128xf32> -> vector<8x128xf32>
    %cst_169 = arith.constant 0.000000e+00 : f32
    %515 = vector.shape_cast %445 : vector<8x1xi1> to vector<8x1xi1>
    %516 = vector.broadcast %515 : vector<8x1xi1> to vector<8x128xi1>
    %517 = vector.broadcast %cst_169 : f32 to vector<8x128xf32>
    %518 = arith.select %516, %514, %517 : vector<8x128xi1>, vector<8x128xf32>
    %519 = arith.addf %511, %518 : vector<8x128xf32>
    %cst_170 = arith.constant dense<0.000000e+00> : vector<128xf32>
    %520 = vector.multi_reduction <add>, %519, %cst_170 [0] : vector<8x128xf32> to vector<128xf32>
    %521 = vector.shape_cast %520 : vector<128xf32> to vector<1x128xf32>
    %522 = arith.mulf %519, %519 : vector<8x128xf32>
    %cst_171 = arith.constant dense<0.000000e+00> : vector<128xf32>
    %523 = vector.multi_reduction <add>, %522, %cst_171 [0] : vector<8x128xf32> to vector<128xf32>
    %524 = vector.shape_cast %523 : vector<128xf32> to vector<1x128xf32>
    %525 = tpu.concatenate %521, %524 in 0 : vector<1x128xf32>, vector<1x128xf32> -> vector<2x128xf32>
    %cst_172 = arith.constant dense<0.000000e+00> : vector<2x32xf32>
    %526 = tpu.matmul %525, %498, %cst_172 {dimension_numbers = #tpu.dot_dimension_numbers<[1], [0], [0], [1], [0, 0, 1, 1], [], []>} : vector<2x128xf32>, vector<128x32xf32>, vector<2x32xf32> -> vector<2x32xf32>
    %527 = vector.extract_strided_slice %526 {offsets = [0, 0], sizes = [1, 32], strides = [1, 1]} : vector<2x32xf32> to vector<1x32xf32>
    %cst_173 = arith.constant 3.200000e+01 : f32
    %528 = vector.broadcast %cst_173 : f32 to vector<1x32xf32>
    %529 = arith.divf %527, %528 : vector<1x32xf32>
    %530 = vector.extract_strided_slice %526 {offsets = [1, 0], sizes = [1, 32], strides = [1, 1]} : vector<2x32xf32> to vector<1x32xf32>
    %cst_174 = arith.constant 3.200000e+01 : f32
    %531 = vector.broadcast %cst_174 : f32 to vector<1x32xf32>
    %532 = arith.divf %530, %531 : vector<1x32xf32>
    %533 = arith.mulf %529, %529 : vector<1x32xf32>
    %534 = arith.subf %532, %533 : vector<1x32xf32>
    %cst_175 = arith.constant 0.000000e+00 : f32
    %535 = vector.broadcast %cst_175 : f32 to vector<1x32xf32>
    %536 = arith.maximumf %534, %535 : vector<1x32xf32>
    %cst_176 = arith.constant 9.99999974E-6 : f32
    %537 = vector.broadcast %cst_176 : f32 to vector<1x32xf32>
    %538 = arith.addf %536, %537 : vector<1x32xf32>
    %539 = math.rsqrt %538 : vector<1x32xf32>
    %540 = arith.mulf %496, %539 : vector<1x32xf32>
    %541 = arith.mulf %529, %540 : vector<1x32xf32>
    %542 = arith.subf %497, %541 : vector<1x32xf32>
    %543 = tpu.concatenate %540, %540 in 1 : vector<1x32xf32>, vector<1x32xf32> -> vector<1x64xf32>
    %544 = tpu.concatenate %543, %543 in 1 : vector<1x64xf32>, vector<1x64xf32> -> vector<1x128xf32>
    %545 = tpu.concatenate %542, %542 in 1 : vector<1x32xf32>, vector<1x32xf32> -> vector<1x64xf32>
    %546 = tpu.concatenate %545, %545 in 1 : vector<1x64xf32>, vector<1x64xf32> -> vector<1x128xf32>
    %547 = vector.broadcast %544 : vector<1x128xf32> to vector<8x128xf32>
    %548 = arith.mulf %519, %547 : vector<8x128xf32>
    %549 = vector.broadcast %546 : vector<1x128xf32> to vector<8x128xf32>
    %550 = arith.addf %548, %549 : vector<8x128xf32>
    %cst_177 = arith.constant 0.000000e+00 : f32
    %551 = vector.broadcast %cst_177 : f32 to vector<8x128xf32>
    %552 = arith.maximumf %550, %551 : vector<8x128xf32>
    %c0_178 = arith.constant 0 : index
    %c0_179 = arith.constant 0 : index
    %553 = vector.load %arg32[%c0_178, %c0_179] : memref<128x64xbf16, #tpu.memory_space<vmem>>, vector<128x64xbf16>
    %c0_180 = arith.constant 0 : index
    %c0_181 = arith.constant 0 : index
    %554 = vector.load %arg33[%c0_180, %c0_181] : memref<4x8xbf16, #tpu.memory_space<vmem>>, vector<4x8xbf16>
    %555 = vector.extract_strided_slice %552 {offsets = [0, 32], sizes = [8, 96], strides = [1, 1]} : vector<8x128xf32> to vector<8x96xf32>
    %556 = vector.extract_strided_slice %552 {offsets = [0, 0], sizes = [8, 32], strides = [1, 1]} : vector<8x128xf32> to vector<8x32xf32>
    %557 = tpu.concatenate %555, %556 in 1 : vector<8x96xf32>, vector<8x32xf32> -> vector<8x128xf32>
    %558 = arith.maximumf %552, %557 : vector<8x128xf32>
    %559 = arith.truncf %558 : vector<8x128xf32> to vector<8x128xbf16>
    %cst_182 = arith.constant dense<0.000000e+00> : vector<8x64xf32>
    %560 = tpu.matmul %559, %553, %cst_182 {dimension_numbers = #tpu.dot_dimension_numbers<[1], [0], [0], [1], [0, 0, 1, 1], [], []>} : vector<8x128xbf16>, vector<128x64xbf16>, vector<8x64xf32> -> vector<8x64xf32>
    %561 = vector.extract_strided_slice %560 {offsets = [1, 0], sizes = [7, 64], strides = [1, 1]} : vector<8x64xf32> to vector<7x64xf32>
    %562 = vector.extract_strided_slice %560 {offsets = [0, 0], sizes = [1, 64], strides = [1, 1]} : vector<8x64xf32> to vector<1x64xf32>
    %563 = tpu.concatenate %561, %562 in 0 : vector<7x64xf32>, vector<1x64xf32> -> vector<8x64xf32>
    %564 = arith.maximumf %560, %563 : vector<8x64xf32>
    %565 = arith.truncf %564 : vector<8x64xf32> to vector<8x64xbf16>
    %cst_183 = arith.constant dense<0.000000e+00> : vector<4x64xf32>
    %566 = tpu.matmul %554, %565, %cst_183 {dimension_numbers = #tpu.dot_dimension_numbers<[1], [0], [0], [1], [0, 0, 1, 1], [], []>} : vector<4x8xbf16>, vector<8x64xbf16>, vector<4x64xf32> -> vector<4x64xf32>
    %c0_184 = arith.constant 0 : index
    %c0_185 = arith.constant 0 : index
    %567 = vector.load %arg34[%c0_184, %c0_185] : memref<64x192xbf16, #tpu.memory_space<vmem>>, vector<64x192xbf16>
    %c0_186 = arith.constant 0 : index
    %c0_187 = arith.constant 0 : index
    %568 = vector.load %arg35[%c0_186, %c0_187] : memref<1x32xf32, #tpu.memory_space<vmem>>, vector<1x32xf32>
    %c0_188 = arith.constant 0 : index
    %c0_189 = arith.constant 0 : index
    %569 = vector.load %arg36[%c0_188, %c0_189] : memref<1x32xf32, #tpu.memory_space<vmem>>, vector<1x32xf32>
    %c0_190 = arith.constant 0 : index
    %c0_191 = arith.constant 0 : index
    %570 = vector.load %arg37[%c0_190, %c0_191] : memref<64x32xf32, #tpu.memory_space<vmem>>, vector<64x32xf32>
    %571 = arith.truncf %566 : vector<4x64xf32> to vector<4x64xbf16>
    %cst_192 = arith.constant dense<0.000000e+00> : vector<4x192xf32>
    %572 = tpu.matmul %571, %567, %cst_192 {dimension_numbers = #tpu.dot_dimension_numbers<[1], [0], [0], [1], [0, 0, 1, 1], [], []>} : vector<4x64xbf16>, vector<64x192xbf16>, vector<4x192xf32> -> vector<4x192xf32>
    %573 = vector.extract_strided_slice %572 {offsets = [0, 0], sizes = [4, 64], strides = [1, 1]} : vector<4x192xf32> to vector<4x64xf32>
    %574 = vector.extract_strided_slice %572 {offsets = [0, 64], sizes = [4, 64], strides = [1, 1]} : vector<4x192xf32> to vector<4x64xf32>
    %575 = vector.extract_strided_slice %572 {offsets = [0, 128], sizes = [4, 64], strides = [1, 1]} : vector<4x192xf32> to vector<4x64xf32>
    %576 = tpu.iota {dimensions = array<i32: 0>} : vector<4x1xi32>
    %c2_i32 = arith.constant 2 : i32
    %c0_i32_193 = arith.constant 0 : i32
    %577 = arith.cmpi eq, %c2_i32, %c0_i32_193 : i32
    %c1_i32_194 = arith.constant 1 : i32
    %578 = arith.select %577, %c1_i32_194, %c2_i32 : i32
    %579 = vector.broadcast %578 : i32 to vector<4x1xi32>
    %580 = arith.remsi %576, %579 : vector<4x1xi32>
    %c0_i32_195 = arith.constant 0 : i32
    %581 = vector.broadcast %c0_i32_195 : i32 to vector<4x1xi32>
    %582 = arith.cmpi ne, %580, %581 : vector<4x1xi32>
    %c0_i32_196 = arith.constant 0 : i32
    %583 = vector.broadcast %c0_i32_196 : i32 to vector<4x1xi32>
    %584 = arith.cmpi slt, %580, %583 : vector<4x1xi32>
    %c0_i32_197 = arith.constant 0 : i32
    %585 = arith.cmpi slt, %578, %c0_i32_197 : i32
    %586 = vector.broadcast %585 : i1 to vector<4x1xi1>
    %587 = vector.broadcast %586 : vector<4x1xi1> to vector<4x1xi1>
    %588 = arith.xori %584, %587 : vector<4x1xi1>
    %589 = arith.andi %588, %582 : vector<4x1xi1>
    %590 = vector.broadcast %578 : i32 to vector<4x1xi32>
    %591 = arith.addi %580, %590 : vector<4x1xi32>
    %592 = arith.select %589, %591, %580 : vector<4x1xi1>, vector<4x1xi32>
    %c0_i32_198 = arith.constant 0 : i32
    %593 = vector.broadcast %c0_i32_198 : i32 to vector<4x1xi32>
    %594 = arith.cmpi ne, %592, %593 : vector<4x1xi32>
    %c2_i32_199 = arith.constant 2 : i32
    %c0_i32_200 = arith.constant 0 : i32
    %595 = arith.cmpi eq, %c2_i32_199, %c0_i32_200 : i32
    %c1_i32_201 = arith.constant 1 : i32
    %596 = arith.select %595, %c1_i32_201, %c2_i32_199 : i32
    %597 = vector.broadcast %596 : i32 to vector<4x1xi32>
    %598 = arith.remsi %576, %597 : vector<4x1xi32>
    %c0_i32_202 = arith.constant 0 : i32
    %599 = vector.broadcast %c0_i32_202 : i32 to vector<4x1xi32>
    %600 = arith.cmpi ne, %598, %599 : vector<4x1xi32>
    %c0_i32_203 = arith.constant 0 : i32
    %601 = vector.broadcast %c0_i32_203 : i32 to vector<4x1xi32>
    %602 = arith.cmpi slt, %598, %601 : vector<4x1xi32>
    %c0_i32_204 = arith.constant 0 : i32
    %603 = arith.cmpi slt, %596, %c0_i32_204 : i32
    %604 = vector.broadcast %603 : i1 to vector<4x1xi1>
    %605 = vector.broadcast %604 : vector<4x1xi1> to vector<4x1xi1>
    %606 = arith.xori %602, %605 : vector<4x1xi1>
    %607 = arith.andi %606, %600 : vector<4x1xi1>
    %608 = vector.broadcast %596 : i32 to vector<4x1xi32>
    %609 = arith.addi %598, %608 : vector<4x1xi32>
    %610 = arith.select %607, %609, %598 : vector<4x1xi1>, vector<4x1xi32>
    %c1_i32_205 = arith.constant 1 : i32
    %611 = vector.broadcast %c1_i32_205 : i32 to vector<4x1xi32>
    %612 = arith.cmpi ne, %610, %611 : vector<4x1xi32>
    %613 = vector.extract_strided_slice %573 {offsets = [3, 0], sizes = [1, 64], strides = [1, 1]} : vector<4x64xf32> to vector<1x64xf32>
    %614 = vector.extract_strided_slice %573 {offsets = [0, 0], sizes = [3, 64], strides = [1, 1]} : vector<4x64xf32> to vector<3x64xf32>
    %615 = tpu.concatenate %613, %614 in 0 : vector<1x64xf32>, vector<3x64xf32> -> vector<4x64xf32>
    %cst_206 = arith.constant 0.000000e+00 : f32
    %616 = vector.shape_cast %594 : vector<4x1xi1> to vector<4x1xi1>
    %617 = vector.broadcast %616 : vector<4x1xi1> to vector<4x64xi1>
    %618 = vector.broadcast %cst_206 : f32 to vector<4x64xf32>
    %619 = arith.select %617, %615, %618 : vector<4x64xi1>, vector<4x64xf32>
    %620 = arith.addf %574, %619 : vector<4x64xf32>
    %621 = vector.extract_strided_slice %575 {offsets = [1, 0], sizes = [3, 64], strides = [1, 1]} : vector<4x64xf32> to vector<3x64xf32>
    %622 = vector.extract_strided_slice %575 {offsets = [0, 0], sizes = [1, 64], strides = [1, 1]} : vector<4x64xf32> to vector<1x64xf32>
    %623 = tpu.concatenate %621, %622 in 0 : vector<3x64xf32>, vector<1x64xf32> -> vector<4x64xf32>
    %cst_207 = arith.constant 0.000000e+00 : f32
    %624 = vector.shape_cast %612 : vector<4x1xi1> to vector<4x1xi1>
    %625 = vector.broadcast %624 : vector<4x1xi1> to vector<4x64xi1>
    %626 = vector.broadcast %cst_207 : f32 to vector<4x64xf32>
    %627 = arith.select %625, %623, %626 : vector<4x64xi1>, vector<4x64xf32>
    %628 = arith.addf %620, %627 : vector<4x64xf32>
    %cst_208 = arith.constant dense<0.000000e+00> : vector<64xf32>
    %629 = vector.multi_reduction <add>, %628, %cst_208 [0] : vector<4x64xf32> to vector<64xf32>
    %630 = vector.shape_cast %629 : vector<64xf32> to vector<1x64xf32>
    %631 = arith.mulf %628, %628 : vector<4x64xf32>
    %cst_209 = arith.constant dense<0.000000e+00> : vector<64xf32>
    %632 = vector.multi_reduction <add>, %631, %cst_209 [0] : vector<4x64xf32> to vector<64xf32>
    %633 = vector.shape_cast %632 : vector<64xf32> to vector<1x64xf32>
    %634 = tpu.concatenate %630, %633 in 0 : vector<1x64xf32>, vector<1x64xf32> -> vector<2x64xf32>
    %cst_210 = arith.constant dense<0.000000e+00> : vector<2x32xf32>
    %635 = tpu.matmul %634, %570, %cst_210 {dimension_numbers = #tpu.dot_dimension_numbers<[1], [0], [0], [1], [0, 0, 1, 1], [], []>} : vector<2x64xf32>, vector<64x32xf32>, vector<2x32xf32> -> vector<2x32xf32>
    %636 = vector.extract_strided_slice %635 {offsets = [0, 0], sizes = [1, 32], strides = [1, 1]} : vector<2x32xf32> to vector<1x32xf32>
    %cst_211 = arith.constant 8.000000e+00 : f32
    %637 = vector.broadcast %cst_211 : f32 to vector<1x32xf32>
    %638 = arith.divf %636, %637 : vector<1x32xf32>
    %639 = vector.extract_strided_slice %635 {offsets = [1, 0], sizes = [1, 32], strides = [1, 1]} : vector<2x32xf32> to vector<1x32xf32>
    %cst_212 = arith.constant 8.000000e+00 : f32
    %640 = vector.broadcast %cst_212 : f32 to vector<1x32xf32>
    %641 = arith.divf %639, %640 : vector<1x32xf32>
    %642 = arith.mulf %638, %638 : vector<1x32xf32>
    %643 = arith.subf %641, %642 : vector<1x32xf32>
    %cst_213 = arith.constant 0.000000e+00 : f32
    %644 = vector.broadcast %cst_213 : f32 to vector<1x32xf32>
    %645 = arith.maximumf %643, %644 : vector<1x32xf32>
    %cst_214 = arith.constant 9.99999974E-6 : f32
    %646 = vector.broadcast %cst_214 : f32 to vector<1x32xf32>
    %647 = arith.addf %645, %646 : vector<1x32xf32>
    %648 = math.rsqrt %647 : vector<1x32xf32>
    %649 = arith.mulf %568, %648 : vector<1x32xf32>
    %650 = arith.mulf %638, %649 : vector<1x32xf32>
    %651 = arith.subf %569, %650 : vector<1x32xf32>
    %652 = tpu.concatenate %649, %649 in 1 : vector<1x32xf32>, vector<1x32xf32> -> vector<1x64xf32>
    %653 = tpu.concatenate %651, %651 in 1 : vector<1x32xf32>, vector<1x32xf32> -> vector<1x64xf32>
    %654 = vector.broadcast %652 : vector<1x64xf32> to vector<4x64xf32>
    %655 = arith.mulf %628, %654 : vector<4x64xf32>
    %656 = vector.broadcast %653 : vector<1x64xf32> to vector<4x64xf32>
    %657 = arith.addf %655, %656 : vector<4x64xf32>
    %cst_215 = arith.constant 0.000000e+00 : f32
    %658 = vector.broadcast %cst_215 : f32 to vector<4x64xf32>
    %659 = arith.maximumf %657, %658 : vector<4x64xf32>
    %c0_216 = arith.constant 0 : index
    %c0_217 = arith.constant 0 : index
    %660 = vector.load %arg38[%c0_216, %c0_217] : memref<64x192xbf16, #tpu.memory_space<vmem>>, vector<64x192xbf16>
    %c0_218 = arith.constant 0 : index
    %c0_219 = arith.constant 0 : index
    %661 = vector.load %arg39[%c0_218, %c0_219] : memref<1x32xf32, #tpu.memory_space<vmem>>, vector<1x32xf32>
    %c0_220 = arith.constant 0 : index
    %c0_221 = arith.constant 0 : index
    %662 = vector.load %arg40[%c0_220, %c0_221] : memref<1x32xf32, #tpu.memory_space<vmem>>, vector<1x32xf32>
    %c0_222 = arith.constant 0 : index
    %c0_223 = arith.constant 0 : index
    %663 = vector.load %arg41[%c0_222, %c0_223] : memref<64x32xf32, #tpu.memory_space<vmem>>, vector<64x32xf32>
    %664 = arith.truncf %659 : vector<4x64xf32> to vector<4x64xbf16>
    %cst_224 = arith.constant dense<0.000000e+00> : vector<4x192xf32>
    %665 = tpu.matmul %664, %660, %cst_224 {dimension_numbers = #tpu.dot_dimension_numbers<[1], [0], [0], [1], [0, 0, 1, 1], [], []>} : vector<4x64xbf16>, vector<64x192xbf16>, vector<4x192xf32> -> vector<4x192xf32>
    %666 = vector.extract_strided_slice %665 {offsets = [0, 0], sizes = [4, 64], strides = [1, 1]} : vector<4x192xf32> to vector<4x64xf32>
    %667 = vector.extract_strided_slice %665 {offsets = [0, 64], sizes = [4, 64], strides = [1, 1]} : vector<4x192xf32> to vector<4x64xf32>
    %668 = vector.extract_strided_slice %665 {offsets = [0, 128], sizes = [4, 64], strides = [1, 1]} : vector<4x192xf32> to vector<4x64xf32>
    %669 = vector.extract_strided_slice %666 {offsets = [3, 0], sizes = [1, 64], strides = [1, 1]} : vector<4x64xf32> to vector<1x64xf32>
    %670 = vector.extract_strided_slice %666 {offsets = [0, 0], sizes = [3, 64], strides = [1, 1]} : vector<4x64xf32> to vector<3x64xf32>
    %671 = tpu.concatenate %669, %670 in 0 : vector<1x64xf32>, vector<3x64xf32> -> vector<4x64xf32>
    %cst_225 = arith.constant 0.000000e+00 : f32
    %672 = vector.shape_cast %594 : vector<4x1xi1> to vector<4x1xi1>
    %673 = vector.broadcast %672 : vector<4x1xi1> to vector<4x64xi1>
    %674 = vector.broadcast %cst_225 : f32 to vector<4x64xf32>
    %675 = arith.select %673, %671, %674 : vector<4x64xi1>, vector<4x64xf32>
    %676 = arith.addf %667, %675 : vector<4x64xf32>
    %677 = vector.extract_strided_slice %668 {offsets = [1, 0], sizes = [3, 64], strides = [1, 1]} : vector<4x64xf32> to vector<3x64xf32>
    %678 = vector.extract_strided_slice %668 {offsets = [0, 0], sizes = [1, 64], strides = [1, 1]} : vector<4x64xf32> to vector<1x64xf32>
    %679 = tpu.concatenate %677, %678 in 0 : vector<3x64xf32>, vector<1x64xf32> -> vector<4x64xf32>
    %cst_226 = arith.constant 0.000000e+00 : f32
    %680 = vector.shape_cast %612 : vector<4x1xi1> to vector<4x1xi1>
    %681 = vector.broadcast %680 : vector<4x1xi1> to vector<4x64xi1>
    %682 = vector.broadcast %cst_226 : f32 to vector<4x64xf32>
    %683 = arith.select %681, %679, %682 : vector<4x64xi1>, vector<4x64xf32>
    %684 = arith.addf %676, %683 : vector<4x64xf32>
    %cst_227 = arith.constant dense<0.000000e+00> : vector<64xf32>
    %685 = vector.multi_reduction <add>, %684, %cst_227 [0] : vector<4x64xf32> to vector<64xf32>
    %686 = vector.shape_cast %685 : vector<64xf32> to vector<1x64xf32>
    %687 = arith.mulf %684, %684 : vector<4x64xf32>
    %cst_228 = arith.constant dense<0.000000e+00> : vector<64xf32>
    %688 = vector.multi_reduction <add>, %687, %cst_228 [0] : vector<4x64xf32> to vector<64xf32>
    %689 = vector.shape_cast %688 : vector<64xf32> to vector<1x64xf32>
    %690 = tpu.concatenate %686, %689 in 0 : vector<1x64xf32>, vector<1x64xf32> -> vector<2x64xf32>
    %cst_229 = arith.constant dense<0.000000e+00> : vector<2x32xf32>
    %691 = tpu.matmul %690, %663, %cst_229 {dimension_numbers = #tpu.dot_dimension_numbers<[1], [0], [0], [1], [0, 0, 1, 1], [], []>} : vector<2x64xf32>, vector<64x32xf32>, vector<2x32xf32> -> vector<2x32xf32>
    %692 = vector.extract_strided_slice %691 {offsets = [0, 0], sizes = [1, 32], strides = [1, 1]} : vector<2x32xf32> to vector<1x32xf32>
    %cst_230 = arith.constant 8.000000e+00 : f32
    %693 = vector.broadcast %cst_230 : f32 to vector<1x32xf32>
    %694 = arith.divf %692, %693 : vector<1x32xf32>
    %695 = vector.extract_strided_slice %691 {offsets = [1, 0], sizes = [1, 32], strides = [1, 1]} : vector<2x32xf32> to vector<1x32xf32>
    %cst_231 = arith.constant 8.000000e+00 : f32
    %696 = vector.broadcast %cst_231 : f32 to vector<1x32xf32>
    %697 = arith.divf %695, %696 : vector<1x32xf32>
    %698 = arith.mulf %694, %694 : vector<1x32xf32>
    %699 = arith.subf %697, %698 : vector<1x32xf32>
    %cst_232 = arith.constant 0.000000e+00 : f32
    %700 = vector.broadcast %cst_232 : f32 to vector<1x32xf32>
    %701 = arith.maximumf %699, %700 : vector<1x32xf32>
    %cst_233 = arith.constant 9.99999974E-6 : f32
    %702 = vector.broadcast %cst_233 : f32 to vector<1x32xf32>
    %703 = arith.addf %701, %702 : vector<1x32xf32>
    %704 = math.rsqrt %703 : vector<1x32xf32>
    %705 = arith.mulf %661, %704 : vector<1x32xf32>
    %706 = arith.mulf %694, %705 : vector<1x32xf32>
    %707 = arith.subf %662, %706 : vector<1x32xf32>
    %708 = tpu.concatenate %705, %705 in 1 : vector<1x32xf32>, vector<1x32xf32> -> vector<1x64xf32>
    %709 = tpu.concatenate %707, %707 in 1 : vector<1x32xf32>, vector<1x32xf32> -> vector<1x64xf32>
    %710 = vector.broadcast %708 : vector<1x64xf32> to vector<4x64xf32>
    %711 = arith.mulf %684, %710 : vector<4x64xf32>
    %712 = vector.broadcast %709 : vector<1x64xf32> to vector<4x64xf32>
    %713 = arith.addf %711, %712 : vector<4x64xf32>
    %cst_234 = arith.constant 0.000000e+00 : f32
    %714 = vector.broadcast %cst_234 : f32 to vector<4x64xf32>
    %715 = arith.maximumf %713, %714 : vector<4x64xf32>
    %c0_235 = arith.constant 0 : index
    %c0_236 = arith.constant 0 : index
    %716 = vector.load %arg42[%c0_235, %c0_236] : memref<64x32xbf16, #tpu.memory_space<vmem>>, vector<64x32xbf16>
    %c0_237 = arith.constant 0 : index
    %c0_238 = arith.constant 0 : index
    %717 = vector.load %arg43[%c0_237, %c0_238] : memref<2x4xbf16, #tpu.memory_space<vmem>>, vector<2x4xbf16>
    %718 = vector.extract_strided_slice %715 {offsets = [0, 32], sizes = [4, 32], strides = [1, 1]} : vector<4x64xf32> to vector<4x32xf32>
    %719 = vector.extract_strided_slice %715 {offsets = [0, 0], sizes = [4, 32], strides = [1, 1]} : vector<4x64xf32> to vector<4x32xf32>
    %720 = tpu.concatenate %718, %719 in 1 : vector<4x32xf32>, vector<4x32xf32> -> vector<4x64xf32>
    %721 = arith.maximumf %715, %720 : vector<4x64xf32>
    %722 = arith.truncf %721 : vector<4x64xf32> to vector<4x64xbf16>
    %cst_239 = arith.constant dense<0.000000e+00> : vector<4x32xf32>
    %723 = tpu.matmul %722, %716, %cst_239 {dimension_numbers = #tpu.dot_dimension_numbers<[1], [0], [0], [1], [0, 0, 1, 1], [], []>} : vector<4x64xbf16>, vector<64x32xbf16>, vector<4x32xf32> -> vector<4x32xf32>
    %724 = vector.extract_strided_slice %723 {offsets = [1, 0], sizes = [3, 32], strides = [1, 1]} : vector<4x32xf32> to vector<3x32xf32>
    %725 = vector.extract_strided_slice %723 {offsets = [0, 0], sizes = [1, 32], strides = [1, 1]} : vector<4x32xf32> to vector<1x32xf32>
    %726 = tpu.concatenate %724, %725 in 0 : vector<3x32xf32>, vector<1x32xf32> -> vector<4x32xf32>
    %727 = arith.maximumf %723, %726 : vector<4x32xf32>
    %728 = arith.truncf %727 : vector<4x32xf32> to vector<4x32xbf16>
    %cst_240 = arith.constant dense<0.000000e+00> : vector<2x32xf32>
    %729 = tpu.matmul %717, %728, %cst_240 {dimension_numbers = #tpu.dot_dimension_numbers<[1], [0], [0], [1], [0, 0, 1, 1], [], []>} : vector<2x4xbf16>, vector<4x32xbf16>, vector<2x32xf32> -> vector<2x32xf32>
    %c0_241 = arith.constant 0 : index
    %c0_242 = arith.constant 0 : index
    %730 = vector.load %arg44[%c0_241, %c0_242] : memref<32x128xf32, #tpu.memory_space<vmem>>, vector<32x128xf32>
    %c0_243 = arith.constant 0 : index
    %c0_244 = arith.constant 0 : index
    %731 = vector.load %arg45[%c0_243, %c0_244] : memref<1x128xf32, #tpu.memory_space<vmem>>, vector<1x128xf32>
    %cst_245 = arith.constant dense<0.000000e+00> : vector<2x128xf32>
    %732 = tpu.matmul %729, %730, %cst_245 {dimension_numbers = #tpu.dot_dimension_numbers<[1], [0], [0], [1], [0, 0, 1, 1], [], []>} : vector<2x32xf32>, vector<32x128xf32>, vector<2x128xf32> -> vector<2x128xf32>
    %733 = vector.broadcast %731 : vector<1x128xf32> to vector<2x128xf32>
    %734 = arith.addf %732, %733 : vector<2x128xf32>
    %c0_246 = arith.constant 0 : index
    %c0_247 = arith.constant 0 : index
    %735 = vector.load %arg46[%c0_246, %c0_247] : memref<2x128xf32, #tpu.memory_space<vmem>>, vector<2x128xf32>
    tpu.vector_store %arg46[%c0_246, %c0_247], %734 {strides = array<i32>} : memref<2x128xf32, #tpu.memory_space<vmem>>, vector<2x128xf32>,
    return
  }
  func.func @transform_0(%arg0: i32) -> (i32, i32) {
    %c0_i32 = arith.constant 0 : i32
    %c0_i32_0 = arith.constant 0 : i32
    return %arg0, %c0_i32 : i32, i32
  }
  func.func @transform_1(%arg0: i32) -> (i32, i32) {
    %c0_i32 = arith.constant 0 : i32
    %c0_i32_0 = arith.constant 0 : i32
    %c0_i32_1 = arith.constant 0 : i32
    return %c0_i32, %c0_i32_0 : i32, i32
  }
  func.func @transform_2(%arg0: i32) -> (i32, i32) {
    %c0_i32 = arith.constant 0 : i32
    %c0_i32_0 = arith.constant 0 : i32
    %c0_i32_1 = arith.constant 0 : i32
    return %c0_i32, %c0_i32_0 : i32, i32
  }
  func.func @transform_3(%arg0: i32) -> (i32, i32) {
    %c0_i32 = arith.constant 0 : i32
    %c0_i32_0 = arith.constant 0 : i32
    %c0_i32_1 = arith.constant 0 : i32
    return %c0_i32, %c0_i32_0 : i32, i32
  }
  func.func @transform_4(%arg0: i32) -> (i32, i32) {
    %c0_i32 = arith.constant 0 : i32
    %c0_i32_0 = arith.constant 0 : i32
    %c0_i32_1 = arith.constant 0 : i32
    return %c0_i32, %c0_i32_0 : i32, i32
  }
  func.func @transform_5(%arg0: i32) -> (i32, i32) {
    %c0_i32 = arith.constant 0 : i32
    %c0_i32_0 = arith.constant 0 : i32
    %c0_i32_1 = arith.constant 0 : i32
    return %c0_i32, %c0_i32_0 : i32, i32
  }
  func.func @transform_6(%arg0: i32) -> (i32, i32) {
    %c0_i32 = arith.constant 0 : i32
    %c0_i32_0 = arith.constant 0 : i32
    %c0_i32_1 = arith.constant 0 : i32
    return %c0_i32, %c0_i32_0 : i32, i32
  }
  func.func @transform_7(%arg0: i32) -> (i32, i32) {
    %c0_i32 = arith.constant 0 : i32
    %c0_i32_0 = arith.constant 0 : i32
    %c0_i32_1 = arith.constant 0 : i32
    return %c0_i32, %c0_i32_0 : i32, i32
  }
  func.func @transform_8(%arg0: i32) -> (i32, i32) {
    %c0_i32 = arith.constant 0 : i32
    %c0_i32_0 = arith.constant 0 : i32
    %c0_i32_1 = arith.constant 0 : i32
    return %c0_i32, %c0_i32_0 : i32, i32
  }
  func.func @transform_9(%arg0: i32) -> (i32, i32) {
    %c0_i32 = arith.constant 0 : i32
    %c0_i32_0 = arith.constant 0 : i32
    %c0_i32_1 = arith.constant 0 : i32
    return %c0_i32, %c0_i32_0 : i32, i32
  }
  func.func @transform_10(%arg0: i32) -> (i32, i32) {
    %c0_i32 = arith.constant 0 : i32
    %c0_i32_0 = arith.constant 0 : i32
    %c0_i32_1 = arith.constant 0 : i32
    return %c0_i32, %c0_i32_0 : i32, i32
  }
  func.func @transform_11(%arg0: i32) -> (i32, i32) {
    %c0_i32 = arith.constant 0 : i32
    %c0_i32_0 = arith.constant 0 : i32
    %c0_i32_1 = arith.constant 0 : i32
    return %c0_i32, %c0_i32_0 : i32, i32
  }
  func.func @transform_12(%arg0: i32) -> (i32, i32) {
    %c0_i32 = arith.constant 0 : i32
    %c0_i32_0 = arith.constant 0 : i32
    %c0_i32_1 = arith.constant 0 : i32
    return %c0_i32, %c0_i32_0 : i32, i32
  }
  func.func @transform_13(%arg0: i32) -> (i32, i32) {
    %c0_i32 = arith.constant 0 : i32
    %c0_i32_0 = arith.constant 0 : i32
    %c0_i32_1 = arith.constant 0 : i32
    return %c0_i32, %c0_i32_0 : i32, i32
  }
  func.func @transform_14(%arg0: i32) -> (i32, i32) {
    %c0_i32 = arith.constant 0 : i32
    %c0_i32_0 = arith.constant 0 : i32
    %c0_i32_1 = arith.constant 0 : i32
    return %c0_i32, %c0_i32_0 : i32, i32
  }
  func.func @transform_15(%arg0: i32) -> (i32, i32) {
    %c0_i32 = arith.constant 0 : i32
    %c0_i32_0 = arith.constant 0 : i32
    %c0_i32_1 = arith.constant 0 : i32
    return %c0_i32, %c0_i32_0 : i32, i32
  }
  func.func @transform_16(%arg0: i32) -> (i32, i32) {
    %c0_i32 = arith.constant 0 : i32
    %c0_i32_0 = arith.constant 0 : i32
    %c0_i32_1 = arith.constant 0 : i32
    return %c0_i32, %c0_i32_0 : i32, i32
  }
  func.func @transform_17(%arg0: i32) -> (i32, i32) {
    %c0_i32 = arith.constant 0 : i32
    %c0_i32_0 = arith.constant 0 : i32
    %c0_i32_1 = arith.constant 0 : i32
    return %c0_i32, %c0_i32_0 : i32, i32
  }
  func.func @transform_18(%arg0: i32) -> (i32, i32) {
    %c0_i32 = arith.constant 0 : i32
    %c0_i32_0 = arith.constant 0 : i32
    %c0_i32_1 = arith.constant 0 : i32
    return %c0_i32, %c0_i32_0 : i32, i32
  }
  func.func @transform_19(%arg0: i32) -> (i32, i32) {
    %c0_i32 = arith.constant 0 : i32
    %c0_i32_0 = arith.constant 0 : i32
    %c0_i32_1 = arith.constant 0 : i32
    return %c0_i32, %c0_i32_0 : i32, i32
  }
  func.func @transform_20(%arg0: i32) -> (i32, i32) {
    %c0_i32 = arith.constant 0 : i32
    %c0_i32_0 = arith.constant 0 : i32
    %c0_i32_1 = arith.constant 0 : i32
    return %c0_i32, %c0_i32_0 : i32, i32
  }
  func.func @transform_21(%arg0: i32) -> (i32, i32) {
    %c0_i32 = arith.constant 0 : i32
    %c0_i32_0 = arith.constant 0 : i32
    %c0_i32_1 = arith.constant 0 : i32
    return %c0_i32, %c0_i32_0 : i32, i32
  }
  func.func @transform_22(%arg0: i32) -> (i32, i32) {
    %c0_i32 = arith.constant 0 : i32
    %c0_i32_0 = arith.constant 0 : i32
    %c0_i32_1 = arith.constant 0 : i32
    return %c0_i32, %c0_i32_0 : i32, i32
  }
  func.func @transform_23(%arg0: i32) -> (i32, i32) {
    %c0_i32 = arith.constant 0 : i32
    %c0_i32_0 = arith.constant 0 : i32
    %c0_i32_1 = arith.constant 0 : i32
    return %c0_i32, %c0_i32_0 : i32, i32
  }
  func.func @transform_24(%arg0: i32) -> (i32, i32) {
    %c0_i32 = arith.constant 0 : i32
    %c0_i32_0 = arith.constant 0 : i32
    %c0_i32_1 = arith.constant 0 : i32
    return %c0_i32, %c0_i32_0 : i32, i32
  }
  func.func @transform_25(%arg0: i32) -> (i32, i32) {
    %c0_i32 = arith.constant 0 : i32
    %c0_i32_0 = arith.constant 0 : i32
    %c0_i32_1 = arith.constant 0 : i32
    return %c0_i32, %c0_i32_0 : i32, i32
  }
  func.func @transform_26(%arg0: i32) -> (i32, i32) {
    %c0_i32 = arith.constant 0 : i32
    %c0_i32_0 = arith.constant 0 : i32
    %c0_i32_1 = arith.constant 0 : i32
    return %c0_i32, %c0_i32_0 : i32, i32
  }
  func.func @transform_27(%arg0: i32) -> (i32, i32) {
    %c0_i32 = arith.constant 0 : i32
    %c0_i32_0 = arith.constant 0 : i32
    %c0_i32_1 = arith.constant 0 : i32
    return %c0_i32, %c0_i32_0 : i32, i32
  }
  func.func @transform_28(%arg0: i32) -> (i32, i32) {
    %c0_i32 = arith.constant 0 : i32
    %c0_i32_0 = arith.constant 0 : i32
    %c0_i32_1 = arith.constant 0 : i32
    return %c0_i32, %c0_i32_0 : i32, i32
  }
  func.func @transform_29(%arg0: i32) -> (i32, i32) {
    %c0_i32 = arith.constant 0 : i32
    %c0_i32_0 = arith.constant 0 : i32
    %c0_i32_1 = arith.constant 0 : i32
    return %c0_i32, %c0_i32_0 : i32, i32
  }
  func.func @transform_30(%arg0: i32) -> (i32, i32) {
    %c0_i32 = arith.constant 0 : i32
    %c0_i32_0 = arith.constant 0 : i32
    %c0_i32_1 = arith.constant 0 : i32
    return %c0_i32, %c0_i32_0 : i32, i32
  }
  func.func @transform_31(%arg0: i32) -> (i32, i32) {
    %c0_i32 = arith.constant 0 : i32
    %c0_i32_0 = arith.constant 0 : i32
    %c0_i32_1 = arith.constant 0 : i32
    return %c0_i32, %c0_i32_0 : i32, i32
  }
  func.func @transform_32(%arg0: i32) -> (i32, i32) {
    %c0_i32 = arith.constant 0 : i32
    %c0_i32_0 = arith.constant 0 : i32
    %c0_i32_1 = arith.constant 0 : i32
    return %c0_i32, %c0_i32_0 : i32, i32
  }
  func.func @transform_33(%arg0: i32) -> (i32, i32) {
    %c0_i32 = arith.constant 0 : i32
    %c0_i32_0 = arith.constant 0 : i32
    %c0_i32_1 = arith.constant 0 : i32
    return %c0_i32, %c0_i32_0 : i32, i32
  }
  func.func @transform_34(%arg0: i32) -> (i32, i32) {
    %c0_i32 = arith.constant 0 : i32
    %c0_i32_0 = arith.constant 0 : i32
    %c0_i32_1 = arith.constant 0 : i32
    return %c0_i32, %c0_i32_0 : i32, i32
  }
  func.func @transform_35(%arg0: i32) -> (i32, i32) {
    %c0_i32 = arith.constant 0 : i32
    %c0_i32_0 = arith.constant 0 : i32
    %c0_i32_1 = arith.constant 0 : i32
    return %c0_i32, %c0_i32_0 : i32, i32
  }
  func.func @transform_36(%arg0: i32) -> (i32, i32) {
    %c0_i32 = arith.constant 0 : i32
    %c0_i32_0 = arith.constant 0 : i32
    %c0_i32_1 = arith.constant 0 : i32
    return %c0_i32, %c0_i32_0 : i32, i32
  }
  func.func @transform_37(%arg0: i32) -> (i32, i32) {
    %c0_i32 = arith.constant 0 : i32
    %c0_i32_0 = arith.constant 0 : i32
    %c0_i32_1 = arith.constant 0 : i32
    return %c0_i32, %c0_i32_0 : i32, i32
  }
  func.func @transform_38(%arg0: i32) -> (i32, i32) {
    %c0_i32 = arith.constant 0 : i32
    %c0_i32_0 = arith.constant 0 : i32
    %c0_i32_1 = arith.constant 0 : i32
    return %c0_i32, %c0_i32_0 : i32, i32
  }
  func.func @transform_39(%arg0: i32) -> (i32, i32) {
    %c0_i32 = arith.constant 0 : i32
    %c0_i32_0 = arith.constant 0 : i32
    %c0_i32_1 = arith.constant 0 : i32
    return %c0_i32, %c0_i32_0 : i32, i32
  }
  func.func @transform_40(%arg0: i32) -> (i32, i32) {
    %c0_i32 = arith.constant 0 : i32
    %c0_i32_0 = arith.constant 0 : i32
    %c0_i32_1 = arith.constant 0 : i32
    return %c0_i32, %c0_i32_0 : i32, i32
  }
  func.func @transform_41(%arg0: i32) -> (i32, i32) {
    %c0_i32 = arith.constant 0 : i32
    %c0_i32_0 = arith.constant 0 : i32
    %c0_i32_1 = arith.constant 0 : i32
    return %c0_i32, %c0_i32_0 : i32, i32
  }
  func.func @transform_42(%arg0: i32) -> (i32, i32) {
    %c0_i32 = arith.constant 0 : i32
    %c0_i32_0 = arith.constant 0 : i32
    %c0_i32_1 = arith.constant 0 : i32
    return %c0_i32, %c0_i32_0 : i32, i32
  }
  func.func @transform_43(%arg0: i32) -> (i32, i32) {
    %c0_i32 = arith.constant 0 : i32
    %c0_i32_0 = arith.constant 0 : i32
    %c0_i32_1 = arith.constant 0 : i32
    return %c0_i32, %c0_i32_0 : i32, i32
  }
  func.func @transform_44(%arg0: i32) -> (i32, i32) {
    %c0_i32 = arith.constant 0 : i32
    %c0_i32_0 = arith.constant 0 : i32
    %c0_i32_1 = arith.constant 0 : i32
    return %c0_i32, %c0_i32_0 : i32, i32
  }
  func.func @transform_45(%arg0: i32) -> (i32, i32) {
    %c0_i32 = arith.constant 0 : i32
    %c0_i32_0 = arith.constant 0 : i32
    return %arg0, %c0_i32 : i32, i32
  }
}

</mosaic_0001>

<bundles_post_ra>
// kernel: _lambda_.1
= control target key start
LH: loop header
LB: loop body
LE: loop exit
PB: predicated region body
PF: predicated region fallthrough
CT: control target
= control target key end

     0   :  { %s5880_s6 = smov 1   ;;  %s5881_s10 = smov 2   ;;  %s7143_s0 = inlined_call_operand.smem [shape: u32[46], index: -1, kind: input, shape index: {}] }
   0x1   :  { %s5978_s5 = sld [smem:[%s7143_s0]]   ;;  %s5882_s14 = smov 3  }
   0x2   :  { %s5983_s9 = sld [smem:[%s7143_s0 + %s5880_s6]]   ;;  %s5883_s18 = smov 4  }
   0x3   :  { %s5988_s13 = sld [smem:[%s7143_s0 + %s5881_s10]]   ;;  %s5884_s22 = smov 5  }
   0x4   :  { %s5993_s17 = sld [smem:[%s7143_s0 + %s5882_s14]]   ;;  %s5885_s26 = smov 6  }
   0x5   :  { %s5998_s21 = sld [smem:[%s7143_s0 + %s5883_s18]]   ;;  %s5886_s30 = smov 7  }
   0x6   :  { %s6003_s25 = sld [smem:[%s7143_s0 + %s5884_s22]]   ;;  %s5887_s4 = smov 8  }
   0x7   :  { %7166 = sst [smem:[#allocation60_spill]] %s5978_s5  ;;  %s5888_s10 = smov 9  }
   0x8   :  { %7167 = sst [smem:[#allocation61_spill]] %s5983_s9  ;;  %s5889_s15 = smov 10  }
   0x9   :  { %7168 = sst [smem:[#allocation62_spill]] %s5988_s13  ;;  %s5890_s20 = smov 11  }
   0xa   :  { %7169 = sst [smem:[#allocation63_spill]] %s5993_s17  ;;  %s5892_s1 = smov 13  }
   0xb   :  { %7170 = sst [smem:[#allocation64_spill]] %s5998_s21  ;;  %s5893_s7 = smov 14  }
   0xc   :  { %s6008_s29 = sld [smem:[%s7143_s0 + %s5885_s26]]   ;;  %s5891_s26 = smov 12  }
   0xd   :  { %s6013_s3 = sld [smem:[%s7143_s0 + %s5886_s30]]   ;;  %s5895_s22 = smov 16  }
   0xe   :  { %s6018_s8 = sld [smem:[%s7143_s0 + %s5887_s4]]   ;;  %s5896_s28 = smov 17  }
   0xf   :  { %s6023_s14 = sld [smem:[%s7143_s0 + %s5888_s10]]  }
  0x10   :  { %s6028_s19 = sld [smem:[%s7143_s0 + %s5889_s15]]   ;;  %s5894_s15 = smov 15  }
  0x11   :  { %s6033_s24 = sld [smem:[%s7143_s0 + %s5890_s20]]  }
  0x12   :  { %7171 = sst [smem:[#allocation65_spill]] %s6008_s29 }
  0x13   :  { %7172 = sst [smem:[#allocation66_spill]] %s6013_s3 }
  0x14   :  { %7173 = sst [smem:[#allocation67_spill]] %s6018_s8 }
  0x15   :  { %7174 = sst [smem:[#allocation68_spill]] %s6023_s14 }
  0x16   :  { %7175 = sst [smem:[#allocation69_spill]] %s6028_s19 }
  0x17   :  { %s6038_s30 = sld [smem:[%s7143_s0 + %s5891_s26]]  }
  0x18   :  { %s6043_s6 = sld [smem:[%s7143_s0 + %s5892_s1]]  }
  0x19   :  { %s6048_s12 = sld [smem:[%s7143_s0 + %s5893_s7]]   ;;  %s5897_s7 = smov 18  }
  0x1a   :  { %s6053_s20 = sld [smem:[%s7143_s0 + %s5894_s15]]   ;;  %s5898_s15 = smov 19  }
  0x1b   :  { %s6058_s27 = sld [smem:[%s7143_s0 + %s5895_s22]]   ;;  %s5899_s22 = smov 20  }
  0x1c   :  { %s6063_s4 = sld [smem:[%s7143_s0 + %s5896_s28]]   ;;  %s5900_s28 = smov 21  }
  0x1d   :  { %7176 = sst [smem:[#allocation70_spill]] %s6038_s30 }
  0x1e   :  { %7177 = sst [smem:[#allocation71_spill]] %s6043_s6 }
  0x1f   :  { %s6068_s30 = sld [smem:[%s7143_s0 + %s5897_s7]]   ;;  %s5901_s7 = smov 22  }
  0x20   :  { %7178 = sst [smem:[#allocation72_spill]] %s6053_s20 }
  0x21   :  { %7179 = sst [smem:[#allocation73_spill]] %s6058_s27 }
  0x22   :  { %7180 = sst [smem:[#allocation74_spill]] %s6063_s4 }
  0x23   :  { %s6073_s14 = sld [smem:[%s7143_s0 + %s5898_s15]]   ;;  %s5902_s15 = smov 23  }
  0x24   :  { %s6078_s27 = sld [smem:[%s7143_s0 + %s5899_s22]]   ;;  %s5903_s22 = smov 24  }
  0x25   :  { %s6083_s4 = sld [smem:[%s7143_s0 + %s5900_s28]]   ;;  %s5904_s28 = smov 25  }
  0x26   :  { %s6088_s8 = sld [smem:[%s7143_s0 + %s5901_s7]]   ;;  %s5905_s7 = smov 26  }
  0x27   :  { %s6093_s19 = sld [smem:[%s7143_s0 + %s5902_s15]]   ;;  %s5906_s15 = smov 27  }
  0x28   :  { %s6103_s29 = sld [smem:[%s7143_s0 + %s5904_s28]]   ;;  %s5908_s28 = smov 29  }
  0x29   :  { %7181 = sst [smem:[#allocation75_spill]] %s6073_s14 }
  0x2a   :  { %7182 = sst [smem:[#allocation76_spill]] %s6078_s27 }
  0x2b   :  { %s6098_s27 = sld [smem:[%s7143_s0 + %s5903_s22]]   ;;  %s5907_s22 = smov 28  }
  0x2c   :  { %7183 = sst [smem:[#allocation77_spill]] %s6088_s8 }
  0x2d   :  { %7184 = sst [smem:[#allocation78_spill]] %s6093_s19 }
  0x2e   :  { %7185 = sst [smem:[#allocation79_spill]] %s6103_s29 }
  0x2f   :  { %s6108_s8 = sld [smem:[%s7143_s0 + %s5905_s7]]   ;;  %s5909_s7 = smov 30  }
  0x30   :  { %s6113_s3 = sld [smem:[%s7143_s0 + %s5906_s15]]   ;;  %s5910_s15 = smov 31  }
  0x31   :  { %s6118_s17 = sld [smem:[%s7143_s0 + %s5907_s22]]   ;;  %s5911_s22 = smov 32  }
  0x32   :  { %s6123_s13 = sld [smem:[%s7143_s0 + %s5908_s28]]   ;;  %s5912_s28 = smov 33  }
  0x33   :  { %s6128_s21 = sld [smem:[%s7143_s0 + %s5909_s7]]   ;;  %s5913_s7 = smov 34  }
  0x34   :  { %s6138_s5 = sld [smem:[%s7143_s0 + %s5911_s22]]   ;;  %s5915_s22 = smov 36  }
  0x35   :  { %s6143_s9 = sld [smem:[%s7143_s0 + %s5912_s28]]   ;;  %s5916_s28 = smov 37  }
  0x36   :  { %7186 = sst [smem:[#allocation80_spill]] %s6113_s3 }
  0x37   :  { %7187 = sst [smem:[#allocation81_spill]] %s6118_s17 }
  0x38   :  { %s6133_s3 = sld [smem:[%s7143_s0 + %s5910_s15]]   ;;  %s5914_s15 = smov 35  }
  0x39   :  { %7188 = sst [smem:[#allocation82_spill]] %s6128_s21 }
  0x3a   :  { %7189 = sst [smem:[#allocation83_spill]] %s6138_s5 }
  0x3b   :  { %s6148_s21 = sld [smem:[%s7143_s0 + %s5913_s7]]   ;;  %s5917_s7 = smov 38  }
  0x3c   :  { %s6153_s17 = sld [smem:[%s7143_s0 + %s5914_s15]]   ;;  %s5918_s15 = smov 39  }
  0x3d   :  { %s6158_s5 = sld [smem:[%s7143_s0 + %s5915_s22]]   ;;  %s5919_s22 = smov 40  }
  0x3e   :  { %s6163_s29 = sld [smem:[%s7143_s0 + %s5916_s28]]   ;;  %s5920_s28 = smov 41  }
  0x3f   :  { %s6173_s19 = sld [smem:[%s7143_s0 + %s5918_s15]]   ;;  %s5922_s15 = smov 43  }
  0x40   :  { %s6183_s14 = sld [smem:[%s7143_s0 + %s5920_s28]]   ;;  %s5924_s28 = smov 45  }
  0x41   :  { %7190 = sst [smem:[#allocation84_spill]] %s6148_s21 }
  0x42   :  { %s6168_s21 = sld [smem:[%s7143_s0 + %s5917_s7]]   ;;  %s5921_s7 = smov 42  }
  0x43   :  { %7191 = sst [smem:[#allocation85_spill]] %s6158_s5 }
  0x44   :  { %s6178_s5 = sld [smem:[%s7143_s0 + %s5919_s22]]   ;;  %s5923_s22 = smov 44  }
  0x45   :  { %s6193_s20 = sld [smem:[%s7143_s0 + %s5922_s15]]  }
  0x46   :  { %s6203_s6 = sld [smem:[%s7143_s0 + %s5924_s28]]  }
  0x48   :  { %7192 = sst [smem:[#allocation86_spill]] %s6168_s21 }
  0x49   :  { %s6188_s21 = sld [smem:[%s7143_s0 + %s5921_s7]]  }
  0x4a   :  { %7193 = sst [smem:[#allocation87_spill]] %s6178_s5 }
  0x4b   :  { %s6198_s5 = sld [smem:[%s7143_s0 + %s5923_s22]]  }
  0x4c   :  { %96 = vsyncpa [#allocation3], 0 }
  0x4d   :  { %97 = vsyncpa [#allocation6], 0 }
  0x4e   :  { %98 = vsyncpa [#allocation9], 0 }
  0x4f   :  { %99 = vsyncpa [#allocation12], 0 }
  0x50   :  { %100 = vsyncpa [#allocation15], 0 }
  0x51   :  { %101 = vsyncpa [#allocation18], 0 }
  0x52   :  { %102 = vsyncpa [#allocation21], 0 }
  0x53   :  { %103 = vsyncpa [#allocation24], 0 }
  0x54   :  { %104 = vsyncpa [#allocation27], 0 }
  0x55   :  { %105 = vsyncpa [#allocation30], 0 }
  0x56   :  { %106 = vsyncpa [#allocation33], 0 }
  0x57   :  { %107 = vsyncpa [#allocation36], 0 }
  0x58   :  { %108 = vsyncpa [#allocation39], 0 }
  0x59   :  { %109 = vsyncpa [#allocation42], 0 }
  0x5a   :  { %110 = vsyncpa [#allocation4], 0  ;;  %s148_s0 = sshll.u32 %s6033_s24, 4  ;;  %s5925_s7 = smov [#allocation5]   ;;  %s149_s0 = int_to_ptr.hbm [resolvable:$true] %s148_s0 }
  0x5b   :  { %s150_s10 = sshll.u32 %s5925_s7, 4  ;;  %s177_s11 = sshll.u32 %s6048_s12, 4  ;;  %s151_s10 = int_to_ptr.vmem [resolvable:$true] %s150_s10  ;;  %s178_s11 = int_to_ptr.hbm [resolvable:$true] %s177_s11 }
  0x5c   :  { %s5178_s15 = sshra.s32 %s149_s0, 4  ;;  %s5182_s18 = scalar_lea.hbm %s6033_s24, 64  ;;  %s5179_s15 = int_to_ptr.hbm [resolvable:$true] %s5178_s15 }
  0x5d   :  { %s5180_s16 = scalar_lea.hbm %s5179_s15, 64  ;;  %p5183_p1 = scmp.lt.s32.totalorder %s5179_s15, %s6033_s24 }
  0x5e   :  { %p5181_p0 = scmp.ne.s32.totalorder %s5179_s15, %s5180_s16  ;;  %p5184_p2 = scmp.lt.s32.totalorder %s5182_s18, %s5180_s16 }
  0x60   :  { %p5185_p3 = por %p5184_p2, %p5183_p1 }
  0x62   :  { %p5186_p4 = pnand %p5185_p3, %p5181_p0 }
  0x64   :  { %5189 = shalt.err (!%p5186_p4)
}
  0x65   :  { %s5926_s22 = smov 64   ;;  %s5927_s23 = smov 4  }
  0x66   :  { %156 = dma.hbm_to_vmem [thread:$0]  %s149_s0, 1024, %s151_s10, [#allocation6], %s5926_s22, %s5926_s22, %s5927_s23  }
  0x67   :  { %s5928_s26 = smov [#allocation8]   ;;  %s203_s1 = sshll.u32 %s6068_s30, 4  ;;  %s204_s1 = int_to_ptr.hbm [resolvable:$true] %s203_s1 }
  0x68   :  { %s179_s28 = sshll.u32 %s5928_s26, 4  ;;  %s5202_s24 = sshra.s32 %s178_s11, 4  ;;  %s180_s28 = int_to_ptr.vmem [resolvable:$true] %s179_s28  ;;  %s5203_s24 = int_to_ptr.hbm [resolvable:$true] %s5202_s24 }
  0x69   :  { %s5204_s2 = scalar_lea.hbm %s5203_s24, 1  ;;  %s5206_s7 = scalar_lea.hbm %s6048_s12, 1 }
  0x6a   :  { %p5205_p5 = scmp.ne.s32.totalorder %s5203_s24, %s5204_s2  ;;  %p5207_p6 = scmp.lt.s32.totalorder %s5203_s24, %s6048_s12 }
  0x6b   :  { %p5208_p7 = scmp.lt.s32.totalorder %s5206_s7, %s5204_s2 }
  0x6d   :  { %p5209_p8 = por %p5208_p7, %p5207_p6 }
  0x6f   :  { %p5210_p9 = pnand %p5209_p8, %p5205_p5 }
  0x71   :  { %5213 = shalt.err (!%p5210_p9)
}
  0x72   :  { %182 = dma.hbm_to_vmem [thread:$0]  %s178_s11, 16, %s180_s28, [#allocation9]  }
  0x73   :  { %s226_s0 = sshll.u32 %s6083_s4, 4  ;;  %s5929_s10 = smov [#allocation11]   ;;  %s6216_s0 = int_to_ptr.hbm [resolvable:$true] %s226_s0 }
  0x74   :  { %s205_s15 = sshll.u32 %s5929_s10, 4  ;;  %s5226_s16 = sshra.s32 %s204_s1, 4  ;;  %s206_s15 = int_to_ptr.vmem [resolvable:$true] %s205_s15  ;;  %s5227_s16 = int_to_ptr.hbm [resolvable:$true] %s5226_s16 }
  0x75   :  { %s5228_s18 = scalar_lea.hbm %s5227_s16, 1  ;;  %s5230_s26 = scalar_lea.hbm %s6068_s30, 1 }
  0x76   :  { %p5229_p10 = scmp.ne.s32.totalorder %s5227_s16, %s5228_s18  ;;  %p5231_p11 = scmp.lt.s32.totalorder %s5227_s16, %s6068_s30 }
  0x77   :  { %p5232_p12 = scmp.lt.s32.totalorder %s5230_s26, %s5228_s18 }
  0x79   :  { %p5233_p13 = por %p5232_p12, %p5231_p11 }
  0x7b   :  { %p5234_p0 = pnand %p5233_p13, %p5229_p10 }
  0x7d   :  { %5237 = shalt.err (!%p5234_p0)
}
  0x7e   :  { %208 = dma.hbm_to_vmem [thread:$0]  %s204_s1, 16, %s206_s15, [#allocation12]  }
  0x7f   :  { %s5930_s12 = smov [#allocation14]   ;;  %s255_s28 = sshll.u32 %s6098_s27, 4  ;;  %s256_s28 = int_to_ptr.hbm [resolvable:$true] %s255_s28 }
  0x80   :  { %s228_s11 = sshll.u32 %s5930_s12, 4  ;;  %s5250_s24 = sshra.s32 %s6216_s0, 4  ;;  %s229_s11 = int_to_ptr.vmem [resolvable:$true] %s228_s11  ;;  %s5251_s24 = int_to_ptr.hbm [resolvable:$true] %s5250_s24 }
  0x81   :  { %s5252_s2 = scalar_lea.hbm %s5251_s24, 64  ;;  %s5254_s7 = scalar_lea.hbm %s6083_s4, 64 }
  0x82   :  { %p5253_p1 = scmp.ne.s32.totalorder %s5251_s24, %s5252_s2  ;;  %p5255_p2 = scmp.lt.s32.totalorder %s5251_s24, %s6083_s4 }
  0x83   :  { %p5256_p3 = scmp.lt.s32.totalorder %s5254_s7, %s5252_s2 }
  0x85   :  { %p5257_p4 = por %p5256_p3, %p5255_p2 }
  0x87   :  { %p5258_p5 = pnand %p5257_p4, %p5253_p1 }
  0x89   :  { %5261 = shalt.err (!%p5258_p5)
}
  0x8a   :  { %234 = dma.hbm_to_vmem [thread:$0]  %s6216_s0, 1024, %s229_s11, [#allocation15], %s5926_s22, %s5926_s22, %s5927_s23  }
  0x8b   :  { %s276_s30 = sshll.u32 %s6108_s8, 4  ;;  %s5931_s1 = smov [#allocation17]   ;;  %s6229_s30 = int_to_ptr.hbm [resolvable:$true] %s276_s30 }
  0x8c   :  { %s257_s10 = sshll.u32 %s5931_s1, 4  ;;  %s5274_s15 = sshra.s32 %s256_s28, 4  ;;  %s258_s10 = int_to_ptr.vmem [resolvable:$true] %s257_s10  ;;  %s5275_s15 = int_to_ptr.hbm [resolvable:$true] %s5274_s15 }
  0x8d   :  { %s5276_s4 = scalar_lea.hbm %s5275_s15, 1  ;;  %s5278_s16 = scalar_lea.hbm %s6098_s27, 1 }
  0x8e   :  { %p5277_p6 = scmp.ne.s32.totalorder %s5275_s15, %s5276_s4  ;;  %p5279_p7 = scmp.lt.s32.totalorder %s5275_s15, %s6098_s27 }
  0x8f   :  { %p5280_p8 = scmp.lt.s32.totalorder %s5278_s16, %s5276_s4 }
  0x91   :  { %p5281_p9 = por %p5280_p8, %p5279_p7 }
  0x93   :  { %p5282_p10 = pnand %p5281_p9, %p5277_p6 }
  0x95   :  { %5285 = shalt.err (!%p5282_p10)
}
  0x96   :  { %260 = dma.hbm_to_vmem [thread:$0]  %s256_s28, 16, %s258_s10, [#allocation18]  }
  0x97   :  { %s5932_s0 = smov [#allocation20]   ;;  %s5298_s26 = sshra.s32 %s6229_s30, 4  ;;  %s5299_s26 = int_to_ptr.hbm [resolvable:$true] %s5298_s26 }
  0x98   :  { %s278_s18 = sshll.u32 %s5932_s0, 4  ;;  %s5300_s12 = scalar_lea.hbm %s5299_s26, 128  ;;  %s279_s18 = int_to_ptr.vmem [resolvable:$true] %s278_s18 }
  0x99   :  { %p5301_p11 = scmp.ne.s32.totalorder %s5299_s26, %s5300_s12  ;;  %s5302_s11 = scalar_lea.hbm %s6108_s8, 128 }
  0x9a   :  { %p5303_p12 = scmp.lt.s32.totalorder %s5299_s26, %s6108_s8  ;;  %p5304_p13 = scmp.lt.s32.totalorder %s5302_s11, %s5300_s12 }
  0x9c   :  { %p5305_p0 = por %p5304_p13, %p5303_p12 }
  0x9e   :  { %p5306_p1 = pnand %p5305_p0, %p5301_p11 }
  0xa0   :  { %5309 = shalt.err (!%p5306_p1)
}
  0xa1   :  { %s5933_s27 = smov 128   ;;  %s5934_s28 = smov 8  }
  0xa2   :  { %284 = dma.hbm_to_vmem [thread:$0]  %s6229_s30, 2048, %s279_s18, [#allocation21], %s5933_s27, %s5933_s27, %s5934_s28  }
  0xa3   :  { %s303_s24 = sshll.u32 %s6123_s13, 4  ;;  %s5935_s2 = smov [#allocation23]   ;;  %s304_s24 = int_to_ptr.hbm [resolvable:$true] %s303_s24 }
  0xa4   :  { %s305_s7 = sshll.u32 %s5935_s2, 4  ;;  %s326_s8 = sshll.u32 %s6133_s3, 4  ;;  %s306_s7 = int_to_ptr.vmem [resolvable:$true] %s305_s7  ;;  %s327_s8 = int_to_ptr.hbm [resolvable:$true] %s326_s8 }
  0xa5   :  { %s5322_s1 = sshra.s32 %s304_s24, 4  ;;  %s5326_s15 = scalar_lea.hbm %s6123_s13, 1  ;;  %s5323_s1 = int_to_ptr.hbm [resolvable:$true] %s5322_s1 }
  0xa6   :  { %s5324_s10 = scalar_lea.hbm %s5323_s1, 1  ;;  %p5327_p3 = scmp.lt.s32.totalorder %s5323_s1, %s6123_s13 }
  0xa7   :  { %p5325_p2 = scmp.ne.s32.totalorder %s5323_s1, %s5324_s10  ;;  %p5328_p4 = scmp.lt.s32.totalorder %s5326_s15, %s5324_s10 }
  0xa9   :  { %p5329_p5 = por %p5328_p4, %p5327_p3 }
  0xab   :  { %p5330_p6 = pnand %p5329_p5, %p5325_p2 }
  0xad   :  { %5333 = shalt.err (!%p5330_p6)
}
  0xae   :  { %308 = dma.hbm_to_vmem [thread:$0]  %s304_s24, 16, %s306_s7, [#allocation24]  }
  0xaf   :  { %s5936_s30 = smov [#allocation26]   ;;  %s350_s16 = sshll.u32 %s6143_s9, 4  ;;  %s6245_s16 = int_to_ptr.hbm [resolvable:$true] %s350_s16 }
  0xb0   :  { %s328_s4 = sshll.u32 %s5936_s30, 4  ;;  %s5346_s0 = sshra.s32 %s327_s8, 4  ;;  %s329_s4 = int_to_ptr.vmem [resolvable:$true] %s328_s4  ;;  %s5347_s0 = int_to_ptr.hbm [resolvable:$true] %s5346_s0 }
  0xb1   :  { %s5348_s18 = scalar_lea.hbm %s5347_s0, 64  ;;  %s5350_s13 = scalar_lea.hbm %s6133_s3, 64 }
  0xb2   :  { %p5349_p7 = scmp.ne.s32.totalorder %s5347_s0, %s5348_s18  ;;  %p5351_p8 = scmp.lt.s32.totalorder %s5347_s0, %s6133_s3 }
  0xb3   :  { %p5352_p9 = scmp.lt.s32.totalorder %s5350_s13, %s5348_s18 }
  0xb5   :  { %p5353_p10 = por %p5352_p9, %p5351_p8 }
  0xb7   :  { %p5354_p11 = pnand %p5353_p10, %p5349_p7 }
  0xb9   :  { %5357 = shalt.err (!%p5354_p11)
}
  0xba   :  { %334 = dma.hbm_to_vmem [thread:$0]  %s327_s8, 1024, %s329_s4, [#allocation27], %s5926_s22, %s5926_s22, %s5927_s23  }
  0xbb   :  { %s375_s26 = sshll.u32 %s6153_s17, 4  ;;  %s5937_s12 = smov [#allocation29]   ;;  %s376_s26 = int_to_ptr.hbm [resolvable:$true] %s375_s26 }
  0xbc   :  { %s352_s11 = sshll.u32 %s5937_s12, 4  ;;  %s5370_s24 = sshra.s32 %s6245_s16, 4  ;;  %s353_s11 = int_to_ptr.vmem [resolvable:$true] %s352_s11  ;;  %s5371_s24 = int_to_ptr.hbm [resolvable:$true] %s5370_s24 }
  0xbd   :  { %s5372_s3 = scalar_lea.hbm %s5371_s24, 64  ;;  %s5374_s2 = scalar_lea.hbm %s6143_s9, 64 }
  0xbe   :  { %p5373_p12 = scmp.ne.s32.totalorder %s5371_s24, %s5372_s3  ;;  %p5375_p13 = scmp.lt.s32.totalorder %s5371_s24, %s6143_s9 }
  0xbf   :  { %p5376_p0 = scmp.lt.s32.totalorder %s5374_s2, %s5372_s3 }
  0xc1   :  { %p5377_p1 = por %p5376_p0, %p5375_p13 }
  0xc3   :  { %p5378_p2 = pnand %p5377_p1, %p5373_p12 }
  0xc5   :  { %5381 = shalt.err (!%p5378_p2)
}
  0xc6   :  { %358 = dma.hbm_to_vmem [thread:$0]  %s6245_s16, 1024, %s353_s11, [#allocation30], %s5933_s27, %s5933_s27, %s5934_s28  }
  0xc7   :  { %s5938_s7 = smov [#allocation32]   ;;  %s398_s1 = sshll.u32 %s6163_s29, 4  ;;  %s6261_s1 = int_to_ptr.hbm [resolvable:$true] %s398_s1 }
  0xc8   :  { %s377_s8 = sshll.u32 %s5938_s7, 4  ;;  %s5394_s10 = sshra.s32 %s376_s26, 4  ;;  %s378_s8 = int_to_ptr.vmem [resolvable:$true] %s377_s8  ;;  %s5395_s10 = int_to_ptr.hbm [resolvable:$true] %s5394_s10 }
  0xc9   :  { %s5396_s9 = scalar_lea.hbm %s5395_s10, 1  ;;  %s5398_s15 = scalar_lea.hbm %s6153_s17, 1 }
  0xca   :  { %p5397_p3 = scmp.ne.s32.totalorder %s5395_s10, %s5396_s9  ;;  %p5399_p4 = scmp.lt.s32.totalorder %s5395_s10, %s6153_s17 }
  0xcb   :  { %p5400_p5 = scmp.lt.s32.totalorder %s5398_s15, %s5396_s9 }
  0xcd   :  { %p5401_p6 = por %p5400_p5, %p5399_p4 }
  0xcf   :  { %p5402_p7 = pnand %p5401_p6, %p5397_p3 }
  0xd1   :  { %5405 = shalt.err (!%p5402_p7)
}
  0xd2   :  { %380 = dma.hbm_to_vmem [thread:$0]  %s376_s26, 16, %s378_s8, [#allocation33]  }
  0xd3   :  { %s423_s30 = sshll.u32 %s6173_s19, 4  ;;  %s5939_s4 = smov [#allocation35]   ;;  %s424_s30 = int_to_ptr.hbm [resolvable:$true] %s423_s30 }
  0xd4   :  { %s400_s16 = sshll.u32 %s5939_s4, 4  ;;  %s5418_s0 = sshra.s32 %s6261_s1, 4  ;;  %s401_s16 = int_to_ptr.vmem [resolvable:$true] %s400_s16  ;;  %s5419_s0 = int_to_ptr.hbm [resolvable:$true] %s5418_s0 }
  0xd5   :  { %s5420_s18 = scalar_lea.hbm %s5419_s0, 64  ;;  %s5422_s13 = scalar_lea.hbm %s6163_s29, 64 }
  0xd6   :  { %p5421_p8 = scmp.ne.s32.totalorder %s5419_s0, %s5420_s18  ;;  %p5423_p9 = scmp.lt.s32.totalorder %s5419_s0, %s6163_s29 }
  0xd7   :  { %p5424_p10 = scmp.lt.s32.totalorder %s5422_s13, %s5420_s18 }
  0xd9   :  { %p5425_p11 = por %p5424_p10, %p5423_p9 }
  0xdb   :  { %p5426_p12 = pnand %p5425_p11, %p5421_p8 }
  0xdd   :  { %5429 = shalt.err (!%p5426_p12)
}
  0xde   :  { %406 = dma.hbm_to_vmem [thread:$0]  %s6261_s1, 1024, %s401_s16, [#allocation36], %s5933_s27, %s5933_s27, %s5934_s28  }
  0xdf   :  { %s5940_s17 = smov [#allocation38]   ;;  %s446_s12 = sshll.u32 %s6183_s14, 4  ;;  %s6274_s12 = int_to_ptr.hbm [resolvable:$true] %s446_s12 }
  0xe0   :  { %s425_s26 = sshll.u32 %s5940_s17, 4  ;;  %s5442_s11 = sshra.s32 %s424_s30, 4  ;;  %s426_s26 = int_to_ptr.vmem [resolvable:$true] %s425_s26  ;;  %s5443_s11 = int_to_ptr.hbm [resolvable:$true] %s5442_s11 }
  0xe1   :  { %s5444_s29 = scalar_lea.hbm %s5443_s11, 1  ;;  %s5446_s24 = scalar_lea.hbm %s6173_s19, 1 }
  0xe2   :  { %p5445_p13 = scmp.ne.s32.totalorder %s5443_s11, %s5444_s29  ;;  %p5447_p0 = scmp.lt.s32.totalorder %s5443_s11, %s6173_s19 }
  0xe3   :  { %p5448_p1 = scmp.lt.s32.totalorder %s5446_s24, %s5444_s29 }
  0xe5   :  { %p5449_p2 = por %p5448_p1, %p5447_p0 }
  0xe7   :  { %p5450_p3 = pnand %p5449_p2, %p5445_p13 }
  0xe9   :  { %5453 = shalt.err (!%p5450_p3)
}
  0xea   :  { %428 = dma.hbm_to_vmem [thread:$0]  %s424_s30, 16, %s426_s26, [#allocation39]  }
  0xeb   :  { %s125_s3 = sshll.u32 %s6003_s25, 4  ;;  %s5941_s2 = smov [#allocation41]   ;;  %s6279_s3 = int_to_ptr.hbm [resolvable:$true] %s125_s3 }
  0xec   :  { %s448_s7 = sshll.u32 %s5941_s2, 4  ;;  %s5466_s8 = sshra.s32 %s6274_s12, 4  ;;  %s449_s7 = int_to_ptr.vmem [resolvable:$true] %s448_s7  ;;  %s5467_s8 = int_to_ptr.hbm [resolvable:$true] %s5466_s8 }
  0xed   :  { %s5468_s1 = scalar_lea.hbm %s5467_s8, 32  ;;  %s5470_s19 = scalar_lea.hbm %s6183_s14, 32 }
  0xee   :  { %p5469_p4 = scmp.ne.s32.totalorder %s5467_s8, %s5468_s1  ;;  %p5471_p5 = scmp.lt.s32.totalorder %s5467_s8, %s6183_s14 }
  0xef   :  { %p5472_p6 = scmp.lt.s32.totalorder %s5470_s19, %s5468_s1 }
  0xf1   :  { %p5473_p7 = por %p5472_p6, %p5471_p5 }
  0xf3   :  { %p5474_p8 = pnand %p5473_p7, %p5469_p4 }
  0xf5   :  { %5477 = shalt.err (!%p5474_p8)
}
  0xf6   :  { %s7194_s10 = sld [smem:[#allocation71_spill]]  ;;  %s5942_s9 = smov [#allocation2]  }
  0xf7   :  { %454 = dma.hbm_to_vmem [thread:$0]  %s6274_s12, 512, %s449_s7, [#allocation42], %s5926_s22, %s5926_s22, %s5927_s23  }
  0xf8   :  { %s127_s15 = sshll.u32 %s5942_s9, 4  ;;  %s5490_s14 = sshra.s32 %s6279_s3, 4  ;;  %s128_s15 = int_to_ptr.vmem [resolvable:$true] %s127_s15  ;;  %s5491_s14 = int_to_ptr.hbm [resolvable:$true] %s5490_s14 }
  0xf9   :  { %s5492_s4 = scalar_lea.hbm %s5491_s14, 64  ;;  %s5494_s16 = scalar_lea.hbm %s6003_s25, 64 }
  0xfa   :  { %p5493_p9 = scmp.ne.s32.totalorder %s5491_s14, %s5492_s4  ;;  %p5495_p10 = scmp.lt.s32.totalorder %s5491_s14, %s6003_s25 }
  0xfb   :  { %p5496_p11 = scmp.lt.s32.totalorder %s5494_s16, %s5492_s4 }
  0xfc   :  { %s163_s30 = sshll.u32 %s7194_s10, 4  ;;  %s6289_s30 = int_to_ptr.hbm [resolvable:$true] %s163_s30 }
  0xfd   :  { %p5497_p12 = por %p5496_p11, %p5495_p10 }
  0xff   :  { %p5498_p13 = pnand %p5497_p12, %p5493_p9 }
 0x101   :  { %5501 = shalt.err (!%p5498_p13)
}
 0x102   :  { %s7195_s0 = sld [smem:[#allocation72_spill]]  ;;  %s5943_s18 = smov [#allocation7]  }
 0x103   :  { %133 = dma.hbm_to_vmem [thread:$0]  %s6279_s3, 1024, %s128_s15, [#allocation3], %s5926_s22, %s5926_s22, %s5927_s23  }
 0x104   :  { %s165_s13 = sshll.u32 %s5943_s18, 4  ;;  %s5514_s26 = sshra.s32 %s6289_s30, 4  ;;  %s166_s13 = int_to_ptr.vmem [resolvable:$true] %s165_s13  ;;  %s5515_s26 = int_to_ptr.hbm [resolvable:$true] %s5514_s26 }
 0x105   :  { %s5516_s25 = scalar_lea.hbm %s5515_s26, 96  ;;  %s5518_s12 = scalar_lea.hbm %s7194_s10, 96 }
 0x106   :  { %p5517_p0 = scmp.ne.s32.totalorder %s5515_s26, %s5516_s25  ;;  %p5519_p1 = scmp.lt.s32.totalorder %s5515_s26, %s7194_s10 }
 0x107   :  { %p5520_p2 = scmp.lt.s32.totalorder %s5518_s12, %s5516_s25 }
 0x108   :  { %s188_s17 = sshll.u32 %s7195_s0, 4  ;;  %s189_s17 = int_to_ptr.hbm [resolvable:$true] %s188_s17 }
 0x109   :  { %p5521_p3 = por %p5520_p2, %p5519_p1 }
 0x10b   :  { %p5522_p4 = pnand %p5521_p3, %p5517_p0 }
 0x10d   :  { %5525 = shalt.err (!%p5522_p4)
}
 0x10e   :  { %s5944_s11 = smov 192   ;;  %s7196_s29 = sld [smem:[#allocation75_spill]] }
 0x10f   :  { %s5945_s24 = smov 12   ;;  %s5946_s3 = smov [#allocation10]  }
 0x110   :  { %171 = dma.hbm_to_vmem [thread:$0]  %s6289_s30, 1536, %s166_s13, [#allocation6], %s5944_s11, %s5944_s11, %s5945_s24  }
 0x111   :  { %s190_s2 = sshll.u32 %s5946_s3, 4  ;;  %s5538_s8 = sshra.s32 %s189_s17, 4  ;;  %s191_s2 = int_to_ptr.vmem [resolvable:$true] %s190_s2  ;;  %s5539_s8 = int_to_ptr.hbm [resolvable:$true] %s5538_s8 }
 0x112   :  { %s5540_s1 = scalar_lea.hbm %s5539_s8, 1  ;;  %s5542_s19 = scalar_lea.hbm %s7195_s0, 1 }
 0x113   :  { %p5541_p5 = scmp.ne.s32.totalorder %s5539_s8, %s5540_s1  ;;  %p5543_p6 = scmp.lt.s32.totalorder %s5539_s8, %s7195_s0 }
 0x114   :  { %s214_s7 = sshll.u32 %s7196_s29, 4  ;;  %p5544_p7 = scmp.lt.s32.totalorder %s5542_s19, %s5540_s1  ;;  %s215_s7 = int_to_ptr.hbm [resolvable:$true] %s214_s7 }
 0x116   :  { %p5545_p8 = por %p5544_p7, %p5543_p6 }
 0x118   :  { %p5546_p9 = pnand %p5545_p8, %p5541_p5 }
 0x11a   :  { %5549 = shalt.err (!%p5546_p9)
}
 0x11b   :  { %193 = dma.hbm_to_vmem [thread:$0]  %s189_s17, 16, %s191_s2, [#allocation9]  }
 0x11c   :  { %s7197_s10 = sld [smem:[#allocation78_spill]]  ;;  %s5947_s15 = smov [#allocation13]  }
 0x11d   :  { %s216_s30 = sshll.u32 %s5947_s15, 4  ;;  %s5562_s14 = sshra.s32 %s215_s7, 4  ;;  %s217_s30 = int_to_ptr.vmem [resolvable:$true] %s216_s30  ;;  %s5563_s14 = int_to_ptr.hbm [resolvable:$true] %s5562_s14 }
 0x11e   :  { %s5564_s4 = scalar_lea.hbm %s5563_s14, 1  ;;  %s5566_s16 = scalar_lea.hbm %s7196_s29, 1 }
 0x11f   :  { %p5565_p10 = scmp.ne.s32.totalorder %s5563_s14, %s5564_s4  ;;  %p5567_p11 = scmp.lt.s32.totalorder %s5563_s14, %s7196_s29 }
 0x120   :  { %p5568_p12 = scmp.lt.s32.totalorder %s5566_s16, %s5564_s4 }
 0x122   :  { %s241_s9 = sshll.u32 %s7197_s10, 4  ;;  %p5569_p13 = por %p5568_p12, %p5567_p11  ;;  %s6310_s9 = int_to_ptr.hbm [resolvable:$true] %s241_s9 }
 0x124   :  { %p5570_p0 = pnand %p5569_p13, %p5565_p10 }
 0x126   :  { %5573 = shalt.err (!%p5570_p0)
}
 0x127   :  { %219 = dma.hbm_to_vmem [thread:$0]  %s215_s7, 16, %s217_s30, [#allocation12]  }
 0x128   :  { %s7198_s0 = sld [smem:[#allocation79_spill]]  ;;  %s5948_s18 = smov [#allocation16]  }
 0x129   :  { %s243_s13 = sshll.u32 %s5948_s18, 4  ;;  %s5586_s26 = sshra.s32 %s6310_s9, 4  ;;  %s244_s13 = int_to_ptr.vmem [resolvable:$true] %s243_s13  ;;  %s5587_s26 = int_to_ptr.hbm [resolvable:$true] %s5586_s26 }
 0x12a   :  { %s5588_s25 = scalar_lea.hbm %s5587_s26, 96  ;;  %s5590_s12 = scalar_lea.hbm %s7197_s10, 96 }
 0x12b   :  { %p5589_p1 = scmp.ne.s32.totalorder %s5587_s26, %s5588_s25  ;;  %p5591_p2 = scmp.lt.s32.totalorder %s5587_s26, %s7197_s10 }
 0x12c   :  { %p5592_p3 = scmp.lt.s32.totalorder %s5590_s12, %s5588_s25 }
 0x12e   :  { %s266_s17 = sshll.u32 %s7198_s0, 4  ;;  %p5593_p4 = por %p5592_p3, %p5591_p2  ;;  %s267_s17 = int_to_ptr.hbm [resolvable:$true] %s266_s17 }
 0x130   :  { %p5594_p5 = pnand %p5593_p4, %p5589_p1 }
 0x132   :  { %5597 = shalt.err (!%p5594_p5)
}
 0x133   :  { %s7199_s29 = sld [smem:[#allocation81_spill]]  ;;  %s5949_s2 = smov [#allocation19]  }
 0x134   :  { %249 = dma.hbm_to_vmem [thread:$0]  %s6310_s9, 1536, %s244_s13, [#allocation15], %s5944_s11, %s5944_s11, %s5945_s24  }
 0x135   :  { %s268_s7 = sshll.u32 %s5949_s2, 4  ;;  %s5610_s8 = sshra.s32 %s267_s17, 4  ;;  %s269_s7 = int_to_ptr.vmem [resolvable:$true] %s268_s7  ;;  %s5611_s8 = int_to_ptr.hbm [resolvable:$true] %s5610_s8 }
 0x136   :  { %s5612_s1 = scalar_lea.hbm %s5611_s8, 1  ;;  %s5614_s19 = scalar_lea.hbm %s7198_s0, 1 }
 0x137   :  { %p5613_p6 = scmp.ne.s32.totalorder %s5611_s8, %s5612_s1  ;;  %p5615_p7 = scmp.lt.s32.totalorder %s5611_s8, %s7198_s0 }
 0x138   :  { %p5616_p8 = scmp.lt.s32.totalorder %s5614_s19, %s5612_s1 }
 0x139   :  { %s292_s3 = sshll.u32 %s7199_s29, 4  ;;  %s293_s3 = int_to_ptr.hbm [resolvable:$true] %s292_s3 }
 0x13a   :  { %p5617_p9 = por %p5616_p8, %p5615_p7 }
 0x13c   :  { %p5618_p10 = pnand %p5617_p9, %p5613_p6 }
 0x13e   :  { %5621 = shalt.err (!%p5618_p10)
}
 0x13f   :  { %271 = dma.hbm_to_vmem [thread:$0]  %s267_s17, 16, %s269_s7, [#allocation18]  }
 0x140   :  { %s7200_s10 = sld [smem:[#allocation82_spill]]  ;;  %s5950_s11 = smov [#allocation22]  }
 0x141   :  { %s294_s24 = sshll.u32 %s5950_s11, 4  ;;  %s5634_s15 = sshra.s32 %s293_s3, 4  ;;  %s295_s24 = int_to_ptr.vmem [resolvable:$true] %s294_s24  ;;  %s5635_s15 = int_to_ptr.hbm [resolvable:$true] %s5634_s15 }
 0x142   :  { %s5636_s30 = scalar_lea.hbm %s5635_s15, 1  ;;  %s5638_s14 = scalar_lea.hbm %s7199_s29, 1 }
 0x143   :  { %p5637_p11 = scmp.ne.s32.totalorder %s5635_s15, %s5636_s30  ;;  %p5639_p12 = scmp.lt.s32.totalorder %s5635_s15, %s7199_s29 }
 0x144   :  { %p5640_p13 = scmp.lt.s32.totalorder %s5638_s14, %s5636_s30 }
 0x146   :  { %s313_s9 = sshll.u32 %s7200_s10, 4  ;;  %p5641_p0 = por %p5640_p13, %p5639_p12  ;;  %s6326_s9 = int_to_ptr.hbm [resolvable:$true] %s313_s9 }
 0x148   :  { %p5642_p1 = pnand %p5641_p0, %p5637_p11 }
 0x14a   :  { %5645 = shalt.err (!%p5642_p1)
}
 0x14b   :  { %297 = dma.hbm_to_vmem [thread:$0]  %s293_s3, 16, %s295_s24, [#allocation21]  }
 0x14c   :  { %s7201_s4 = sld [smem:[#allocation83_spill]]  ;;  %s5951_s0 = smov [#allocation25]  }
 0x14d   :  { %s315_s18 = sshll.u32 %s5951_s0, 4  ;;  %s5658_s13 = sshra.s32 %s6326_s9, 4  ;;  %s316_s18 = int_to_ptr.vmem [resolvable:$true] %s315_s18  ;;  %s5659_s13 = int_to_ptr.hbm [resolvable:$true] %s5658_s13 }
 0x14e   :  { %s5660_s17 = scalar_lea.hbm %s5659_s13, 128  ;;  %s5662_s26 = scalar_lea.hbm %s7200_s10, 128 }
 0x14f   :  { %p5661_p2 = scmp.ne.s32.totalorder %s5659_s13, %s5660_s17  ;;  %p5663_p3 = scmp.lt.s32.totalorder %s5659_s13, %s7200_s10 }
 0x150   :  { %p5664_p4 = scmp.lt.s32.totalorder %s5662_s26, %s5660_s17 }
 0x152   :  { %s340_s16 = sshll.u32 %s7201_s4, 4  ;;  %p5665_p5 = por %p5664_p4, %p5663_p3  ;;  %s341_s16 = int_to_ptr.hbm [resolvable:$true] %s340_s16 }
 0x154   :  { %p5666_p6 = pnand %p5665_p5, %p5661_p2 }
 0x156   :  { %5669 = shalt.err (!%p5666_p6)
}
 0x157   :  { %s7202_s25 = sld [smem:[#allocation84_spill]]  ;;  %s5952_s12 = smov [#allocation28]  }
 0x158   :  { %321 = dma.hbm_to_vmem [thread:$0]  %s6326_s9, 2048, %s316_s18, [#allocation24], %s5933_s27, %s5933_s27, %s5934_s28  }
 0x159   :  { %s342_s29 = sshll.u32 %s5952_s12, 4  ;;  %s5682_s2 = sshra.s32 %s341_s16, 4  ;;  %s343_s29 = int_to_ptr.vmem [resolvable:$true] %s342_s29  ;;  %s5683_s2 = int_to_ptr.hbm [resolvable:$true] %s5682_s2 }
 0x15a   :  { %s5684_s7 = scalar_lea.hbm %s5683_s2, 2  ;;  %s5686_s8 = scalar_lea.hbm %s7201_s4, 2 }
 0x15b   :  { %p5685_p7 = scmp.ne.s32.totalorder %s5683_s2, %s5684_s7  ;;  %p5687_p8 = scmp.lt.s32.totalorder %s5683_s2, %s7201_s4 }
 0x15c   :  { %p5688_p9 = scmp.lt.s32.totalorder %s5686_s8, %s5684_s7 }
 0x15d   :  { %s364_s3 = sshll.u32 %s7202_s25, 4  ;;  %s365_s3 = int_to_ptr.hbm [resolvable:$true] %s364_s3 }
 0x15e   :  { %p5689_p10 = por %p5688_p9, %p5687_p8 }
 0x160   :  { %p5690_p11 = pnand %p5689_p10, %p5685_p7 }
 0x162   :  { %5693 = shalt.err (!%p5690_p11)
}
 0x163   :  { %345 = dma.hbm_to_vmem [thread:$0]  %s341_s16, 32, %s343_s29, [#allocation27]  }
 0x164   :  { %s7203_s1 = sld [smem:[#allocation85_spill]]  ;;  %s5953_s10 = smov [#allocation31]  }
 0x165   :  { %s366_s11 = sshll.u32 %s5953_s10, 4  ;;  %s5706_s24 = sshra.s32 %s365_s3, 4  ;;  %s367_s11 = int_to_ptr.vmem [resolvable:$true] %s366_s11  ;;  %s5707_s24 = int_to_ptr.hbm [resolvable:$true] %s5706_s24 }
 0x166   :  { %s5708_s9 = scalar_lea.hbm %s5707_s24, 1  ;;  %s5710_s15 = scalar_lea.hbm %s7202_s25, 1 }
 0x167   :  { %p5709_p12 = scmp.ne.s32.totalorder %s5707_s24, %s5708_s9  ;;  %p5711_p13 = scmp.lt.s32.totalorder %s5707_s24, %s7202_s25 }
 0x168   :  { %p5712_p0 = scmp.lt.s32.totalorder %s5710_s15, %s5708_s9 }
 0x16a   :  { %s385_s19 = sshll.u32 %s7203_s1, 4  ;;  %p5713_p1 = por %p5712_p0, %p5711_p13  ;;  %s6342_s19 = int_to_ptr.hbm [resolvable:$true] %s385_s19 }
 0x16c   :  { %p5714_p2 = pnand %p5713_p1, %p5709_p12 }
 0x16e   :  { %5717 = shalt.err (!%p5714_p2)
}
 0x16f   :  { %369 = dma.hbm_to_vmem [thread:$0]  %s365_s3, 16, %s367_s11, [#allocation30]  }
 0x170   :  { %s7204_s30 = sld [smem:[#allocation86_spill]]  ;;  %s5954_s14 = smov [#allocation34]  }
 0x171   :  { %s387_s4 = sshll.u32 %s5954_s14, 4  ;;  %s5730_s0 = sshra.s32 %s6342_s19, 4  ;;  %s388_s4 = int_to_ptr.vmem [resolvable:$true] %s387_s4  ;;  %s5731_s0 = int_to_ptr.hbm [resolvable:$true] %s5730_s0 }
 0x172   :  { %s5732_s18 = scalar_lea.hbm %s5731_s0, 64  ;;  %s5734_s13 = scalar_lea.hbm %s7203_s1, 64 }
 0x173   :  { %p5733_p3 = scmp.ne.s32.totalorder %s5731_s0, %s5732_s18  ;;  %p5735_p4 = scmp.lt.s32.totalorder %s5731_s0, %s7203_s1 }
 0x174   :  { %p5736_p5 = scmp.lt.s32.totalorder %s5734_s13, %s5732_s18 }
 0x176   :  { %s412_s16 = sshll.u32 %s7204_s30, 4  ;;  %p5737_p6 = por %p5736_p5, %p5735_p4  ;;  %s413_s16 = int_to_ptr.hbm [resolvable:$true] %s412_s16 }
 0x178   :  { %p5738_p7 = pnand %p5737_p6, %p5733_p3 }
 0x17a   :  { %5741 = shalt.err (!%p5738_p7)
}
 0x17b   :  { %s7205_s17 = sld [smem:[#allocation87_spill]]  ;;  %s5955_s25 = smov [#allocation37]  }
 0x17c   :  { %393 = dma.hbm_to_vmem [thread:$0]  %s6342_s19, 1024, %s388_s4, [#allocation33], %s5933_s27, %s5933_s27, %s5934_s28  }
 0x17d   :  { %s414_s12 = sshll.u32 %s5955_s25, 4  ;;  %s5754_s29 = sshra.s32 %s413_s16, 4  ;;  %s415_s12 = int_to_ptr.vmem [resolvable:$true] %s414_s12  ;;  %s5755_s29 = int_to_ptr.hbm [resolvable:$true] %s5754_s29 }
 0x17e   :  { %s5756_s3 = scalar_lea.hbm %s5755_s29, 1  ;;  %s5758_s2 = scalar_lea.hbm %s7204_s30, 1 }
 0x17f   :  { %p5757_p8 = scmp.ne.s32.totalorder %s5755_s29, %s5756_s3  ;;  %p5759_p9 = scmp.lt.s32.totalorder %s5755_s29, %s7204_s30 }
 0x180   :  { %p5760_p10 = scmp.lt.s32.totalorder %s5758_s2, %s5756_s3 }
 0x181   :  { %s433_s26 = sshll.u32 %s7205_s17, 4  ;;  %s6355_s26 = int_to_ptr.hbm [resolvable:$true] %s433_s26 }
 0x182   :  { %p5761_p11 = por %p5760_p10, %p5759_p9 }
 0x184   :  { %p5762_p12 = pnand %p5761_p11, %p5757_p8 }
 0x186   :  { %5765 = shalt.err (!%p5762_p12)
}
 0x187   :  { %417 = dma.hbm_to_vmem [thread:$0]  %s413_s16, 16, %s415_s12, [#allocation36]  }
 0x188   :  { %s5956_s7 = smov [#allocation40]   ;;  %s460_s1 = sshll.u32 %s6188_s21, 4  ;;  %s461_s1 = int_to_ptr.hbm [resolvable:$true] %s460_s1 }
 0x189   :  { %s435_s8 = sshll.u32 %s5956_s7, 4  ;;  %s5778_s19 = sshra.s32 %s6355_s26, 4  ;;  %s436_s8 = int_to_ptr.vmem [resolvable:$true] %s435_s8  ;;  %s5779_s19 = int_to_ptr.hbm [resolvable:$true] %s5778_s19 }
 0x18a   :  { %s5780_s10 = scalar_lea.hbm %s5779_s19, 64  ;;  %s5782_s11 = scalar_lea.hbm %s7205_s17, 64 }
 0x18b   :  { %p5781_p13 = scmp.ne.s32.totalorder %s5779_s19, %s5780_s10  ;;  %p5783_p0 = scmp.lt.s32.totalorder %s5779_s19, %s7205_s17 }
 0x18c   :  { %p5784_p1 = scmp.lt.s32.totalorder %s5782_s11, %s5780_s10 }
 0x18e   :  { %p5785_p2 = por %p5784_p1, %p5783_p0 }
 0x190   :  { %p5786_p3 = pnand %p5785_p2, %p5781_p13 }
 0x192   :  { %5789 = shalt.err (!%p5786_p3)
}
 0x193   :  { %441 = dma.hbm_to_vmem [thread:$0]  %s6355_s26, 1024, %s436_s8, [#allocation39], %s5933_s27, %s5933_s27, %s5934_s28  }
 0x194   :  { %s5957_s24 = smov [#allocation43]   ;;  %s5802_s15 = sshra.s32 %s461_s1, 4  ;;  %s5803_s15 = int_to_ptr.hbm [resolvable:$true] %s5802_s15 }
 0x195   :  { %s462_s9 = sshll.u32 %s5957_s24, 4  ;;  %s5804_s30 = scalar_lea.hbm %s5803_s15, 1  ;;  %s463_s9 = int_to_ptr.vmem [resolvable:$true] %s462_s9 }
 0x196   :  { %p5805_p4 = scmp.ne.s32.totalorder %s5803_s15, %s5804_s30  ;;  %s5806_s14 = scalar_lea.hbm %s6188_s21, 1 }
 0x197   :  { %p5807_p5 = scmp.lt.s32.totalorder %s5803_s15, %s6188_s21  ;;  %p5808_p6 = scmp.lt.s32.totalorder %s5806_s14, %s5804_s30 }
 0x199   :  { %p5809_p7 = por %p5808_p6, %p5807_p5 }
 0x19b   :  { %p5810_p8 = pnand %p5809_p7, %p5805_p4 }
 0x19d   :  { %5813 = shalt.err (!%p5810_p8)
}
 0x19e   :  { %465 = dma.hbm_to_vmem [thread:$0]  %s461_s1, 16, %s463_s9, [#allocation42]  }
 0x19f   :  { %5850 = dma.done.wait [#allocation3], 1024  }
 0x1a0   :  { %5851 = vsyncadd [#allocation3], 4294966272 }
 0x1a1   :  { %5852 = dma.done.wait [#allocation6], 2560  }
 0x1a2   :  { %5853 = vsyncadd [#allocation6], 4294964736 }
 0x1a3   :  { %5854 = dma.done.wait [#allocation9], 32  }
 0x1a4   :  { %5855 = vsyncadd [#allocation9], 4294967264 }
 0x1a5   :  { %5856 = dma.done.wait [#allocation12], 32  }
 0x1a6   :  { %5857 = vsyncadd [#allocation12], 4294967264 }
 0x1a7   :  { %5858 = dma.done.wait [#allocation15], 2560  }
 0x1a8   :  { %5859 = vsyncadd [#allocation15], 4294964736 }
 0x1a9   :  { %5860 = dma.done.wait [#allocation18], 32  }
 0x1aa   :  { %5861 = vsyncadd [#allocation18], 4294967264 }
 0x1ab   :  { %5862 = dma.done.wait [#allocation21], 2064  }
 0x1ac   :  { %5863 = vsyncadd [#allocation21], 4294965232 }
 0x1ad   :  { %5864 = dma.done.wait [#allocation24], 2064  }
 0x1ae   :  { %5865 = vsyncadd [#allocation24], 4294965232 }
 0x1af   :  { %5866 = dma.done.wait [#allocation27], 1056  }
 0x1b0   :  { %5867 = vsyncadd [#allocation27], 4294966240 }
 0x1b1   :  { %5868 = dma.done.wait [#allocation30], 1040  }
 0x1b2   :  { %5869 = vsyncadd [#allocation30], 4294966256 }
 0x1b3   :  { %5870 = dma.done.wait [#allocation33], 1040  }
 0x1b4   :  { %5871 = vsyncadd [#allocation33], 4294966256 }
 0x1b5   :  { %5872 = dma.done.wait [#allocation36], 1040  }
 0x1b6   :  { %5873 = vsyncadd [#allocation36], 4294966256 }
 0x1b7   :  { %5874 = dma.done.wait [#allocation39], 1040  }
 0x1b8   :  { %5875 = vsyncadd [#allocation39], 4294966256 }
 0x1b9   :  { %5876 = dma.done.wait [#allocation42], 528  }
 0x1ba   :  { %5877 = vsyncadd [#allocation42], 4294966768  ;;  %s7206_s21 = sld [smem:[#allocation61_spill]]  ;;  %vm987_vm0 = vcmask 1040384   ;;  %vm1051_vm1 = vcmask 1046528   ;;  %vm1202_vm10 = vcmask 31744  }
 0x1bb   :  { %s7207_s27 = sld [smem:[#allocation60_spill]]  ;;  %vm1208_vm11 = vcmask 64512   ;;  %s5959_s18 = smov 16   ;;  %vm1214_vm12 = vcmask 130048   ;;  %vm1220_vm13 = vcmask 261120   ;;  %vm1226_vm14 = vcmask 523264  }
 0x1bc   :  { %s7208_s4 = sld [smem:[#allocation64_spill]]  ;;  %s5961_s13 = smov 124  }
 0x1bd   :  { %s7217_s16 = sld [smem:[#allocation62_spill]]  ;;  %s5965_s1 = smov 112  }
 0x1be   :  { %s7218_s0 = sld [smem:[#allocation63_spill]]  ;;  %s5967_s11 = smov 96  }
 0x1bf   :  { %s7219_s17 = sld [smem:[#allocation66_spill]]  ;;  %s4117_s9 = sshll.u32 %s6203_s6, 4  ;;  %s4118_s9 = int_to_ptr.hbm [resolvable:$true] %s4117_s9 }
 0x1c0   :  { %v4271_v0 = vld [vmem:[%s7206_s21 + $0xa8] sm:$0xf]  ;;  %v4885_v1 = vld [vmem:[%s7206_s21 + $0xb0] sm:$0xf0]  ;;  %v4279_v2 = vld [vmem:[%s7206_s21 + $0xb0] sm:$0xf] }
 0x1c1   :  { %v4272_v3 = vor.u32 %v4885_v1, %v4271_v0  ;;  %v4886_v4 = vld [vmem:[%s7206_s21 + $0xb8] sm:$0xf0]  ;;  %v4884_v5 = vld [vmem:[%s7206_s21 + $0xac] sm:$0xf]  ;;  %v4273_v6 = vld [vmem:[%s7206_s21 + $0xb4] sm:$0xf0] }
 0x1c2   :  { %v4280_v7 = vor.u32 %v4886_v4, %v4279_v2  ;;  %v4276_v8 = vor.u32 %v4884_v5, %v4273_v6  ;;  %v4259_v9 = vld [vmem:[%s7206_s21 + $0x90] sm:$0xf]  ;;  %v4882_v10 = vld [vmem:[%s7206_s21 + $0x98] sm:$0xf0]  ;;  %v4267_v11 = vld [vmem:[%s7206_s21 + $0x98] sm:$0xf] }
 0x1c3   :  { %769 = vmatpush.bf16.msra.mxu0 %v4272_v3  ;;  %v4260_v12 = vor.u32 %v4882_v10, %v4259_v9  ;;  %v4883_v13 = vld [vmem:[%s7206_s21 + $0xa0] sm:$0xf0]  ;;  %v4881_v14 = vld [vmem:[%s7206_s21 + $0x94] sm:$0xf]  ;;  %v4261_v15 = vld [vmem:[%s7206_s21 + $0x9c] sm:$0xf0] }
 0x1c4   :  { %827 = vmatpush.bf16.msra.mxu2 %v4280_v7  ;;  %798 = vmatpush.bf16.msra.mxu1 %v4276_v8  ;;  %v4268_v16 = vor.u32 %v4883_v13, %v4267_v11  ;;  %v4264_v17 = vor.u32 %v4881_v14, %v4261_v15  ;;  %v4247_v18 = vld [vmem:[%s7206_s21 + $0x78] sm:$0xf]  ;;  %v4879_v19 = vld [vmem:[%s7206_s21 + $0x80] sm:$0xf0]  ;;  %v4255_v20 = vld [vmem:[%s7206_s21 + $0x80] sm:$0xf] }
 0x1c5   :  { %v4880_v21 = vld [vmem:[%s7206_s21 + $0x88] sm:$0xf0]  ;;  %v4878_v22 = vld [vmem:[%s7206_s21 + $0x7c] sm:$0xf]  ;;  %v4249_v23 = vld [vmem:[%s7206_s21 + $0x84] sm:$0xf0]  ;;  %v4248_v24 = vor.u32 %v4879_v19, %v4247_v18 }
 0x1c6   :  { %v4256_v25 = vor.u32 %v4880_v21, %v4255_v20  ;;  %v4252_v26 = vor.u32 %v4878_v22, %v4249_v23  ;;  %v4235_v27 = vld [vmem:[%s7206_s21 + $0x60] sm:$0xf]  ;;  %v4876_v28 = vld [vmem:[%s7206_s21 + $0x68] sm:$0xf0]  ;;  %v4243_v29 = vld [vmem:[%s7206_s21 + $0x68] sm:$0xf] }
 0x1c7   :  { %770 = vmatpush.bf16.msra.mxu0 %v4260_v12  ;;  %v4877_v30 = vld [vmem:[%s7206_s21 + $0x70] sm:$0xf0]  ;;  %v4875_v31 = vld [vmem:[%s7206_s21 + $0x64] sm:$0xf]  ;;  %v4237_v32 = vld [vmem:[%s7206_s21 + $0x6c] sm:$0xf0]  ;;  %v4236_v33 = vor.u32 %v4876_v28, %v4235_v27 }
 0x1c8   :  { %828 = vmatpush.bf16.msra.mxu2 %v4268_v16  ;;  %799 = vmatpush.bf16.msra.mxu1 %v4264_v17  ;;  %v4244_v34 = vor.u32 %v4877_v30, %v4243_v29  ;;  %v4240_v35 = vor.u32 %v4875_v31, %v4237_v32  ;;  %v4223_v36 = vld [vmem:[%s7206_s21 + $0x48] sm:$0xf]  ;;  %v4873_v37 = vld [vmem:[%s7206_s21 + $0x50] sm:$0xf0]  ;;  %v4231_v38 = vld [vmem:[%s7206_s21 + $0x50] sm:$0xf] }
 0x1c9   :  { %v4874_v39 = vld [vmem:[%s7206_s21 + $0x58] sm:$0xf0]  ;;  %v4872_v40 = vld [vmem:[%s7206_s21 + $0x4c] sm:$0xf]  ;;  %v4225_v41 = vld [vmem:[%s7206_s21 + $0x54] sm:$0xf0]  ;;  %v4224_v42 = vor.u32 %v4873_v37, %v4223_v36 }
 0x1ca   :  { %v4211_v43 = vld [vmem:[%s7206_s21 + $0x30] sm:$0xf]  ;;  %v4232_v44 = vor.u32 %v4874_v39, %v4231_v38  ;;  %v4228_v45 = vor.u32 %v4872_v40, %v4225_v41  ;;  %v4870_v46 = vld [vmem:[%s7206_s21 + $0x38] sm:$0xf0]  ;;  %v4219_v47 = vld [vmem:[%s7206_s21 + $0x38] sm:$0xf]  ;;  %v856_v40 = vlaneseq }
 0x1cb   :  { %771 = vmatpush.bf16.msra.mxu0 %v4248_v24  ;;  %v4871_v48 = vld [vmem:[%s7206_s21 + $0x40] sm:$0xf0]  ;;  %v4869_v49 = vld [vmem:[%s7206_s21 + $0x34] sm:$0xf]  ;;  %v4213_v50 = vld [vmem:[%s7206_s21 + $0x3c] sm:$0xf0]  ;;  %v4212_v51 = vor.u32 %v4870_v46, %v4211_v43 }
 0x1cc   :  { %829 = vmatpush.bf16.msra.mxu2 %v4256_v25  ;;  %800 = vmatpush.bf16.msra.mxu1 %v4252_v26  ;;  %v4220_v52 = vor.u32 %v4871_v48, %v4219_v47  ;;  %v4216_v53 = vor.u32 %v4869_v49, %v4213_v50  ;;  %v4199_v54 = vld [vmem:[%s7206_s21 + $0x18] sm:$0xf]  ;;  %v4867_v55 = vld [vmem:[%s7206_s21 + $0x20] sm:$0xf0]  ;;  %v4207_v56 = vld [vmem:[%s7206_s21 + $0x20] sm:$0xf] }
 0x1cd   :  { %v4868_v57 = vld [vmem:[%s7206_s21 + $0x28] sm:$0xf0]  ;;  %v4866_v58 = vld [vmem:[%s7206_s21 + $0x1c] sm:$0xf]  ;;  %v4201_v59 = vld [vmem:[%s7206_s21 + $0x24] sm:$0xf0]  ;;  %v4200_v60 = vor.u32 %v4867_v55, %v4199_v54 }
 0x1ce   :  { %v4208_v61 = vor.u32 %v4868_v57, %v4207_v56  ;;  %v4204_v62 = vor.u32 %v4866_v58, %v4201_v59  ;;  %v4187_v63 = vld [vmem:[%s7206_s21] sm:$0xf]  ;;  %v4864_v0 = vld [vmem:[%s7206_s21 + $0x8] sm:$0xf0]  ;;  %v4195_v1 = vld [vmem:[%s7206_s21 + $0x8] sm:$0xf] }
 0x1cf   :  { %772 = vmatpush.bf16.msra.mxu0 %v4236_v33  ;;  %v4865_v2 = vld [vmem:[%s7206_s21 + $0x10] sm:$0xf0]  ;;  %v4863_v3 = vld [vmem:[%s7206_s21 + $0x4] sm:$0xf]  ;;  %v4189_v4 = vld [vmem:[%s7206_s21 + $0xc] sm:$0xf0]  ;;  %v4188_v5 = vor.u32 %v4864_v0, %v4187_v63 }
 0x1d0   :  { %830 = vmatpush.bf16.msra.mxu2 %v4244_v34  ;;  %801 = vmatpush.bf16.msra.mxu1 %v4240_v35  ;;  %v579_v6 = vld [vmem:[%s7207_s27] sm:$0xff]  ;;  %v580_v7 = vld [vmem:[%s7207_s27 + $0x8] sm:$0xff]  ;;  %v4196_v8 = vor.u32 %v4865_v2, %v4195_v1  ;;  %v4192_v9 = vor.u32 %v4863_v3, %v4189_v4  ;;  %v581_v11 = vld [vmem:[%s7207_s27 + $0x10] sm:$0xff]  ;;  %s7220_s26 = sld [smem:[#allocation65_spill]]  ;;  %s5838_s15 = sshra.s32 %s4118_s9, 4  ;;  %s5839_s15 = int_to_ptr.hbm [resolvable:$true] %s5838_s15 }
 0x1d1   :  { %v637_v10 = vpack.c.bf16 %v580_v7, %v579_v6  ;;  %v582_v12 = vld [vmem:[%s7207_s27 + $0x18] sm:$0xff]  ;;  %v583_v14 = vld [vmem:[%s7207_s27 + $0x20] sm:$0xff]  ;;  %v584_v15 = vld [vmem:[%s7207_s27 + $0x28] sm:$0xff]  ;;  %s7221_s25 = sld [smem:[#allocation69_spill]]  ;;  %s5840_s30 = scalar_lea.hbm %s5839_s15, 2 }
 0x1d2   :  { %v638_v13 = vpack.c.bf16 %v582_v12, %v581_v11  ;;  %v639_v16 = vpack.c.bf16 %v584_v15, %v583_v14  ;;  %v585_v17 = vld [vmem:[%s7207_s27 + $0x30] sm:$0xff]  ;;  %v586_v18 = vld [vmem:[%s7207_s27 + $0x38] sm:$0xff]  ;;  %v634_v35 = vld [vmem:[%s7208_s4 + $0x68] sm:$0xff]  ;;  %s7226_s12 = sld [smem:[#allocation67_spill]]  ;;  %p5841_p9 = scmp.ne.s32.totalorder %s5839_s15, %s5840_s30 }
 0x1d3   :  { %773 = vmatpush.bf16.msra.mxu0 %v4224_v42  ;;  %v640_v19 = vpack.c.bf16 %v586_v18, %v585_v17  ;;  %v636_v32 = vld [vmem:[%s7208_s4 + $0x78] sm:$0xff]  ;;  %v635_v34 = vld [vmem:[%s7208_s4 + $0x70] sm:$0xff]  ;;  %v633_v36 = vld [vmem:[%s7208_s4 + $0x60] sm:$0xff]  ;;  %s7227_s29 = sld [smem:[#allocation68_spill]]  ;;  %p5843_p10 = scmp.lt.s32.totalorder %s5839_s15, %s6203_s6 }
 0x1d4   :  { %831 = vmatpush.bf16.msra.mxu2 %v4232_v44  ;;  %802 = vmatpush.bf16.msra.mxu1 %v4228_v45  ;;  %v632_v39 = vld [vmem:[%s7208_s4 + $0x58] sm:$0xff]  ;;  %v631_v42 = vld [vmem:[%s7208_s4 + $0x50] sm:$0xff]  ;;  %v630_v43 = vld [vmem:[%s7208_s4 + $0x48] sm:$0xff]  ;;  %v6464_v44 = vshrl.u32 %v856_v40, 7  ;;  %s7228_s3 = sld [smem:[#allocation70_spill]] }
 0x1d5   :  { %1144 = vmatpush.msra.mxu3 %v636_v32  ;;  %v629_v45 = vld [vmem:[%s7208_s4 + $0x40] sm:$0xff]  ;;  %v628_v46 = vld [vmem:[%s7208_s4 + $0x38] sm:$0xff]  ;;  %v627_v48 = vld [vmem:[%s7208_s4 + $0x30] sm:$0xff]  ;;  %s7229_s2 = sld [smem:[#allocation73_spill]] }
 0x1d6   :  { %v861_v49 = vadd.s32 32, %v6464_v44  ;;  %v6473_v50 = vadd.s32 24, %v6464_v44  ;;  %v625_v55 = vld [vmem:[%s7208_s4 + $0x20] sm:$0xff]  ;;  %v623_v7 = vld [vmem:[%s7208_s4 + $0x10] sm:$0xff]  ;;  %v864_v15 = vadd.s32 56, %v6464_v44  ;;  %s7238_s7 = sld [smem:[#allocation74_spill]] }
 0x1d7   :  { %774 = vmatpush.bf16.msra.mxu0 %v4212_v51  ;;  %1145 = vmatpush.msra.mxu3 %v635_v34  ;;  %s7239_s8 = sld [smem:[#allocation76_spill]] }
 0x1d8   :  { %832 = vmatpush.bf16.msra.mxu2 %v4220_v52  ;;  %803 = vmatpush.bf16.msra.mxu1 %v4216_v53  ;;  %v626_v53 = vld [vmem:[%s7208_s4 + $0x28] sm:$0xff]  ;;  %v897_v57 = vand.u32 31, %v861_v49  ;;  %v890_v58 = vand.u32 31, %v6473_v50  ;;  %s7240_s19 = sld [smem:[#allocation77_spill]] }
 0x1d9   :  { %1146 = vmatpush.msra.mxu3 %v634_v35  ;;  %s7245_s10 = sld [smem:[#allocation80_spill]] }
 0x1da   :  { %vm6497_vm2 = vcmp.ne.s32.totalorder %v897_v57, 0  ;;  %vm6501_vm3 = vcmp.ne.s32.totalorder %v890_v58, 31 }
 0x1db   :  { %775 = vmatpush.bf16.msra.mxu0 %v4200_v60  ;;  %1147 = vmatpush.msra.mxu3 %v633_v36 }
 0x1dc   :  { %833 = vmatpush.bf16.msra.mxu2 %v4208_v61  ;;  %804 = vmatpush.bf16.msra.mxu1 %v4204_v62  ;;  %v869_v61 = vand.u32 31, %v6464_v44  ;;  %v624_v62 = vld [vmem:[%s7208_s4 + $0x18] sm:$0xff] }
 0x1dd   :  { %1148 = vmatpush.msra.mxu3 %v632_v39  ;;  %v918_v39 = vand.u32 31, %v864_v15 }
 0x1de   :  { %vm6506_vm4 = vcmp.ne.s32.totalorder %v869_v61, 0 }
 0x1df   :  { %776 = vmatpush.bf16.msra.mxu0 %v4188_v5  ;;  %1149 = vmatpush.msra.mxu3 %v631_v42  ;;  %vm6551_vm5 = vcmp.ne.s32.totalorder %v918_v39, 31 }
 0x1e0   :  { %834 = vmatpush.bf16.msra.mxu2 %v4196_v8  ;;  %805 = vmatpush.bf16.msra.mxu1 %v4192_v9 }
 0x1e1   :  { %1150 = vmatpush.msra.mxu3 %v630_v43 }
 0x1e2   :  { %777 = vmatmul.bf16.vlgmr.msra.gmra.mxu0 %v637_v10 }
 0x1e3   :  { %835 = vmatmul.bf16.vlgmr.msra.gmra.mxu2 %v637_v10  ;;  %806 = vmatmul.bf16.vlgmr.msra.gmra.mxu1 %v637_v10 }
 0x1e4   :  { %1151 = vmatpush.msra.mxu3 %v629_v45 }
 0x1e6   :  { %1152 = vmatpush.msra.mxu3 %v628_v46 }
 0x1e8   :  { %1153 = vmatpush.msra.mxu3 %v627_v48 }
 0x1ea   :  { %1154 = vmatpush.msra.mxu3 %v626_v53 }
 0x1ec   :  { %1155 = vmatpush.msra.mxu3 %v625_v55 }
 0x1ee   :  { %1156 = vmatpush.msra.mxu3 %v624_v62 }
 0x1f0   :  { %1157 = vmatpush.msra.mxu3 %v623_v7 }
 0x1f2   :  { %782 = vmatmul.bf16.gmra.mxu0 %v638_v13 }
 0x1f3   :  { %840 = vmatmul.bf16.gmra.mxu2 %v638_v13  ;;  %811 = vmatmul.bf16.gmra.mxu1 %v638_v13 }
 0x202   :  { %787 = vmatmul.bf16.gmra.mxu0 %v639_v16 }
 0x203   :  { %845 = vmatmul.bf16.gmra.mxu2 %v639_v16  ;;  %816 = vmatmul.bf16.gmra.mxu1 %v639_v16  ;;  %v622_v16 = vld [vmem:[%s7208_s4 + $0x8] sm:$0xff] }
 0x204   :  { %1158 = vmatpush.msra.mxu3 %v622_v16 }
 0x212   :  { %792 = vmatmul.bf16.gmra.mxu0 %v640_v19 }
 0x213   :  { %850 = vmatmul.bf16.gmra.mxu2 %v640_v19  ;;  %821 = vmatmul.bf16.gmra.mxu1 %v640_v19 }
 0x25f   :  { %v6425_v20 = vpop.f32.mrf.mxu0 }
 0x260   :  { %v6427_v21 = vpop.f32.mrf.mxu1  ;;  %v988_v59 = vrot.slane %v6425_v20, 7 }
 0x266   :  { %v6429_v22 = vpop.f32.mrf.mxu2 }
 0x267   :  { %v6431_v23 = vpop.f32.mrf.mxu0  ;;  %v1052_v63 = vrot.slane %v6429_v22, 1 }
 0x268   :  { %v6433_v24 = vpop.f32.mrf.mxu1  ;;  %v989_v54 = vrot.slane %v6431_v23, 7 }
 0x26a   :  { %v990_v3 = vsel %vm987_vm0, %v988_v59, %v989_v54 }
 0x26b   :  { %v1036_v17 = vadd.f32 %v990_v3, %v6433_v24 }
 0x26e   :  { %v6435_v25 = vpop.f32.mrf.mxu2 }
 0x26f   :  { %v6437_v26 = vpop.f32.mrf.mxu0  ;;  %v1053_v0 = vrot.slane %v6435_v25, 1 }
 0x270   :  { %v6439_v27 = vpop.f32.mrf.mxu1  ;;  %v991_v56 = vrot.slane %v6437_v26, 7 }
 0x271   :  { %v1054_v18 = vsel %vm1051_vm1, %v1052_v63, %v1053_v0 }
 0x272   :  { %v992_v8 = vsel %vm987_vm0, %v989_v54, %v991_v56 }
 0x273   :  { %v1037_v24 = vadd.f32 %v992_v8, %v6439_v27 }
 0x276   :  { %v6441_v28 = vpop.f32.mrf.mxu2 }
 0x277   :  { %v6443_v29 = vpop.f32.mrf.mxu0  ;;  %v1055_v60 = vrot.slane %v6441_v28, 1 }
 0x278   :  { %v6445_v30 = vpop.f32.mrf.mxu1  ;;  %v993_v4 = vrot.slane %v6443_v29, 7 }
 0x279   :  { %v1056_v12 = vsel %vm1051_vm1, %v1053_v0, %v1055_v60 }
 0x27a   :  { %v994_v25 = vsel %vm987_vm0, %v991_v56, %v993_v4  ;;  %v6524_v32 = vadd.f32 %v1056_v12, %v1036_v17 }
 0x27b   :  { %v1038_v40 = vadd.f32 %v994_v25, %v6445_v30 }
 0x27c   :  { %v1123_v30 = vmul.f32 %v6524_v32, %v6524_v32 }
 0x27e   :  { %v6447_v31 = vpop.f32.mrf.mxu2 }
 0x27f   :  { %v6450_v33 = vpop.f32.mrf.mxu0  ;;  %v1057_v5 = vrot.slane %v6447_v31, 1  ;;  %v621_v31 = vld [vmem:[%s7208_s4] sm:$0xff] }
 0x280   :  { %v6455_v37 = vpop.f32.mrf.mxu1  ;;  %v995_v1 = vrot.slane %v6450_v33, 7  ;;  %1159 = vmatpush.msra.mxu3 %v621_v31 }
 0x281   :  { %v1058_v26 = vsel %vm1051_vm1, %v1055_v60, %v1057_v5 }
 0x282   :  { %v996_v19 = vsel %vm987_vm0, %v993_v4, %v995_v1  ;;  %v6535_v27 = vadd.f32 %v1058_v26, %v1037_v24 }
 0x283   :  { %v1031_v35 = vsel %vm6497_vm2, %v996_v19, 0.0 }
 0x286   :  { %v6457_v38 = vpop.f32.mrf.mxu2 }
 0x287   :  { %v6460_v41 = vpop.f32.mrf.mxu0  ;;  %v1059_v2 = vrot.slane %v6457_v38, 1 }
 0x288   :  { %v6475_v51 = vpop.f32.mrf.mxu1  ;;  %v997_v33 = vrot.slane %v6460_v41, 7 }
 0x289   :  { %v1060_v20 = vsel %vm1051_vm1, %v1057_v5, %v1059_v2 }
 0x28a   :  { %v1096_v36 = vsel %vm6501_vm3, %v1060_v20, 0.0 }
 0x28b   :  { %v6542_v48 = vadd.f32 %v1096_v36, %v1038_v40  ;;  %v5958_v40 = vmov 2048.0  }
 0x28c   :  { %5152 = vrcp.f32 %v5958_v40 }
 0x28d   :  { %v1125_v62 = vmul.f32 %v6542_v48, %v6542_v48 }
 0x28e   :  { %v6468_v47 = vpop.f32.mrf.mxu2 }
 0x28f   :  { %v6477_v52 = vpop.f32.mrf.mxu0  ;;  %v1061_v28 = vrot.slane %v6468_v47, 1  ;;  %v1039_v47 = vadd.f32 %v1031_v35, %v6455_v37  ;;  %v1124_v37 = vmul.f32 %v6535_v27, %v6535_v27 }
 0x290   :  { %v822_v23 = vpop.f32.mrf.mxu1  ;;  %v999_v42 = vrot.slane %v6477_v52, 7 }
 0x291   :  { %v1062_v43 = vsel %vm1051_vm1, %v1059_v2, %v1061_v28 }
 0x292   :  { %v6557_v55 = vadd.f32 %v1062_v43, %v1039_v47  ;;  %v1000_v56 = vsel %vm987_vm0, %v997_v33, %v999_v42 }
 0x293   :  { %v1041_v3 = vadd.f32 %v1000_v56, %v822_v23 }
 0x296   :  { %v851_v6 = vpop.f32.mrf.mxu2 }
 0x297   :  { %v795_v11 = vpop.f32.mrf.mxu0  ;;  %v1063_v41 = vrot.slane %v851_v6, 1  ;;  %v1126_v6 = vmul.f32 %v6557_v55, %v6557_v55 }
 0x298   :  { %v978_v14 = vrot.slane %v795_v11, 7  ;;  %v824_v0 = vpop.f32.mrf.mxu1 }
 0x299   :  { %v1064_v57 = vsel %vm1051_vm1, %v1061_v28, %v1063_v41 }
 0x29a   :  { %v1010_v29 = vsel %vm987_vm0, %v978_v14, %v988_v59 }
 0x29b   :  { %v1027_v34 = vsel %vm6506_vm4, %v1010_v29, 0.0 }
 0x29c   :  { %v1035_v38 = vadd.f32 %v1027_v34, %v6427_v21  ;;  %v998_v21 = vsel %vm987_vm0, %v995_v1, %v997_v33  ;;  %v1001_v1 = vsel %vm987_vm0, %v999_v42, %v978_v14  ;;  %v5153_v42 = vpop.eup %5152 }
 0x29d   :  { %v1040_v58 = vadd.f32 %v998_v21, %v6475_v51  ;;  %vm1169_vm6 = vweird.f32 %v5153_v42 }
 0x29e   :  { %v6539_v45 = vadd.f32 %v1054_v18, %v1035_v38  ;;  %v853_v46 = vpop.f32.mrf.mxu2 }
 0x29f   :  { %v1065_v49 = vrot.slane %v853_v46, 1  ;;  %v6570_v4 = vadd.f32 %v1064_v57, %v1040_v58 }
 0x2a0   :  { %v1109_v52 = vadd.f32 %v6524_v32, %v6539_v45  ;;  %v1122_v53 = vmul.f32 %v6539_v45, %v6539_v45 }
 0x2a1   :  { %v1076_v61 = vsel %vm1051_vm1, %v1065_v49, %v1052_v63  ;;  %v1066_v2 = vsel %vm1051_vm1, %v1063_v41, %v1065_v49  ;;  %v1042_v63 = vadd.f32 %v1001_v1, %v824_v0  ;;  %v1127_v10 = vmul.f32 %v6570_v4, %v6570_v4  ;;  %v619_v1 = vld [vmem:[%s7217_s16] sm:$0x1] }
 0x2a2   :  { %v1110_v59 = vadd.f32 %v1109_v52, %v6535_v27  ;;  %v1130_v60 = vadd.f32 %v1123_v30, %v1122_v53  ;;  %v1100_v22 = vsel %vm6551_vm5, %v1076_v61, 0.0  ;;  %v6577_v7 = vadd.f32 %v1066_v2, %v1041_v3 }
 0x2a3   :  { %v6582_v11 = vadd.f32 %v1100_v22, %v1042_v63  ;;  %v1165_v41 = vmul.f32 2048.0, %v5153_v42 }
 0x2a4   :  { %v1131_v5 = vadd.f32 %v1130_v60, %v1124_v37  ;;  %v1111_v51 = vadd.f32 %v1110_v59, %v6542_v48  ;;  %v1128_v15 = vmul.f32 %v6577_v7, %v6577_v7 }
 0x2a5   :  { %v1129_v17 = vmul.f32 %v6582_v11, %v6582_v11  ;;  %v1166_v43 = vsub.f32 1.0, %v1165_v41 }
 0x2a6   :  { %v1112_v8 = vadd.f32 %v1111_v51, %v6557_v55  ;;  %v1132_v9 = vadd.f32 %v1131_v5, %v1125_v62 }
 0x2a7   :  { %v1167_v46 = vmul.f32 %v5153_v42, %v1166_v43 }
 0x2a8   :  { %v1113_v12 = vadd.f32 %v1112_v8, %v6570_v4  ;;  %v1133_v13 = vadd.f32 %v1132_v9, %v1126_v6  ;;  %v620_v6 = vld [vmem:[%s7218_s0] sm:$0x1] }
 0x2a9   :  { %v1168_v47 = vadd.f32 %v5153_v42, %v1167_v46 }
 0x2aa   :  { %v1114_v14 = vadd.f32 %v1113_v12, %v6577_v7  ;;  %v1134_v16 = vadd.f32 %v1133_v13, %v1127_v10 }
 0x2ab   :  { %v1170_v21 = vsel %vm1169_vm6, %v5153_v42, %v1168_v47 }
 0x2ac   :  { %v1135_v18 = vadd.f32 %v1134_v16, %v1128_v15  ;;  %v1115_v19 = vadd.f32 %v1114_v14, %v6582_v11 }
 0x2ae   :  { %v1116_v20 = vrot.slane %v1115_v19, 4  ;;  %v1136_v23 = vadd.f32 %v1135_v18, %v1129_v17 }
 0x2b0   :  { %v1117_v25 = vadd.f32 %v1116_v20, %v1115_v19  ;;  %v1137_v26 = vrot.slane %v1136_v23, 4 }
 0x2b2   :  { %v1118_v28 = vrot.slane %v1117_v25, 2  ;;  %v1138_v29 = vadd.f32 %v1137_v26, %v1136_v23 }
 0x2b4   :  { %v1119_v31 = vadd.f32 %v1118_v28, %v1117_v25  ;;  %v1139_v24 = vrot.slane %v1138_v29, 2 }
 0x2b6   :  { %v1120_v33 = vrot.slane %v1119_v31, 1  ;;  %v1140_v34 = vadd.f32 %v1139_v24, %v1138_v29  ;;  %v4894_v29 = vld [vmem:[#allocation2 + $0x38] sm:$0xff] }
 0x2b7   :  { %1392 = vmatpush.bf16.msrb.mxu3 %v4894_v29 }
 0x2b8   :  { %v1141_v35 = vrot.slane %v1140_v34, 1  ;;  %v1121_v36 = vadd.f32 %v1120_v33, %v1119_v31 }
 0x2ba   :  { %v1142_v38 = vadd.f32 %v1141_v35, %v1140_v34 }
 0x2bc   :  { %v1143_v39 = vsel %vm987_vm0, %v1121_v36, %v1142_v38 }
 0x2bd   :  { %1160 = vmatmul.f32.vlgmr.msra.gmra.mxu3 %v1143_v39 }
 0x340   :  { %v1161_v49 = vpop.f32.mrf.mxu3 }
 0x341   :  { %v1171_v30 = vmul.f32 %v1170_v21, %v1161_v49 }
 0x343   :  { %v1172_v52 = vmul.f32 %v1171_v30, %v1171_v30 }
 0x345   :  { %v1174_v53 = vrot.slane %v1172_v52, 7 }
 0x347   :  { %v1176_v54 = vsub.f32 %v1171_v30, %v1174_v53 }
 0x349   :  { %v1177_v37 = vmax.f32 %v1176_v54, 0.0 }
 0x34b   :  { %v1178_v56 = vadd.f32 1e-05, %v1177_v37 }
 0x34d   :  { %5154 = vrsqrt.f32 %v1178_v56  ;;  %vm1185_vm8 = vweird.f32 %v1178_v56 }
 0x353   :  { %v5155_v57 = vpop.eup %5154 }
 0x354   :  { %v1180_v58 = vmul.f32 %v5155_v57, %v1178_v56  ;;  %vm1186_vm7 = vweird.f32 %v5155_v57 }
 0x355   :  { %vm1187_vm9 = vmor %vm1185_vm8, %vm1186_vm7 }
 0x356   :  { %v1181_v59 = vmul.f32 %v5155_v57, %v1180_v58 }
 0x358   :  { %v1182_v60 = vmul.f32 0.5, %v1181_v59 }
 0x35a   :  { %v1183_v61 = vsub.f32 1.5, %v1182_v60 }
 0x35c   :  { %v1184_v62 = vmul.f32 %v5155_v57, %v1183_v61 }
 0x35e   :  { %v1188_v0 = vsel %vm1187_vm9, %v5155_v57, %v1184_v62 }
 0x35f   :  { %1190 = vst [vmem:[#allocation1] sm:$0xff] %v1188_v0  ;;  %v4893_v0 = vld [vmem:[#allocation2 + $0x30] sm:$0xff] }
 0x360   :  { %1393 = vmatpush.bf16.msrb.mxu3 %v4893_v0 }
 0x366   :  { %v1192_v2 = vld [vmem:[#allocation1 + $0x1] ss:$9 sm:$0xff] }
 0x367   :  { %v1194_v3 = vmul.f32 %v1192_v2, %v619_v1  ;;  %v4892_v1 = vld [vmem:[#allocation2 + $0x28] sm:$0xff]  ;;  %v4889_v2 = vld [vmem:[#allocation2 + $0x10] sm:$0xff] }
 0x368   :  { %1394 = vmatpush.bf16.msrb.mxu3 %v4892_v1 }
 0x369   :  { %v1198_v5 = vperm.slane %v1194_v3, 0  ;;  %v1195_v51 = vmul.f32 %v1194_v3, %v1171_v30 }
 0x36b   :  { %1199 = vrot.lane.b32.xlu0 %v1198_v5, %s5927_s23  ;;  %v1196_v22 = vsub.f32 %v620_v6, %v1195_v51  ;;  %v4887_v5 = vld [vmem:[#allocation2] sm:$0xff] }
 0x36d   :  { %v1229_v63 = vperm.slane %v1196_v22, 0 }
 0x373   :  { %1230 = vrot.lane.b32.xlu0 %v1229_v63, %s5927_s23  ;;  %s5960_s23 = smov 32  }
 0x3dd   :  { %v1200_v8 = vpop.permute.xlu0 %1199 }
 0x3de   :  { %v1203_v9 = vsel %vm1202_vm10, %v1194_v3, %v1200_v8  ;;  %v4888_v3 = vld [vmem:[#allocation2 + $0x8] sm:$0xff] }
 0x3df   :  { %1205 = vrot.lane.b32.xlu1 %v1203_v9, %s5934_s28 }
 0x3e5   :  { %v1231_v10 = vpop.permute.xlu0 %1230 }
 0x3e6   :  { %v1233_v12 = vsel %vm1202_vm10, %v1196_v22, %v1231_v10 }
 0x3e7   :  { %1235 = vrot.lane.b32.xlu1 %v1233_v12, %s5934_s28 }
 0x451   :  { %v1206_v13 = vpop.permute.xlu1 %1205 }
 0x452   :  { %v1209_v14 = vsel %vm1208_vm11, %v1203_v9, %v1206_v13 }
 0x453   :  { %1211 = vrot.lane.b32.xlu2 %v1209_v14, %s5959_s18 }
 0x459   :  { %v1236_v15 = vpop.permute.xlu1 %1235 }
 0x45a   :  { %v1238_v16 = vsel %vm1208_vm11, %v1233_v12, %v1236_v15 }
 0x45b   :  { %1240 = vrot.lane.b32.xlu2 %v1238_v16, %s5959_s18 }
 0x4ad   :  { %v1212_v17 = vpop.permute.xlu2 %1211 }
 0x4ae   :  { %v1215_v18 = vsel %vm1214_vm12, %v1209_v14, %v1212_v17 }
 0x4af   :  { %1217 = vrot.lane.b32.xlu0 %v1215_v18, %s5960_s23 }
 0x4b5   :  { %v1241_v19 = vpop.permute.xlu2 %1240 }
 0x4b6   :  { %v1243_v20 = vsel %vm1214_vm12, %v1238_v16, %v1241_v19 }
 0x4b7   :  { %1245 = vrot.lane.b32.xlu1 %v1243_v20, %s5960_s23 }
 0x521   :  { %v1218_v23 = vpop.permute.xlu0 %1217 }
 0x522   :  { %v1221_v25 = vsel %vm1220_vm13, %v1215_v18, %v1218_v23 }
 0x523   :  { %1223 = vrot.lane.b32.xlu2 %v1221_v25, %s5926_s22 }
 0x529   :  { %v1246_v26 = vpop.permute.xlu1 %1245 }
 0x52a   :  { %v1248_v28 = vsel %vm1220_vm13, %v1243_v20, %v1246_v26 }
 0x52b   :  { %1250 = vrot.lane.b32.xlu0 %v1248_v28, %s5926_s22 }
 0x57d   :  { %v1224_v31 = vpop.permute.xlu2 %1223 }
 0x57e   :  { %v1227_v24 = vsel %vm1226_vm14, %v1221_v25, %v1224_v31 }
 0x57f   :  { %v1254_v33 = vperm.slane %v1227_v24, 0 }
 0x581   :  { %v1259_v36 = vmul.f32 %v1254_v33, %v6557_v55  ;;  %v1260_v39 = vmul.f32 %v1254_v33, %v6570_v4  ;;  %v1257_v40 = vmul.f32 %v1254_v33, %v6535_v27  ;;  %v1258_v42 = vmul.f32 %v1254_v33, %v6542_v48 }
 0x582   :  { %v1255_v41 = vmul.f32 %v1254_v33, %v6539_v45  ;;  %v1256_v43 = vmul.f32 %v1254_v33, %v6524_v32  ;;  %v1261_v27 = vmul.f32 %v1254_v33, %v6577_v7  ;;  %v1262_v48 = vmul.f32 %v1254_v33, %v6582_v11  ;;  %v4891_v7 = vld [vmem:[#allocation2 + $0x20] sm:$0xff]  ;;  %v4890_v11 = vld [vmem:[#allocation2 + $0x18] sm:$0xff] }
 0x583   :  { %1395 = vmatpush.bf16.msrb.mxu3 %v4891_v7 }
 0x587   :  { %1396 = vmatpush.bf16.msrb.mxu3 %v4890_v11 }
 0x58b   :  { %1397 = vmatpush.bf16.msrb.mxu3 %v4889_v2 }
 0x58f   :  { %1398 = vmatpush.bf16.msrb.mxu3 %v4888_v3 }
 0x593   :  { %1399 = vmatpush.bf16.msrb.mxu3 %v4887_v5 }
 0x59d   :  { %v1251_v34 = vpop.permute.xlu0 %1250 }
 0x59e   :  { %v1253_v35 = vsel %vm1226_vm14, %v1248_v28, %v1251_v34 }
 0x59f   :  { %v1263_v38 = vperm.slane %v1253_v35, 0 }
 0x5a1   :  { %v1268_v46 = vadd.f32 %v1263_v38, %v1259_v36  ;;  %v1269_v47 = vadd.f32 %v1263_v38, %v1260_v39  ;;  %v1266_v21 = vadd.f32 %v1263_v38, %v1257_v40  ;;  %v1267_v49 = vadd.f32 %v1263_v38, %v1258_v42 }
 0x5a2   :  { %v1264_v30 = vadd.f32 %v1263_v38, %v1255_v41  ;;  %v1265_v52 = vadd.f32 %v1263_v38, %v1256_v43  ;;  %v1270_v32 = vadd.f32 %v1263_v38, %v1261_v27  ;;  %v1271_v59 = vadd.f32 %v1263_v38, %v1262_v48 }
 0x5a3   :  { %v1276_v53 = vmax.f32 %v1268_v46, 0.0  ;;  %v1277_v54 = vmax.f32 %v1269_v47, 0.0  ;;  %v1274_v55 = vmax.f32 %v1266_v21, 0.0  ;;  %v1275_v37 = vmax.f32 %v1267_v49, 0.0 }
 0x5a4   :  { %v1272_v56 = vmax.f32 %v1264_v30, 0.0  ;;  %v1273_v4 = vmax.f32 %v1265_v52, 0.0  ;;  %v1278_v60 = vmax.f32 %v1270_v32, 0.0  ;;  %v1279_v61 = vmax.f32 %v1271_v59, 0.0  ;;  %v4906_v32 = vld [vmem:[%s7219_s17 + $0x4c] sm:$0xf] }
 0x5a5   :  { %v5126_v57 = vpack.i.bf16 %v1277_v54, %v1276_v53  ;;  %v5121_v45 = vpack.i.bf16 %v1275_v37, %v1274_v55 }
 0x5a6   :  { %v5116_v58 = vpack.i.bf16 %v1273_v4, %v1272_v56  ;;  %v5131_v62 = vpack.i.bf16 %v1279_v61, %v1278_v60 }
 0x5a7   :  { %5127 = vrot.lane.b32.xlu0 %v5126_v57, %s5961_s13  ;;  %5122 = vrot.lane.b32.xlu2 %v5121_v45, %s5961_s13  ;;  %v4361_v45 = vld [vmem:[%s7219_s17 + $0x48] sm:$0xf] }
 0x5a8   :  { %5117 = vrot.lane.b32.xlu1 %v5116_v58, %s5961_s13  ;;  %v4907_v58 = vld [vmem:[%s7219_s17 + $0x50] sm:$0xf0] }
 0x5b0   :  { %5132 = vrot.lane.b32.xlu1 %v5131_v62, %s5961_s13 }
 0x601   :  { %v5123_v10 = vpop.permute.xlu2 %5122 }
 0x602   :  { %v5125_v12 = vunpack.i.h.bf16 %v5123_v10  ;;  %v5124_v13 = vunpack.i.l.bf16 %v5123_v10 }
 0x604   :  { %v1334_v14 = vmax.f32 %v1274_v55, %v5124_v13  ;;  %v1335_v15 = vmax.f32 %v1275_v37, %v5125_v12  ;;  %v4895_v12 = vld [vmem:[%s7220_s26] sm:$0xff]  ;;  %v4896_v13 = vld [vmem:[%s7220_s26 + $0x8] sm:$0xff] }
 0x606   :  { %v1341_v16 = vpack.c.bf16 %v1335_v15, %v1334_v14  ;;  %v4349_v14 = vld [vmem:[%s7219_s17 + $0x30] sm:$0xf]  ;;  %v4904_v15 = vld [vmem:[%s7219_s17 + $0x38] sm:$0xf0] }
 0x619   :  { %v5128_v17 = vpop.permute.xlu0 %5127 }
 0x61a   :  { %v5118_v51 = vpop.permute.xlu1 %5117  ;;  %v5130_v18 = vunpack.i.h.bf16 %v5128_v17  ;;  %v5129_v19 = vunpack.i.l.bf16 %v5128_v17  ;;  %v4350_v17 = vor.u32 %v4904_v15, %v4349_v14 }
 0x61b   :  { %v5120_v6 = vunpack.i.h.bf16 %v5118_v51  ;;  %v5119_v22 = vunpack.i.l.bf16 %v5118_v51 }
 0x61c   :  { %v1336_v20 = vmax.f32 %v1276_v53, %v5129_v19  ;;  %v1337_v23 = vmax.f32 %v1277_v54, %v5130_v18  ;;  %v4351_v18 = vld [vmem:[%s7219_s17 + $0x3c] sm:$0xf0]  ;;  %v4357_v19 = vld [vmem:[%s7219_s17 + $0x38] sm:$0xf] }
 0x61d   :  { %v1333_v63 = vmax.f32 %v1273_v4, %v5120_v6  ;;  %v1332_v8 = vmax.f32 %v1272_v56, %v5119_v22  ;;  %v4369_v22 = vld [vmem:[%s7219_s17 + $0x50] sm:$0xf] }
 0x61e   :  { %v1342_v25 = vpack.c.bf16 %v1337_v23, %v1336_v20  ;;  %v4905_v20 = vld [vmem:[%s7219_s17 + $0x40] sm:$0xf0] }
 0x61f   :  { %v1340_v9 = vpack.c.bf16 %v1333_v63, %v1332_v8  ;;  %v4908_v63 = vld [vmem:[%s7219_s17 + $0x58] sm:$0xf0] }
 0x621   :  { %1400 = vmatmul.bf16.vlgmr.msrb.gmra.mxu3 %v1340_v9  ;;  %v4370_v9 = vor.u32 %v4908_v63, %v4369_v22  ;;  %v859_v63 = vadd.s32 16, %v6464_v44 }
 0x622   :  { %v5133_v26 = vpop.permute.xlu1 %5132 }
 0x623   :  { %v5135_v28 = vunpack.i.h.bf16 %v5133_v26  ;;  %v5134_v29 = vunpack.i.l.bf16 %v5133_v26  ;;  %v4337_v26 = vld [vmem:[%s7219_s17 + $0x18] sm:$0xf]  ;;  %v1682_v15 = vand.u32 15, %v859_v63 }
 0x625   :  { %v1338_v31 = vmax.f32 %v1278_v60, %v5134_v29  ;;  %v1339_v24 = vmax.f32 %v1279_v61, %v5135_v28  ;;  %v4362_v60 = vor.u32 %v4907_v58, %v4361_v45  ;;  %v4363_v61 = vld [vmem:[%s7219_s17 + $0x54] sm:$0xf0]  ;;  %v4901_v28 = vld [vmem:[%s7219_s17 + $0x20] sm:$0xf0]  ;;  %v4900_v29 = vld [vmem:[%s7219_s17 + $0x1c] sm:$0xf] }
 0x626   :  { %v4366_v1 = vor.u32 %v4906_v32, %v4363_v61  ;;  %v1529_v58 = vld [vmem:[%s7221_s25 + $0x50] sm:$0xff]  ;;  %v1528_v32 = vld [vmem:[%s7221_s25 + $0x48] sm:$0xff]  ;;  %v1526_v61 = vld [vmem:[%s7221_s25 + $0x38] sm:$0xff]  ;;  %vm6694_vm2 = vcmp.ne.s32.totalorder %v1682_v15, 0 }
 0x627   :  { %v1343_v33 = vpack.c.bf16 %v1339_v24, %v1338_v31  ;;  %1611 = vmatpush.bf16.msrb.mxu1 %v4362_v60  ;;  %v4338_v31 = vor.u32 %v4901_v28, %v4337_v26  ;;  %v4339_v24 = vld [vmem:[%s7219_s17 + $0x24] sm:$0xf0]  ;;  %v1689_v26 = vand.u32 15, %v6473_v50 }
 0x628   :  { %1630 = vmatpush.bf16.msrb.mxu2 %v4366_v1  ;;  %v1525_v1 = vld [vmem:[%s7221_s25 + $0x30] sm:$0xff] }
 0x629   :  { %vm1719_vm4 = vcmp.ne.s32.totalorder %v1689_v26, 15 }
 0x62b   :  { %1612 = vmatpush.bf16.msrb.mxu1 %v4350_v17 }
 0x62f   :  { %1613 = vmatpush.bf16.msrb.mxu1 %v4338_v31 }
 0x631   :  { %1405 = vmatmul.bf16.gmra.mxu3 %v1341_v16  ;;  %v4903_v16 = vld [vmem:[%s7219_s17 + $0x34] sm:$0xf] }
 0x632   :  { %v4354_v23 = vor.u32 %v4903_v16, %v4351_v18  ;;  %v1668_v16 = vand.u32 15, %v6464_v44 }
 0x634   :  { %1631 = vmatpush.bf16.msrb.mxu2 %v4354_v23  ;;  %vm1712_vm3 = vcmp.ne.s32.totalorder %v1668_v16, 0 }
 0x641   :  { %1410 = vmatmul.bf16.gmra.mxu3 %v1342_v25  ;;  %v4358_v25 = vor.u32 %v4905_v20, %v4357_v19 }
 0x651   :  { %1415 = vmatmul.bf16.gmra.mxu3 %v1343_v33  ;;  %v4345_v33 = vld [vmem:[%s7219_s17 + $0x20] sm:$0xf] }
 0x6a4   :  { %v1401_v34 = vpop.f32.mrf.mxu3 }
 0x6a5   :  { %v1429_v46 = vrot.slane %v1401_v34, 1 }
 0x6ac   :  { %v1403_v35 = vpop.f32.mrf.mxu3 }
 0x6ad   :  { %v1430_v62 = vrot.slane %v1403_v35, 1 }
 0x6af   :  { %v1431_v5 = vsel %vm1051_vm1, %v1429_v46, %v1430_v62 }
 0x6b0   :  { %v1454_v8 = vmax.f32 %v1401_v34, %v1431_v5  ;;  %v4902_v34 = vld [vmem:[%s7219_s17 + $0x28] sm:$0xf0]  ;;  %v6680_v5 = vadd.s32 8, %v6464_v44 }
 0x6b4   :  { %v1406_v36 = vpop.f32.mrf.mxu3 }
 0x6b5   :  { %v1432_v4 = vrot.slane %v1406_v36, 1 }
 0x6b7   :  { %v1433_v2 = vsel %vm1051_vm1, %v1430_v62, %v1432_v4 }
 0x6b8   :  { %v1455_v6 = vmax.f32 %v1403_v35, %v1433_v2  ;;  %v4342_v35 = vor.u32 %v4900_v29, %v4339_v24  ;;  %v1522_v2 = vld [vmem:[%s7221_s25 + $0x18] sm:$0xff] }
 0x6ba   :  { %v1462_v10 = vpack.c.bf16 %v1455_v6, %v1454_v8  ;;  %1632 = vmatpush.bf16.msrb.mxu2 %v4342_v35  ;;  %v1520_v8 = vld [vmem:[%s7221_s25 + $0x8] sm:$0xff] }
 0x6bc   :  { %v1408_v38 = vpop.f32.mrf.mxu3 }
 0x6bd   :  { %v1434_v37 = vrot.slane %v1408_v38, 1 }
 0x6bf   :  { %v1435_v0 = vsel %vm1051_vm1, %v1432_v4, %v1434_v37  ;;  %v1532_v4 = vld [vmem:[%s7221_s25 + $0x68] sm:$0xff] }
 0x6c0   :  { %v1456_v3 = vmax.f32 %v1406_v36, %v1435_v0  ;;  %v4346_v36 = vor.u32 %v4902_v34, %v4345_v33 }
 0x6c4   :  { %v1411_v39 = vpop.f32.mrf.mxu3 }
 0x6c5   :  { %v1436_v49 = vrot.slane %v1411_v39, 1 }
 0x6c7   :  { %v1437_v57 = vsel %vm1051_vm1, %v1434_v37, %v1436_v49  ;;  %v1534_v37 = vld [vmem:[%s7221_s25 + $0x78] sm:$0xff] }
 0x6c8   :  { %v1457_v11 = vmax.f32 %v1408_v38, %v1437_v57  ;;  %v4325_v38 = vld [vmem:[%s7219_s17] sm:$0xf] }
 0x6ca   :  { %v1463_v51 = vpack.c.bf16 %v1457_v11, %v1456_v3  ;;  %v1523_v11 = vld [vmem:[%s7221_s25 + $0x20] sm:$0xff] }
 0x6cc   :  { %v1413_v40 = vpop.f32.mrf.mxu3 }
 0x6cd   :  { %v1438_v47 = vrot.slane %v1413_v40, 1 }
 0x6cf   :  { %v1439_v56 = vsel %vm1051_vm1, %v1436_v49, %v1438_v47 }
 0x6d0   :  { %v1458_v59 = vmax.f32 %v1411_v39, %v1439_v56  ;;  %v4898_v39 = vld [vmem:[%s7219_s17 + $0x8] sm:$0xf0]  ;;  %v1533_v56 = vld [vmem:[%s7221_s25 + $0x70] sm:$0xff] }
 0x6d4   :  { %v1416_v42 = vpop.f32.mrf.mxu3 }
 0x6d5   :  { %v1440_v41 = vrot.slane %v1416_v42, 1 }
 0x6d7   :  { %v1441_v53 = vsel %vm1051_vm1, %v1438_v47, %v1440_v41 }
 0x6d8   :  { %v1459_v48 = vmax.f32 %v1413_v40, %v1441_v53  ;;  %v4897_v40 = vld [vmem:[%s7219_s17 + $0x4] sm:$0xf] }
 0x6da   :  { %v1464_v7 = vpack.c.bf16 %v1459_v48, %v1458_v59  ;;  %v1530_v48 = vld [vmem:[%s7221_s25 + $0x58] sm:$0xff]  ;;  %v1527_v59 = vld [vmem:[%s7221_s25 + $0x40] sm:$0xff] }
 0x6dc   :  { %v1418_v43 = vpop.f32.mrf.mxu3 }
 0x6dd   :  { %v1442_v21 = vrot.slane %v1418_v43, 1 }
 0x6df   :  { %v1453_v30 = vsel %vm1051_vm1, %v1442_v21, %v1429_v46  ;;  %v1443_v52 = vsel %vm1051_vm1, %v1440_v41, %v1442_v21  ;;  %v4327_v41 = vld [vmem:[%s7219_s17 + $0xc] sm:$0xf0]  ;;  %v4899_v46 = vld [vmem:[%s7219_s17 + $0x10] sm:$0xf0] }
 0x6e0   :  { %v1461_v54 = vmax.f32 %v1418_v43, %v1453_v30  ;;  %v1460_v55 = vmax.f32 %v1416_v42, %v1443_v52  ;;  %v4326_v42 = vor.u32 %v4898_v39, %v4325_v38  ;;  %v4333_v43 = vld [vmem:[%s7219_s17 + $0x8] sm:$0xf]  ;;  %v4330_v47 = vor.u32 %v4897_v40, %v4327_v41 }
 0x6e1   :  { %v4334_v21 = vor.u32 %v4899_v46, %v4333_v43 }
 0x6e2   :  { %v1465_v27 = vpack.c.bf16 %v1461_v54, %v1460_v55  ;;  %1614 = vmatpush.bf16.msrb.mxu1 %v4326_v42  ;;  %1633 = vmatpush.bf16.msrb.mxu2 %v4330_v47 }
 0x6e4   :  { %1486 = vmatpush.bf16.msrb.mxu0 %v1465_v27  ;;  %v1531_v27 = vld [vmem:[%s7221_s25 + $0x60] sm:$0xff] }
 0x6e6   :  { %1809 = vmatpush.msra.mxu1 %v1534_v37 }
 0x6e8   :  { %1487 = vmatpush.bf16.msrb.mxu0 %v1464_v7  ;;  %1810 = vmatpush.msra.mxu1 %v1533_v56  ;;  %v1524_v7 = vld [vmem:[%s7221_s25 + $0x28] sm:$0xff] }
 0x6ea   :  { %1811 = vmatpush.msra.mxu1 %v1532_v4 }
 0x6ec   :  { %1488 = vmatpush.bf16.msrb.mxu0 %v1463_v51  ;;  %1812 = vmatpush.msra.mxu1 %v1531_v27  ;;  %v1521_v51 = vld [vmem:[%s7221_s25 + $0x10] sm:$0xff] }
 0x6ee   :  { %1813 = vmatpush.msra.mxu1 %v1530_v48 }
 0x6f0   :  { %1489 = vmatpush.bf16.msrb.mxu0 %v1462_v10  ;;  %1814 = vmatpush.msra.mxu1 %v1529_v58 }
 0x6f2   :  { %1815 = vmatpush.msra.mxu1 %v1528_v32 }
 0x6f3   :  { %4321 = vmatmul.msk.bf16.vlgmr.msrb.gmra.mxu0 %vm1226_vm14, %v4895_v12  ;;  %v1519_v12 = vld [vmem:[%s7221_s25] sm:$0xff] }
 0x6f4   :  { %1649 = vmatpush.bf16.msra.mxu0 %v4370_v9  ;;  %1816 = vmatpush.msra.mxu1 %v1527_v59  ;;  %v1675_v9 = vand.u32 15, %v6680_v5 }
 0x6f6   :  { %1817 = vmatpush.msra.mxu1 %v1526_v61  ;;  %vm6688_vm15 = vcmp.ne.s32.totalorder %v1675_v9, 15  ;;  %v5962_v9 = vmov 512.0  }
 0x6f7   :  { %5156 = vrcp.f32 %v5962_v9 }
 0x6f8   :  { %1650 = vmatpush.bf16.msra.mxu0 %v4358_v25  ;;  %1818 = vmatpush.msra.mxu1 %v1525_v1 }
 0x6fa   :  { %1819 = vmatpush.msra.mxu1 %v1524_v7 }
 0x6fc   :  { %1651 = vmatpush.bf16.msra.mxu0 %v4346_v36  ;;  %1820 = vmatpush.msra.mxu1 %v1523_v11 }
 0x6fe   :  { %1821 = vmatpush.msra.mxu1 %v1522_v2 }
 0x700   :  { %1652 = vmatpush.bf16.msra.mxu0 %v4334_v21  ;;  %1822 = vmatpush.msra.mxu1 %v1521_v51 }
 0x702   :  { %1823 = vmatpush.msra.mxu1 %v1520_v8 }
 0x703   :  { %4322 = vmatmul.msk.bf16.gmra.mxu0 %vm1226_vm14, %v4896_v13 }
 0x704   :  { %1824 = vmatpush.msra.mxu1 %v1519_v12 }
 0x770   :  { %v1491_v49 = vpop.f32.mrf.mxu0 }
 0x778   :  { %v1493_v30 = vpop.f32.mrf.mxu0 }
 0x779   :  { %v1535_v52 = vpack.c.bf16 %v1493_v30, %v1491_v49 }
 0x77b   :  { %4371 = vmatmul.msk.bf16.vlgmr.msrb.gmra.mxu1 %vm1226_vm14, %v1535_v52  ;;  %4373 = vmatmul.msk.bf16.vlgmr.msrb.gmra.mxu2 %vm1226_vm14, %v1535_v52 }
 0x77c   :  { %4375 = vmatmul.msk.bf16.vlgmr.msra.gmra.mxu0 %vm1226_vm14, %v1535_v52 }
 0x780   :  { %v1496_v53 = vpop.f32.mrf.mxu0 }
 0x788   :  { %v1498_v54 = vpop.f32.mrf.mxu0 }
 0x789   :  { %v1536_v55 = vpack.c.bf16 %v1498_v54, %v1496_v53 }
 0x78b   :  { %4372 = vmatmul.msk.bf16.gmra.mxu1 %vm1226_vm14, %v1536_v55  ;;  %4374 = vmatmul.msk.bf16.gmra.mxu2 %vm1226_vm14, %v1536_v55 }
 0x78c   :  { %4376 = vmatmul.msk.bf16.gmra.mxu0 %vm1226_vm14, %v1536_v55 }
 0x7f8   :  { %v1616_v57 = vpop.f32.mrf.mxu1 }
 0x7f9   :  { %v6669_v45 = vpop.f32.mrf.mxu0  ;;  %v1726_v23 = vrot.slane %v1616_v57, 7 }
 0x7fa   :  { %v1757_v36 = vrot.slane %v6669_v45, 1 }
 0x7fe   :  { %v1635_v60 = vpop.f32.mrf.mxu2 }
 0x800   :  { %v1618_v62 = vpop.f32.mrf.mxu1 }
 0x801   :  { %v1656_v0 = vpop.f32.mrf.mxu0  ;;  %v1727_v17 = vrot.slane %v1618_v62, 7 }
 0x802   :  { %v1758_v13 = vrot.slane %v1656_v0, 1 }
 0x803   :  { %v1728_v33 = vsel %vm987_vm0, %v1726_v23, %v1727_v17 }
 0x804   :  { %v1759_v21 = vsel %vm1051_vm1, %v1757_v36, %v1758_v13 }
 0x806   :  { %v1637_v3 = vpop.f32.mrf.mxu2 }
 0x807   :  { %v1750_v38 = vadd.f32 %v1728_v33, %v1637_v3 }
 0x808   :  { %v1621_v6 = vpop.f32.mrf.mxu1 }
 0x809   :  { %v1659_v22 = vpop.f32.mrf.mxu0  ;;  %v1729_v14 = vrot.slane %v1621_v6, 7 }
 0x80a   :  { %v1760_v10 = vrot.slane %v1659_v22, 1 }
 0x80b   :  { %v1730_v29 = vsel %vm987_vm0, %v1727_v17, %v1729_v14 }
 0x80c   :  { %v1761_v20 = vsel %vm1051_vm1, %v1758_v13, %v1760_v10  ;;  %v1747_v39 = vsel %vm6694_vm2, %v1730_v29, 0.0 }
 0x80d   :  { %v1779_v34 = vsel %vm6688_vm15, %v1761_v20, 0.0 }
 0x80e   :  { %v1640_v18 = vpop.f32.mrf.mxu2  ;;  %v6707_v41 = vadd.f32 %v1779_v34, %v1750_v38 }
 0x80f   :  { %v1751_v43 = vadd.f32 %v1747_v39, %v1640_v18  ;;  %v1518_v39 = vld [vmem:[%s7227_s29] sm:$0x1] }
 0x810   :  { %v1623_v25 = vpop.f32.mrf.mxu1  ;;  %v1796_v37 = vmul.f32 %v6707_v41, %v6707_v41 }
 0x811   :  { %v1721_v31 = vrot.slane %v1623_v25, 7  ;;  %v1661_v24 = vpop.f32.mrf.mxu0 }
 0x812   :  { %v1762_v35 = vrot.slane %v1661_v24, 1 }
 0x813   :  { %v1736_v50 = vsel %vm987_vm0, %v1721_v31, %v1726_v23  ;;  %v1731_v30 = vsel %vm987_vm0, %v1729_v14, %v1721_v31 }
 0x814   :  { %v1745_v40 = vsel %vm1712_vm3, %v1736_v50, 0.0  ;;  %v1763_v42 = vsel %vm1051_vm1, %v1760_v10, %v1762_v35  ;;  %v1769_v47 = vsel %vm1051_vm1, %v1762_v35, %v1757_v36  ;;  %v5157_v10 = vpop.eup %5156  ;;  %v1517_v36 = vld [vmem:[%s7226_s12] sm:$0x1] }
 0x815   :  { %v1749_v46 = vadd.f32 %v1745_v40, %v1635_v60  ;;  %v6714_v53 = vadd.f32 %v1763_v42, %v1751_v43  ;;  %v1781_v55 = vsel %vm1719_vm4, %v1769_v47, 0.0  ;;  %v1830_v12 = vmul.f32 512.0, %v5157_v10 }
 0x816   :  { %v1642_v49 = vpop.f32.mrf.mxu2  ;;  %vm1834_vm5 = vweird.f32 %v5157_v10 }
 0x817   :  { %v6712_v52 = vadd.f32 %v1759_v21, %v1749_v46  ;;  %v1752_v54 = vadd.f32 %v1731_v30, %v1642_v49  ;;  %v1797_v48 = vmul.f32 %v6714_v53, %v6714_v53  ;;  %v1831_v13 = vsub.f32 1.0, %v1830_v12 }
 0x819   :  { %v1795_v56 = vmul.f32 %v6712_v52, %v6712_v52  ;;  %v6720_v4 = vadd.f32 %v1781_v55, %v1752_v54  ;;  %v1786_v27 = vadd.f32 %v6707_v41, %v6712_v52  ;;  %v1832_v14 = vmul.f32 %v5157_v10, %v1831_v13 }
 0x81b   :  { %v1787_v57 = vadd.f32 %v1786_v27, %v6714_v53  ;;  %v1799_v45 = vadd.f32 %v1796_v37, %v1795_v56  ;;  %v1798_v32 = vmul.f32 %v6720_v4, %v6720_v4  ;;  %v1833_v15 = vadd.f32 %v5157_v10, %v1832_v14  ;;  %v4911_v14 = vld [vmem:[#allocation5 + $0x10] sm:$0xff] }
 0x81d   :  { %v1788_v58 = vadd.f32 %v1787_v57, %v6720_v4  ;;  %v1800_v59 = vadd.f32 %v1799_v45, %v1797_v48  ;;  %v1835_v16 = vsel %vm1834_vm5, %v5157_v10, %v1833_v15  ;;  %v4910_v15 = vld [vmem:[#allocation5 + $0x8] sm:$0xff] }
 0x81f   :  { %v1789_v60 = vrot.slane %v1788_v58, 4  ;;  %v1801_v61 = vadd.f32 %v1800_v59, %v1798_v32 }
 0x821   :  { %v1790_v62 = vadd.f32 %v1789_v60, %v1788_v58  ;;  %v1802_v0 = vrot.slane %v1801_v61, 4  ;;  %v4916_v58 = vld [vmem:[#allocation5 + $0x38] sm:$0xff] }
 0x822   :  { %2006 = vmatpush.bf16.msra.mxu2 %v4916_v58 }
 0x823   :  { %v1791_v1 = vrot.slane %v1790_v62, 2  ;;  %v1803_v7 = vadd.f32 %v1802_v0, %v1801_v61 }
 0x825   :  { %v1792_v11 = vadd.f32 %v1791_v1, %v1790_v62  ;;  %v1804_v2 = vrot.slane %v1803_v7, 2 }
 0x827   :  { %v1793_v3 = vrot.slane %v1792_v11, 1  ;;  %v1805_v51 = vadd.f32 %v1804_v2, %v1803_v7 }
 0x829   :  { %v1806_v6 = vrot.slane %v1805_v51, 1  ;;  %v1794_v22 = vadd.f32 %v1793_v3, %v1792_v11 }
 0x82b   :  { %v1807_v63 = vadd.f32 %v1806_v6, %v1805_v51 }
 0x82d   :  { %v1808_v8 = vsel %vm987_vm0, %v1794_v22, %v1807_v63 }
 0x82e   :  { %1825 = vmatmul.f32.vlgmr.msra.gmra.mxu1 %v1808_v8 }
 0x8ab   :  { %v1826_v17 = vpop.f32.mrf.mxu1 }
 0x8ac   :  { %v1836_v18 = vmul.f32 %v1835_v16, %v1826_v17  ;;  %v4909_v16 = vld [vmem:[#allocation5] sm:$0xff] }
 0x8ae   :  { %v1837_v19 = vmul.f32 %v1836_v18, %v1836_v18 }
 0x8b0   :  { %v1839_v20 = vrot.slane %v1837_v19, 7 }
 0x8b2   :  { %v1841_v23 = vsub.f32 %v1836_v18, %v1839_v20 }
 0x8b4   :  { %v1842_v25 = vmax.f32 %v1841_v23, 0.0 }
 0x8b6   :  { %v1843_v26 = vadd.f32 1e-05, %v1842_v25 }
 0x8b8   :  { %5158 = vrsqrt.f32 %v1843_v26  ;;  %vm1850_vm7 = vweird.f32 %v1843_v26 }
 0x8be   :  { %v5159_v28 = vpop.eup %5158 }
 0x8bf   :  { %v1845_v29 = vmul.f32 %v5159_v28, %v1843_v26  ;;  %vm1851_vm6 = vweird.f32 %v5159_v28 }
 0x8c0   :  { %vm1852_vm8 = vmor %vm1850_vm7, %vm1851_vm6 }
 0x8c1   :  { %v1846_v31 = vmul.f32 %v5159_v28, %v1845_v29 }
 0x8c3   :  { %v1847_v24 = vmul.f32 0.5, %v1846_v31 }
 0x8c5   :  { %v1848_v33 = vsub.f32 1.5, %v1847_v24 }
 0x8c7   :  { %v1849_v34 = vmul.f32 %v5159_v28, %v1848_v33 }
 0x8c9   :  { %v1853_v35 = vsel %vm1852_vm8, %v5159_v28, %v1849_v34 }
 0x8ca   :  { %1855 = vst [vmem:[#allocation1] sm:$0xff] %v1853_v35  ;;  %v4452_v35 = vld [vmem:[#allocation7 + $0x48] sm:$0xf] }
 0x8d1   :  { %v1857_v38 = vld [vmem:[#allocation1 + $0x1] ss:$9 sm:$0xff] }
 0x8d2   :  { %v1859_v50 = vmul.f32 %v1857_v38, %v1517_v36  ;;  %v4928_v38 = vld [vmem:[#allocation7 + $0x50] sm:$0xf0] }
 0x8d4   :  { %v1860_v40 = vmul.f32 %v1859_v50, %v1836_v18  ;;  %v1863_v42 = vperm.slane %v1859_v50, 0 }
 0x8d6   :  { %1864 = vrot.lane.b32.xlu2 %v1863_v42, %s5934_s28  ;;  %v1861_v43 = vsub.f32 %v1518_v39, %v1860_v40 }
 0x8d8   :  { %v1884_v46 = vperm.slane %v1861_v43, 0 }
 0x8da   :  { %1885 = vrot.lane.b32.xlu0 %v1884_v46, %s5934_s28  ;;  %s5963_s28 = smov 120  }
 0x930   :  { %v1865_v47 = vpop.permute.xlu2 %1864 }
 0x931   :  { %v1867_v21 = vsel %vm1208_vm11, %v1859_v50, %v1865_v47  ;;  %v4453_v50 = vor.u32 %v4928_v38, %v4452_v35  ;;  %v2098_v35 = vld [vmem:[%s7229_s2 + $0x50] sm:$0xff]  ;;  %v2096_v38 = vld [vmem:[%s7229_s2 + $0x40] sm:$0xff] }
 0x932   :  { %1869 = vrot.lane.b32.xlu1 %v1867_v21, %s5959_s18 }
 0x933   :  { %2176 = vmatpush.bf16.msrb.mxu1 %v4453_v50  ;;  %v2095_v50 = vld [vmem:[%s7229_s2 + $0x38] sm:$0xff] }
 0x94c   :  { %v1886_v49 = vpop.permute.xlu0 %1885 }
 0x94d   :  { %v1888_v30 = vsel %vm1208_vm11, %v1861_v43, %v1886_v49 }
 0x94e   :  { %1890 = vrot.lane.b32.xlu2 %v1888_v30, %s5959_s18 }
 0x9a4   :  { %v1870_v54 = vpop.permute.xlu1 %1869 }
 0x9a5   :  { %v1872_v55 = vsel %vm1214_vm12, %v1867_v21, %v1870_v54 }
 0x9a6   :  { %1874 = vrot.lane.b32.xlu0 %v1872_v55, %s5960_s23 }
 0x9a8   :  { %v1891_v37 = vpop.permute.xlu2 %1890 }
 0x9a9   :  { %v1893_v56 = vsel %vm1214_vm12, %v1888_v30, %v1891_v37 }
 0x9aa   :  { %1895 = vrot.lane.b32.xlu1 %v1893_v56, %s5960_s23 }
 0xa18   :  { %v1875_v27 = vpop.permute.xlu0 %1874 }
 0xa19   :  { %v1877_v48 = vsel %vm1220_vm13, %v1872_v55, %v1875_v27 }
 0xa1a   :  { %1879 = vrot.lane.b32.xlu2 %v1877_v48, %s5926_s22 }
 0xa1c   :  { %v1896_v57 = vpop.permute.xlu1 %1895 }
 0xa1d   :  { %v1898_v45 = vsel %vm1220_vm13, %v1893_v56, %v1896_v57  ;;  %v4454_v57 = vld [vmem:[#allocation7 + $0x54] sm:$0xf0] }
 0xa1e   :  { %1900 = vrot.lane.b32.xlu0 %v1898_v45, %s5926_s22 }
 0xa74   :  { %v1880_v32 = vpop.permute.xlu2 %1879 }
 0xa75   :  { %v1882_v59 = vsel %vm1226_vm14, %v1877_v48, %v1880_v32  ;;  %v4927_v48 = vld [vmem:[#allocation7 + $0x4c] sm:$0xf] }
 0xa76   :  { %v1904_v60 = vperm.slane %v1882_v59, 0  ;;  %v4457_v58 = vor.u32 %v4927_v48, %v4454_v57  ;;  %v4917_v59 = vld [vmem:[%s7228_s3] sm:$0xff] }
 0xa78   :  { %v1907_v0 = vmul.f32 %v1904_v60, %v6714_v53  ;;  %v1908_v7 = vmul.f32 %v1904_v60, %v6720_v4  ;;  %v1905_v11 = vmul.f32 %v1904_v60, %v6712_v52  ;;  %v1906_v2 = vmul.f32 %v1904_v60, %v6707_v41  ;;  %v4915_v53 = vld [vmem:[#allocation5 + $0x30] sm:$0xff]  ;;  %v4914_v4 = vld [vmem:[#allocation5 + $0x28] sm:$0xff]  ;;  %v4913_v52 = vld [vmem:[#allocation5 + $0x20] sm:$0xff] }
 0xa79   :  { %2007 = vmatpush.bf16.msra.mxu2 %v4915_v53  ;;  %v4912_v41 = vld [vmem:[#allocation5 + $0x18] sm:$0xff]  ;;  %v4460_v60 = vld [vmem:[#allocation7 + $0x50] sm:$0xf]  ;;  %v4436_v53 = vld [vmem:[#allocation7 + $0x20] sm:$0xf] }
 0xa7d   :  { %2008 = vmatpush.bf16.msra.mxu2 %v4914_v4  ;;  %v4923_v4 = vld [vmem:[#allocation7 + $0x28] sm:$0xf0] }
 0xa81   :  { %2009 = vmatpush.bf16.msra.mxu2 %v4913_v52  ;;  %v4437_v52 = vor.u32 %v4923_v4, %v4436_v53 }
 0xa85   :  { %2010 = vmatpush.bf16.msra.mxu2 %v4912_v41  ;;  %v4918_v41 = vld [vmem:[#allocation7 + $0x4] sm:$0xf] }
 0xa89   :  { %2011 = vmatpush.bf16.msra.mxu2 %v4911_v14  ;;  %v4418_v14 = vld [vmem:[#allocation7 + $0xc] sm:$0xf0] }
 0xa8d   :  { %2012 = vmatpush.bf16.msra.mxu2 %v4910_v15  ;;  %v4416_v15 = vld [vmem:[#allocation7] sm:$0xf] }
 0xa90   :  { %v1901_v61 = vpop.permute.xlu0 %1900 }
 0xa91   :  { %v1903_v62 = vsel %vm1226_vm14, %v1898_v45, %v1901_v61  ;;  %2013 = vmatpush.bf16.msra.mxu2 %v4909_v16  ;;  %v4929_v61 = vld [vmem:[#allocation7 + $0x58] sm:$0xf0]  ;;  %v4421_v16 = vor.u32 %v4918_v41, %v4418_v14 }
 0xa92   :  { %v1909_v1 = vperm.slane %v1903_v62, 0  ;;  %v4461_v62 = vor.u32 %v4929_v61, %v4460_v60 }
 0xa94   :  { %v1912_v3 = vadd.f32 %v1909_v1, %v1907_v0  ;;  %v1913_v51 = vadd.f32 %v1909_v1, %v1908_v7  ;;  %v1910_v6 = vadd.f32 %v1909_v1, %v1905_v11  ;;  %v1911_v22 = vadd.f32 %v1909_v1, %v1906_v2  ;;  %2204 = vmatpush.bf16.msrb.mxu0 %v4461_v62  ;;  %v4924_v0 = vld [vmem:[#allocation7 + $0x34] sm:$0xf]  ;;  %v4442_v1 = vld [vmem:[#allocation7 + $0x3c] sm:$0xf0]  ;;  %v4440_v7 = vld [vmem:[#allocation7 + $0x30] sm:$0xf] }
 0xa95   :  { %v4445_v11 = vor.u32 %v4924_v0, %v4442_v1  ;;  %v4925_v2 = vld [vmem:[#allocation7 + $0x38] sm:$0xf0] }
 0xa96   :  { %v1916_v63 = vmax.f32 %v1912_v3, 0.0  ;;  %v1917_v8 = vmax.f32 %v1913_v51, 0.0  ;;  %v1914_v9 = vmax.f32 %v1910_v6, 0.0  ;;  %v1915_v10 = vmax.f32 %v1911_v22, 0.0  ;;  %v4448_v3 = vld [vmem:[#allocation7 + $0x38] sm:$0xf] }
 0xa97   :  { %v4926_v51 = vld [vmem:[#allocation7 + $0x40] sm:$0xf0]  ;;  %v4441_v6 = vor.u32 %v4925_v2, %v4440_v7  ;;  %v4921_v22 = vld [vmem:[#allocation7 + $0x1c] sm:$0xf] }
 0xa98   :  { %v5141_v12 = vpack.i.bf16 %v1917_v8, %v1916_v63  ;;  %v5136_v13 = vpack.i.bf16 %v1915_v10, %v1914_v9 }
 0xa99   :  { %2177 = vmatpush.bf16.msrb.mxu1 %v4441_v6 }
 0xa9a   :  { %5142 = vrot.lane.b32.xlu2 %v5141_v12, %s5963_s28  ;;  %5137 = vrot.lane.b32.xlu1 %v5136_v13, %s5963_s28  ;;  %v4922_v12 = vld [vmem:[#allocation7 + $0x20] sm:$0xf0] }
 0xaf4   :  { %v5143_v26 = vpop.permute.xlu2 %5142 }
 0xaf5   :  { %v5145_v28 = vunpack.i.h.bf16 %v5143_v26  ;;  %v5144_v29 = vunpack.i.l.bf16 %v5143_v26 }
 0xaf7   :  { %v1954_v31 = vmax.f32 %v1916_v63, %v5144_v29  ;;  %v1955_v24 = vmax.f32 %v1917_v8, %v5145_v28  ;;  %v4430_v63 = vld [vmem:[#allocation7 + $0x24] sm:$0xf0]  ;;  %v4449_v8 = vor.u32 %v4926_v51, %v4448_v3  ;;  %v2103_v29 = vld [vmem:[%s7229_s2 + $0x78] sm:$0xff] }
 0xaf8   :  { %2293 = vmatpush.msrb.mxu2 %v2103_v29 }
 0xaf9   :  { %v1957_v33 = vpack.c.bf16 %v1955_v24, %v1954_v31  ;;  %2205 = vmatpush.bf16.msrb.mxu0 %v4449_v8  ;;  %v2102_v31 = vld [vmem:[%s7229_s2 + $0x70] sm:$0xff]  ;;  %v2101_v24 = vld [vmem:[%s7229_s2 + $0x68] sm:$0xff] }
 0xafa   :  { %2294 = vmatpush.msrb.mxu2 %v2102_v31 }
 0xafc   :  { %2295 = vmatpush.msrb.mxu2 %v2101_v24 }
 0xafd   :  { %2206 = vmatpush.bf16.msrb.mxu0 %v4437_v52 }
 0xb0c   :  { %v5138_v17 = vpop.permute.xlu1 %5137 }
 0xb0d   :  { %v5140_v18 = vunpack.i.h.bf16 %v5138_v17  ;;  %v5139_v19 = vunpack.i.l.bf16 %v5138_v17  ;;  %v4919_v17 = vld [vmem:[#allocation7 + $0x8] sm:$0xf0] }
 0xb0f   :  { %v1953_v20 = vmax.f32 %v1915_v10, %v5140_v18  ;;  %v1952_v23 = vmax.f32 %v1914_v9, %v5139_v19  ;;  %v4428_v9 = vld [vmem:[#allocation7 + $0x18] sm:$0xf]  ;;  %v4433_v10 = vor.u32 %v4921_v22, %v4430_v63  ;;  %v4424_v18 = vld [vmem:[#allocation7 + $0x8] sm:$0xf]  ;;  %v4920_v19 = vld [vmem:[#allocation7 + $0x10] sm:$0xf0] }
 0xb10   :  { %v4429_v13 = vor.u32 %v4922_v12, %v4428_v9 }
 0xb11   :  { %v1956_v25 = vpack.c.bf16 %v1953_v20, %v1952_v23  ;;  %v4417_v20 = vor.u32 %v4919_v17, %v4416_v15  ;;  %v4425_v23 = vor.u32 %v4920_v19, %v4424_v18 }
 0xb12   :  { %2178 = vmatpush.bf16.msrb.mxu1 %v4429_v13 }
 0xb13   :  { %2014 = vmatmul.bf16.vlgmr.msra.gmra.mxu2 %v1956_v25  ;;  %2207 = vmatpush.bf16.msrb.mxu0 %v4425_v23 }
 0xb16   :  { %2179 = vmatpush.bf16.msrb.mxu1 %v4417_v20 }
 0xb23   :  { %2019 = vmatmul.bf16.gmra.mxu2 %v1957_v33  ;;  %v2100_v33 = vld [vmem:[%s7229_s2 + $0x60] sm:$0xff] }
 0xb24   :  { %2296 = vmatpush.msrb.mxu2 %v2100_v33 }
 0xb96   :  { %v2015_v34 = vpop.f32.mrf.mxu2 }
 0xb97   :  { %v2029_v43 = vrot.slane %v2015_v34, 1 }
 0xb9e   :  { %v2017_v36 = vpop.f32.mrf.mxu2 }
 0xb9f   :  { %v2030_v46 = vrot.slane %v2017_v36, 1 }
 0xba1   :  { %v2031_v37 = vsel %vm1051_vm1, %v2029_v43, %v2030_v46 }
 0xba2   :  { %v2042_v45 = vmax.f32 %v2015_v34, %v2031_v37  ;;  %v2099_v34 = vld [vmem:[%s7229_s2 + $0x58] sm:$0xff]  ;;  %v2225_v37 = vand.u32 7, %v6680_v5 }
 0xba3   :  { %2297 = vmatpush.msrb.mxu2 %v2099_v34 }
 0xba4   :  { %vm6789_vm2 = vcmp.ne.s32.totalorder %v2225_v37, 0  ;;  %vm6797_vm3 = vcmp.ne.s32.totalorder %v2225_v37, 7 }
 0xba5   :  { %2298 = vmatpush.msrb.mxu2 %v2098_v35 }
 0xba6   :  { %v2020_v39 = vpop.f32.mrf.mxu2 }
 0xba7   :  { %v2032_v40 = vrot.slane %v2020_v39, 1 }
 0xba9   :  { %v2033_v21 = vsel %vm1051_vm1, %v2030_v46, %v2032_v40  ;;  %v2090_v46 = vld [vmem:[%s7229_s2 + $0x10] sm:$0xff] }
 0xbaa   :  { %v2043_v27 = vmax.f32 %v2017_v36, %v2033_v21  ;;  %v2097_v36 = vld [vmem:[%s7229_s2 + $0x48] sm:$0xff] }
 0xbab   :  { %2299 = vmatpush.msrb.mxu2 %v2097_v36 }
 0xbac   :  { %v2046_v32 = vpack.c.bf16 %v2043_v27, %v2042_v45 }
 0xbad   :  { %2300 = vmatpush.msrb.mxu2 %v2096_v38 }
 0xbae   :  { %v2022_v42 = vpop.f32.mrf.mxu2 }
 0xbaf   :  { %v2034_v47 = vrot.slane %v2022_v42, 1  ;;  %2301 = vmatpush.msrb.mxu2 %v2095_v50 }
 0xbb1   :  { %v2035_v49 = vsel %vm1051_vm1, %v2032_v40, %v2034_v47  ;;  %v2041_v30 = vsel %vm1051_vm1, %v2034_v47, %v2029_v43  ;;  %v2093_v40 = vld [vmem:[%s7229_s2 + $0x28] sm:$0xff]  ;;  %v2091_v43 = vld [vmem:[%s7229_s2 + $0x18] sm:$0xff] }
 0xbb2   :  { %v2044_v54 = vmax.f32 %v2020_v39, %v2035_v49  ;;  %v2045_v55 = vmax.f32 %v2022_v42, %v2041_v30  ;;  %v2094_v39 = vld [vmem:[%s7229_s2 + $0x30] sm:$0xff]  ;;  %v2092_v42 = vld [vmem:[%s7229_s2 + $0x20] sm:$0xff]  ;;  %v2089_v47 = vld [vmem:[%s7229_s2 + $0x8] sm:$0xff] }
 0xbb3   :  { %2302 = vmatpush.msrb.mxu2 %v2094_v39  ;;  %v2088_v30 = vld [vmem:[%s7229_s2] sm:$0xff] }
 0xbb4   :  { %v2047_v56 = vpack.c.bf16 %v2045_v55, %v2044_v54  ;;  %v2218_v54 = vand.u32 7, %v6464_v44 }
 0xbb5   :  { %2303 = vmatpush.msrb.mxu2 %v2093_v40 }
 0xbb6   :  { %2062 = vmatpush.bf16.msra.mxu3 %v2047_v56  ;;  %vm6780_vm9 = vcmp.ne.s32.totalorder %v2218_v54, 0  ;;  %vm6785_vm15 = vcmp.ne.s32.totalorder %v2218_v54, 7 }
 0xbb7   :  { %2304 = vmatpush.msrb.mxu2 %v2092_v42 }
 0xbb9   :  { %2305 = vmatpush.msrb.mxu2 %v2091_v43 }
 0xbba   :  { %2063 = vmatpush.bf16.msra.mxu3 %v2046_v32 }
 0xbbb   :  { %2306 = vmatpush.msrb.mxu2 %v2090_v46 }
 0xbbd   :  { %4413 = vmatmul.msk.bf16.vlgmr.msra.gmra.mxu3 %vm1220_vm13, %v4917_v59  ;;  %2307 = vmatpush.msrb.mxu2 %v2089_v47 }
 0xbbe   :  { %2190 = vmatpush.bf16.msrb.mxu3 %v4457_v58 }
 0xbbf   :  { %2308 = vmatpush.msrb.mxu2 %v2088_v30 }
 0xbc2   :  { %2191 = vmatpush.bf16.msrb.mxu3 %v4445_v11 }
 0xbc6   :  { %2192 = vmatpush.bf16.msrb.mxu3 %v4433_v10 }
 0xbca   :  { %2193 = vmatpush.bf16.msrb.mxu3 %v4421_v16 }
 0xc40   :  { %v2065_v25 = vpop.f32.mrf.mxu3 }
 0xc48   :  { %v2067_v26 = vpop.f32.mrf.mxu3 }
 0xc49   :  { %v2104_v28 = vpack.c.bf16 %v2067_v26, %v2065_v25  ;;  %v5964_v26 = vmov 128.0  }
 0xc4a   :  { %5160 = vrcp.f32 %v5964_v26  ;;  %v4535_v26 = vld [vmem:[%s7238_s7 + $0x80] sm:$0xf] }
 0xc4b   :  { %4463 = vmatmul.msk.bf16.vlgmr.msrb.gmra.mxu3 %vm1226_vm14, %v2104_v28  ;;  %4462 = vmatmul.msk.bf16.vlgmr.msrb.gmra.mxu1 %vm1226_vm14, %v2104_v28 }
 0xc4c   :  { %4464 = vmatmul.msk.bf16.vlgmr.msrb.gmra.mxu0 %vm1226_vm14, %v2104_v28 }
 0xc50   :  { %v5161_v28 = vpop.eup %5160 }
 0xc51   :  { %v2314_v29 = vmul.f32 128.0, %v5161_v28  ;;  %vm2318_vm4 = vweird.f32 %v5161_v28 }
 0xc53   :  { %v2315_v31 = vsub.f32 1.0, %v2314_v29 }
 0xc55   :  { %v2316_v24 = vmul.f32 %v5161_v28, %v2315_v31 }
 0xc57   :  { %v2317_v33 = vadd.f32 %v5161_v28, %v2316_v24  ;;  %v4515_v24 = vld [vmem:[%s7238_s7 + $0x60] sm:$0xf] }
 0xc59   :  { %v6819_v34 = vsel %vm2318_vm4, %v5161_v28, %v2317_v33  ;;  %v4947_v28 = vld [vmem:[%s7238_s7 + $0x88] sm:$0xf0] }
 0xc5a   :  { %v4943_v33 = vld [vmem:[%s7238_s7 + $0x68] sm:$0xf0] }
 0xcc8   :  { %v2181_v21 = vpop.f32.mrf.mxu1 }
 0xcc9   :  { %v2209_v49 = vpop.f32.mrf.mxu0  ;;  %v2246_v27 = vrot.slane %v2181_v21, 7 }
 0xcca   :  { %v2261_v58 = vrot.slane %v2209_v49, 1 }
 0xcce   :  { %v2195_v55 = vpop.f32.mrf.mxu3 }
 0xcd0   :  { %v2183_v56 = vpop.f32.mrf.mxu1 }
 0xcd1   :  { %v2243_v57 = vrot.slane %v2183_v56, 7  ;;  %v2211_v45 = vpop.f32.mrf.mxu0 }
 0xcd2   :  { %v2262_v32 = vrot.slane %v2211_v45, 1 }
 0xcd3   :  { %v2250_v59 = vsel %vm987_vm0, %v2243_v57, %v2246_v27  ;;  %v2247_v5 = vsel %vm987_vm0, %v2246_v27, %v2243_v57  ;;  %v2087_v27 = vld [vmem:[#allocation10] sm:$0x1] }
 0xcd4   :  { %v2255_v62 = vsel %vm6780_vm9, %v2250_v59, 0.0  ;;  %v2263_v0 = vsel %vm1051_vm1, %v2261_v58, %v2262_v32  ;;  %v2267_v11 = vsel %vm1051_vm1, %v2262_v32, %v2261_v58  ;;  %v2256_v51 = vsel %vm6789_vm2, %v2247_v5, 0.0 }
 0xcd5   :  { %v2257_v1 = vadd.f32 %v2255_v62, %v2195_v55  ;;  %v2272_v2 = vsel %vm6785_vm15, %v2263_v0, 0.0  ;;  %v2273_v63 = vsel %vm6797_vm3, %v2267_v11, 0.0  ;;  %v2086_v55 = vld [vmem:[#allocation8] sm:$0x1]  ;;  %v4952_v11 = vld [vmem:[%s7238_s7 + $0xb0] sm:$0xf0] }
 0xcd6   :  { %v2197_v3 = vpop.f32.mrf.mxu3 }
 0xcd7   :  { %v6806_v6 = vadd.f32 %v2272_v2, %v2257_v1  ;;  %v2258_v22 = vadd.f32 %v2256_v51, %v2197_v3  ;;  %v4551_v1 = vld [vmem:[%s7238_s7 + $0xa8] sm:$0xf]  ;;  %v4951_v2 = vld [vmem:[%s7238_s7 + $0xac] sm:$0xf]  ;;  %v4553_v51 = vld [vmem:[%s7238_s7 + $0xb4] sm:$0xf0] }
 0xcd8   :  { %v4552_v3 = vor.u32 %v4952_v11, %v4551_v1  ;;  %v4938_v1 = vld [vmem:[%s7238_s7 + $0x40] sm:$0xf0] }
 0xcd9   :  { %v6810_v8 = vadd.f32 %v2273_v63, %v2258_v22  ;;  %v2283_v10 = vmul.f32 %v6806_v6, %v6806_v6  ;;  %v4559_v22 = vld [vmem:[%s7238_s7 + $0xb0] sm:$0xf]  ;;  %v4953_v63 = vld [vmem:[%s7238_s7 + $0xb8] sm:$0xf0] }
 0xcda   :  { %2565 = vmatpush.bf16.msra.mxu1 %v4552_v3  ;;  %v4934_v3 = vld [vmem:[%s7238_s7 + $0x20] sm:$0xf0] }
 0xcdb   :  { %v2276_v9 = vadd.f32 %v6810_v8, %v6806_v6  ;;  %v2284_v12 = vmul.f32 %v6810_v8, %v6810_v8 }
 0xcdd   :  { %v2277_v13 = vrot.slane %v2276_v9, 4  ;;  %v2285_v53 = vadd.f32 %v2284_v12, %v2283_v10  ;;  %v4556_v10 = vor.u32 %v4951_v2, %v4553_v51  ;;  %v4560_v12 = vor.u32 %v4953_v63, %v4559_v22  ;;  %v4933_v51 = vld [vmem:[%s7238_s7 + $0x1c] sm:$0xf]  ;;  %v4481_v63 = vld [vmem:[%s7238_s7 + $0x24] sm:$0xf0] }
 0xcdf   :  { %v2278_v4 = vadd.f32 %v2277_v13, %v2276_v9  ;;  %v2286_v52 = vrot.slane %v2285_v53, 4  ;;  %v4539_v13 = vld [vmem:[%s7238_s7 + $0x90] sm:$0xf]  ;;  %2579 = vmatpush.bf16.msra.mxu3 %v4556_v10  ;;  %2593 = vmatpush.bf16.msra.mxu0 %v4560_v12  ;;  %v4935_v10 = vld [vmem:[%s7238_s7 + $0x28] sm:$0xf0]  ;;  %v4484_v12 = vor.u32 %v4933_v51, %v4481_v63 }
 0xce1   :  { %v2279_v41 = vrot.slane %v2278_v4, 2  ;;  %v2287_v14 = vadd.f32 %v2286_v52, %v2285_v53  ;;  %v4949_v53 = vld [vmem:[%s7238_s7 + $0x98] sm:$0xf0] }
 0xce3   :  { %v2280_v15 = vadd.f32 %v2279_v41, %v2278_v4  ;;  %v2288_v16 = vrot.slane %v2287_v14, 2  ;;  %v4948_v4 = vld [vmem:[%s7238_s7 + $0x94] sm:$0xf]  ;;  %v4540_v41 = vor.u32 %v4949_v53, %v4539_v13  ;;  %v4467_v53 = vld [vmem:[%s7238_s7] sm:$0xf] }
 0xce5   :  { %v2281_v17 = vrot.slane %v2280_v15, 1  ;;  %v2289_v18 = vadd.f32 %v2288_v16, %v2287_v14  ;;  %v4541_v14 = vld [vmem:[%s7238_s7 + $0x9c] sm:$0xf0]  ;;  %v4950_v16 = vld [vmem:[%s7238_s7 + $0xa0] sm:$0xf0]  ;;  %2566 = vmatpush.bf16.msra.mxu1 %v4540_v41 }
 0xce6   :  { %v4930_v41 = vld [vmem:[%s7238_s7 + $0x4] sm:$0xf] }
 0xce7   :  { %v2290_v19 = vrot.slane %v2289_v18, 1  ;;  %v2282_v20 = vadd.f32 %v2281_v17, %v2280_v15  ;;  %v4547_v15 = vld [vmem:[%s7238_s7 + $0x98] sm:$0xf]  ;;  %v4544_v17 = vor.u32 %v4948_v4, %v4541_v14  ;;  %v4931_v4 = vld [vmem:[%s7238_s7 + $0x8] sm:$0xf0] }
 0xce8   :  { %v4468_v14 = vor.u32 %v4931_v4, %v4467_v53 }
 0xce9   :  { %v2291_v23 = vadd.f32 %v2290_v19, %v2289_v18  ;;  %v4527_v18 = vld [vmem:[%s7238_s7 + $0x78] sm:$0xf]  ;;  %v4946_v19 = vld [vmem:[%s7238_s7 + $0x80] sm:$0xf0]  ;;  %2580 = vmatpush.bf16.msra.mxu3 %v4544_v17  ;;  %v4932_v17 = vld [vmem:[%s7238_s7 + $0x10] sm:$0xf0] }
 0xcea   :  { %v4528_v29 = vor.u32 %v4946_v19, %v4527_v18 }
 0xceb   :  { %v2292_v25 = vsel %vm987_vm0, %v2282_v20, %v2291_v23  ;;  %v4548_v20 = vor.u32 %v4950_v16, %v4547_v15  ;;  %v4945_v23 = vld [vmem:[%s7238_s7 + $0x7c] sm:$0xf]  ;;  %v4469_v15 = vld [vmem:[%s7238_s7 + $0xc] sm:$0xf0]  ;;  %v4475_v16 = vld [vmem:[%s7238_s7 + $0x8] sm:$0xf] }
 0xcec   :  { %2309 = vmatmul.f32.vlgmr.msrb.gmra.mxu2 %v2292_v25  ;;  %v4529_v25 = vld [vmem:[%s7238_s7 + $0x84] sm:$0xf0]  ;;  %2567 = vmatpush.bf16.msra.mxu1 %v4528_v29  ;;  %v4472_v18 = vor.u32 %v4930_v41, %v4469_v15  ;;  %v4476_v19 = vor.u32 %v4932_v17, %v4475_v16 }
 0xced   :  { %v4532_v31 = vor.u32 %v4945_v23, %v4529_v25  ;;  %2594 = vmatpush.bf16.msra.mxu0 %v4548_v20 }
 0xcef   :  { %2581 = vmatpush.bf16.msra.mxu3 %v4532_v31 }
 0xd6f   :  { %v2310_v35 = vpop.f32.mrf.mxu2 }
 0xd70   :  { %v2320_v36 = vmul.f32 %v6819_v34, %v2310_v35  ;;  %v4536_v35 = vor.u32 %v4947_v28, %v4535_v26 }
 0xd72   :  { %v2321_v38 = vmul.f32 %v2320_v36, %v2320_v36  ;;  %2595 = vmatpush.bf16.msra.mxu0 %v4536_v35 }
 0xd74   :  { %v2323_v50 = vrot.slane %v2321_v38, 7  ;;  %v4517_v38 = vld [vmem:[%s7238_s7 + $0x6c] sm:$0xf0] }
 0xd76   :  { %v2325_v39 = vsub.f32 %v2320_v36, %v2323_v50  ;;  %v4523_v50 = vld [vmem:[%s7238_s7 + $0x68] sm:$0xf] }
 0xd78   :  { %v2326_v40 = vmax.f32 %v2325_v39, 0.0  ;;  %v4944_v39 = vld [vmem:[%s7238_s7 + $0x70] sm:$0xf0] }
 0xd7a   :  { %v2327_v42 = vadd.f32 1e-05, %v2326_v40  ;;  %v4516_v40 = vor.u32 %v4943_v33, %v4515_v24 }
 0xd7c   :  { %5162 = vrsqrt.f32 %v2327_v42  ;;  %vm2334_vm6 = vweird.f32 %v2327_v42  ;;  %2568 = vmatpush.bf16.msra.mxu1 %v4516_v40  ;;  %v2431_v40 = vld [vmem:[%s7239_s8 + $0x58] sm:$0xff] }
 0xd82   :  { %v5163_v43 = vpop.eup %5162 }
 0xd83   :  { %v2329_v46 = vmul.f32 %v5163_v43, %v2327_v42  ;;  %vm2335_vm5 = vweird.f32 %v5163_v43 }
 0xd84   :  { %vm2336_vm7 = vmor %vm2334_vm6, %vm2335_vm5 }
 0xd85   :  { %v2330_v47 = vmul.f32 %v5163_v43, %v2329_v46  ;;  %v4940_v46 = vld [vmem:[%s7238_s7 + $0x50] sm:$0xf0] }
 0xd87   :  { %v2331_v21 = vmul.f32 0.5, %v2330_v47  ;;  %v4524_v47 = vor.u32 %v4944_v39, %v4523_v50  ;;  %v2432_v39 = vld [vmem:[%s7239_s8 + $0x60] sm:$0xff] }
 0xd89   :  { %v2332_v49 = vsub.f32 1.5, %v2331_v21  ;;  %v4939_v21 = vld [vmem:[%s7238_s7 + $0x4c] sm:$0xf]  ;;  %2596 = vmatpush.bf16.msra.mxu0 %v4524_v47  ;;  %v2427_v47 = vld [vmem:[%s7239_s8 + $0x38] sm:$0xff] }
 0xd8b   :  { %v2333_v30 = vmul.f32 %v5163_v43, %v2332_v49  ;;  %v4505_v49 = vld [vmem:[%s7238_s7 + $0x54] sm:$0xf0] }
 0xd8d   :  { %v2337_v54 = vsel %vm2336_vm7, %v5163_v43, %v2333_v30  ;;  %v4503_v43 = vld [vmem:[%s7238_s7 + $0x48] sm:$0xf]  ;;  %v4511_v30 = vld [vmem:[%s7238_s7 + $0x50] sm:$0xf] }
 0xd8e   :  { %2339 = vst [vmem:[#allocation1] sm:$0xff] %v2337_v54  ;;  %v4941_v54 = vld [vmem:[%s7238_s7 + $0x58] sm:$0xf0] }
 0xd95   :  { %v2341_v37 = vld [vmem:[#allocation1 + $0x1] ss:$9 sm:$0xff] }
 0xd96   :  { %v2343_v56 = vmul.f32 %v2341_v37, %v2086_v55  ;;  %v4504_v55 = vor.u32 %v4940_v46, %v4503_v43  ;;  %v4508_v37 = vor.u32 %v4939_v21, %v4505_v49  ;;  %v2429_v43 = vld [vmem:[%s7239_s8 + $0x48] sm:$0xff]  ;;  %v2428_v46 = vld [vmem:[%s7239_s8 + $0x40] sm:$0xff]  ;;  %v2426_v21 = vld [vmem:[%s7239_s8 + $0x30] sm:$0xff] }
 0xd97   :  { %v2425_v49 = vld [vmem:[%s7239_s8 + $0x28] sm:$0xff] }
 0xd98   :  { %v2344_v57 = vmul.f32 %v2343_v56, %v2320_v36  ;;  %v2347_v45 = vperm.slane %v2343_v56, 0  ;;  %v4942_v36 = vld [vmem:[%s7238_s7 + $0x64] sm:$0xf]  ;;  %2569 = vmatpush.bf16.msra.mxu1 %v4504_v55  ;;  %v2422_v55 = vld [vmem:[%s7239_s8 + $0x10] sm:$0xff] }
 0xd99   :  { %v4520_v42 = vor.u32 %v4942_v36, %v4517_v38 }
 0xd9a   :  { %2348 = vrot.lane.b32.xlu0 %v2347_v45, %s5959_s18  ;;  %v2345_v58 = vsub.f32 %v2087_v27, %v2344_v57  ;;  %v4491_v45 = vld [vmem:[%s7238_s7 + $0x30] sm:$0xf] }
 0xd9b   :  { %2582 = vmatpush.bf16.msra.mxu3 %v4520_v42  ;;  %v2430_v42 = vld [vmem:[%s7239_s8 + $0x50] sm:$0xff] }
 0xd9c   :  { %v2363_v32 = vperm.slane %v2345_v58, 0 }
 0xd9e   :  { %2364 = vrot.lane.b32.xlu1 %v2363_v32, %s5959_s18  ;;  %v4936_v32 = vld [vmem:[%s7238_s7 + $0x34] sm:$0xf] }
 0xd9f   :  { %2583 = vmatpush.bf16.msra.mxu3 %v4508_v37  ;;  %v2421_v37 = vld [vmem:[%s7239_s8 + $0x8] sm:$0xff] }
 0xe0c   :  { %v2349_v59 = vpop.permute.xlu0 %2348 }
 0xe0d   :  { %v2351_v5 = vsel %vm1214_vm12, %v2343_v56, %v2349_v59  ;;  %v4512_v56 = vor.u32 %v4941_v54, %v4511_v30  ;;  %v2424_v30 = vld [vmem:[%s7239_s8 + $0x20] sm:$0xff]  ;;  %v2423_v54 = vld [vmem:[%s7239_s8 + $0x18] sm:$0xff] }
 0xe0e   :  { %2353 = vrot.lane.b32.xlu2 %v2351_v5, %s5960_s23 }
 0xe0f   :  { %2597 = vmatpush.bf16.msra.mxu0 %v4512_v56 }
 0xe10   :  { %v2365_v62 = vpop.permute.xlu1 %2364 }
 0xe11   :  { %v6827_v0 = vsel %vm1214_vm12, %v2345_v58, %v2365_v62  ;;  %v4937_v58 = vld [vmem:[%s7238_s7 + $0x38] sm:$0xf0]  ;;  %v4499_v62 = vld [vmem:[%s7238_s7 + $0x38] sm:$0xf] }
 0xe12   :  { %2369 = vrot.lane.b32.xlu0 %v6827_v0, %s5960_s23  ;;  %v4492_v59 = vor.u32 %v4937_v58, %v4491_v45  ;;  %v4500_v2 = vor.u32 %v4938_v1, %v4499_v62 }
 0xe14   :  { %2570 = vmatpush.bf16.msra.mxu1 %v4492_v59  ;;  %2598 = vmatpush.bf16.msra.mxu0 %v4500_v2 }
 0xe68   :  { %v2354_v9 = vpop.permute.xlu2 %2353 }
 0xe69   :  { %v6841_v52 = vsel %vm1220_vm13, %v2351_v5, %v2354_v9  ;;  %v4493_v5 = vld [vmem:[%s7238_s7 + $0x3c] sm:$0xf0] }
 0xe6a   :  { %2358 = vrot.lane.b32.xlu1 %v6841_v52, %s5926_s22  ;;  %v4496_v11 = vor.u32 %v4936_v32, %v4493_v5  ;;  %v4487_v9 = vld [vmem:[%s7238_s7 + $0x20] sm:$0xf] }
 0xe6b   :  { %v4488_v13 = vor.u32 %v4935_v10, %v4487_v9 }
 0xe6c   :  { %2584 = vmatpush.bf16.msra.mxu3 %v4496_v11 }
 0xe6d   :  { %2599 = vmatpush.bf16.msra.mxu0 %v4488_v13 }
 0xe70   :  { %2585 = vmatpush.bf16.msra.mxu3 %v4484_v12 }
 0xe71   :  { %2600 = vmatpush.bf16.msra.mxu0 %v4476_v19 }
 0xe74   :  { %2586 = vmatpush.bf16.msra.mxu3 %v4472_v18 }
 0xe84   :  { %v2370_v27 = vpop.permute.xlu0 %2369 }
 0xe85   :  { %v2372_v57 = vsel %vm1220_vm13, %v6827_v0, %v2370_v27  ;;  %v4479_v0 = vld [vmem:[%s7238_s7 + $0x18] sm:$0xf] }
 0xe86   :  { %2374 = vrot.lane.b32.xlu2 %v2372_v57, %s5926_s22  ;;  %v4480_v22 = vor.u32 %v4934_v3, %v4479_v0 }
 0xe88   :  { %2571 = vmatpush.bf16.msra.mxu1 %v4480_v22 }
 0xe8c   :  { %2572 = vmatpush.bf16.msra.mxu1 %v4468_v14 }
 0xedc   :  { %v2359_v20 = vpop.permute.xlu1 %2358 }
 0xedd   :  { %v2361_v23 = vsel %vm1226_vm14, %v6841_v52, %v2359_v20  ;;  %v2435_v52 = vld [vmem:[%s7239_s8 + $0x78] sm:$0xff] }
 0xede   :  { %v2378_v25 = vperm.slane %v2361_v23, 0  ;;  %2650 = vmatpush.msra.mxu2 %v2435_v52 }
 0xee0   :  { %v2375_v26 = vpop.permute.xlu2 %2374  ;;  %v2379_v29 = vmul.f32 %v2378_v25, %v6806_v6  ;;  %v2380_v31 = vmul.f32 %v2378_v25, %v6810_v8  ;;  %v2434_v6 = vld [vmem:[%s7239_s8 + $0x70] sm:$0xff]  ;;  %v2433_v8 = vld [vmem:[%s7239_s8 + $0x68] sm:$0xff] }
 0xee1   :  { %v2377_v28 = vsel %vm1226_vm14, %v2372_v57, %v2375_v26  ;;  %2651 = vmatpush.msra.mxu2 %v2434_v6  ;;  %v2420_v57 = vld [vmem:[%s7239_s8] sm:$0xff] }
 0xee2   :  { %v2381_v24 = vperm.slane %v2377_v28, 0 }
 0xee3   :  { %2652 = vmatpush.msra.mxu2 %v2433_v8 }
 0xee4   :  { %v2382_v33 = vadd.f32 %v2381_v24, %v2379_v29  ;;  %v2383_v35 = vadd.f32 %v2381_v24, %v2380_v31 }
 0xee5   :  { %2653 = vmatpush.msra.mxu2 %v2432_v39 }
 0xee6   :  { %v2384_v36 = vmax.f32 %v2382_v33, 0.0  ;;  %v2385_v38 = vmax.f32 %v2383_v35, 0.0 }
 0xee7   :  { %2654 = vmatpush.msra.mxu2 %v2431_v40 }
 0xee8   :  { %v2436_v50 = vpack.c.bf16 %v2385_v38, %v2384_v36 }
 0xee9   :  { %2655 = vmatpush.msra.mxu2 %v2430_v42 }
 0xeea   :  { %2573 = vmatmul.bf16.vlgmr.msra.gmra.mxu1 %v2436_v50  ;;  %2587 = vmatmul.bf16.vlgmr.msra.gmra.mxu3 %v2436_v50 }
 0xeeb   :  { %2601 = vmatmul.bf16.vlgmr.msra.gmra.mxu0 %v2436_v50  ;;  %2656 = vmatpush.msra.mxu2 %v2429_v43 }
 0xeed   :  { %2657 = vmatpush.msra.mxu2 %v2428_v46  ;;  %v2418_v46 = vld [vmem:[#allocation11] sm:$0x1] }
 0xeef   :  { %2658 = vmatpush.msra.mxu2 %v2427_v47 }
 0xef1   :  { %2659 = vmatpush.msra.mxu2 %v2426_v21  ;;  %v2419_v21 = vld [vmem:[#allocation13] sm:$0x1] }
 0xef3   :  { %2660 = vmatpush.msra.mxu2 %v2425_v49 }
 0xef5   :  { %2661 = vmatpush.msra.mxu2 %v2424_v30 }
 0xef7   :  { %2662 = vmatpush.msra.mxu2 %v2423_v54 }
 0xef9   :  { %2663 = vmatpush.msra.mxu2 %v2422_v55 }
 0xefb   :  { %2664 = vmatpush.msra.mxu2 %v2421_v37 }
 0xefd   :  { %2665 = vmatpush.msra.mxu2 %v2420_v57 }
 0xf67   :  { %v2574_v56 = vpop.f32.mrf.mxu1 }
 0xf68   :  { %v2602_v27 = vpop.f32.mrf.mxu0  ;;  %v2611_v32 = vrot.slane %v2574_v56, 7 }
 0xf69   :  { %v2622_v62 = vrot.slane %v2602_v27, 1 }
 0xf6d   :  { %v2588_v45 = vpop.f32.mrf.mxu3 }
 0xf6f   :  { %v2576_v58 = vpop.f32.mrf.mxu1 }
 0xf70   :  { %v2608_v59 = vrot.slane %v2576_v58, 7  ;;  %v2604_v5 = vpop.f32.mrf.mxu0 }
 0xf71   :  { %v2623_v1 = vrot.slane %v2604_v5, 1  ;;  %v4961_v5 = vld [vmem:[#allocation14 + $0x38] sm:$0xff] }
 0xf72   :  { %v2615_v11 = vsel %vm987_vm0, %v2608_v59, %v2611_v32  ;;  %v2612_v2 = vsel %vm987_vm0, %v2611_v32, %v2608_v59  ;;  %2812 = vmatpush.bf16.msrb.mxu1 %v4961_v5 }
 0xf73   :  { %v2616_v0 = vsel %vm6780_vm9, %v2615_v11, 0.0  ;;  %v2624_v3 = vsel %vm1051_vm1, %v2622_v62, %v2623_v1  ;;  %v2628_v22 = vsel %vm1051_vm1, %v2623_v1, %v2622_v62  ;;  %v2617_v10 = vsel %vm6789_vm2, %v2612_v2, 0.0  ;;  %v4960_v62 = vld [vmem:[#allocation14 + $0x30] sm:$0xff]  ;;  %v4959_v1 = vld [vmem:[#allocation14 + $0x28] sm:$0xff]  ;;  %v4958_v11 = vld [vmem:[#allocation14 + $0x20] sm:$0xff] }
 0xf74   :  { %v2618_v51 = vadd.f32 %v2616_v0, %v2588_v45  ;;  %v2629_v63 = vsel %vm6785_vm15, %v2624_v3, 0.0  ;;  %v2630_v53 = vsel %vm6797_vm3, %v2628_v22, 0.0  ;;  %v4957_v2 = vld [vmem:[#allocation14 + $0x18] sm:$0xff]  ;;  %v4956_v3 = vld [vmem:[#allocation14 + $0x10] sm:$0xff] }
 0xf75   :  { %v2590_v9 = vpop.f32.mrf.mxu3 }
 0xf76   :  { %v6918_v12 = vadd.f32 %v2629_v63, %v2618_v51  ;;  %v2619_v13 = vadd.f32 %v2617_v10, %v2590_v9  ;;  %2813 = vmatpush.bf16.msrb.mxu1 %v4960_v62  ;;  %v4955_v9 = vld [vmem:[#allocation14 + $0x8] sm:$0xff] }
 0xf77   :  { %v4604_v62 = vld [vmem:[#allocation16 + $0x8] sm:$0xf] }
 0xf78   :  { %v6922_v48 = vadd.f32 %v2630_v53, %v2619_v13  ;;  %v2640_v41 = vmul.f32 %v6918_v12, %v6918_v12 }
 0xf7a   :  { %v2633_v4 = vadd.f32 %v6922_v48, %v6918_v12  ;;  %v2641_v60 = vmul.f32 %v6922_v48, %v6922_v48  ;;  %2814 = vmatpush.bf16.msrb.mxu1 %v4959_v1  ;;  %v4964_v1 = vld [vmem:[#allocation16 + $0x10] sm:$0xf0] }
 0xf7c   :  { %v2634_v14 = vrot.slane %v2633_v4, 4  ;;  %v2642_v61 = vadd.f32 %v2641_v60, %v2640_v41 }
 0xf7e   :  { %v2635_v15 = vadd.f32 %v2634_v14, %v2633_v4  ;;  %v2643_v16 = vrot.slane %v2642_v61, 4  ;;  %2815 = vmatpush.bf16.msrb.mxu1 %v4958_v11  ;;  %v4962_v11 = vld [vmem:[#allocation16 + $0x4] sm:$0xf] }
 0xf80   :  { %v2636_v17 = vrot.slane %v2635_v15, 2  ;;  %v2644_v18 = vadd.f32 %v2643_v16, %v2642_v61  ;;  %v4954_v16 = vld [vmem:[#allocation14] sm:$0xff] }
 0xf82   :  { %v2637_v19 = vadd.f32 %v2636_v17, %v2635_v15  ;;  %v2645_v7 = vrot.slane %v2644_v18, 2  ;;  %2816 = vmatpush.bf16.msrb.mxu1 %v4957_v2  ;;  %v4605_v2 = vor.u32 %v4964_v1, %v4604_v62 }
 0xf84   :  { %v2638_v20 = vrot.slane %v2637_v19, 1  ;;  %v2646_v23 = vadd.f32 %v2645_v7, %v2644_v18 }
 0xf86   :  { %v2647_v25 = vrot.slane %v2646_v23, 1  ;;  %v2639_v26 = vadd.f32 %v2638_v20, %v2637_v19  ;;  %2817 = vmatpush.bf16.msrb.mxu1 %v4956_v3  ;;  %v4596_v3 = vld [vmem:[#allocation16] sm:$0xf] }
 0xf88   :  { %v2648_v28 = vadd.f32 %v2647_v25, %v2646_v23  ;;  %v4632_v25 = vld [vmem:[#allocation16 + $0x48] sm:$0xf] }
 0xf8a   :  { %v2649_v29 = vsel %vm987_vm0, %v2639_v26, %v2648_v28  ;;  %2818 = vmatpush.bf16.msrb.mxu1 %v4955_v9  ;;  %v4972_v26 = vld [vmem:[#allocation16 + $0x50] sm:$0xf0]  ;;  %v2887_v9 = vld [vmem:[#allocation20 + $0x78] sm:$0xff] }
 0xf8b   :  { %2666 = vmatmul.f32.vlgmr.msra.gmra.mxu2 %v2649_v29  ;;  %v4633_v29 = vor.u32 %v4972_v26, %v4632_v25  ;;  %v2999_v25 = vand.u32 3, %v6464_v44 }
 0xf8d   :  { %2960 = vmatpush.bf16.msrb.mxu0 %v4633_v29 }
 0xf8e   :  { %2819 = vmatpush.bf16.msrb.mxu1 %v4954_v16  ;;  %v2880_v16 = vld [vmem:[#allocation20 + $0x40] sm:$0xff] }
0x100e   :  { %v2667_v31 = vpop.f32.mrf.mxu2 }
0x100f   :  { %v2670_v24 = vmul.f32 %v2667_v31, %v6819_v34  ;;  %v4968_v31 = vld [vmem:[#allocation16 + $0x34] sm:$0xf] }
0x1011   :  { %v2671_v33 = vmul.f32 %v2670_v24, %v2670_v24 }
0x1013   :  { %v2673_v35 = vrot.slane %v2671_v33, 7  ;;  %v4620_v33 = vld [vmem:[#allocation16 + $0x30] sm:$0xf] }
0x1015   :  { %v2675_v36 = vsub.f32 %v2670_v24, %v2673_v35  ;;  %v4969_v35 = vld [vmem:[#allocation16 + $0x38] sm:$0xf0] }
0x1017   :  { %v2676_v38 = vmax.f32 %v2675_v36, 0.0 }
0x1019   :  { %v2677_v50 = vadd.f32 1e-05, %v2676_v38  ;;  %v4621_v38 = vor.u32 %v4969_v35, %v4620_v33 }
0x101b   :  { %5164 = vrsqrt.f32 %v2677_v50  ;;  %vm2684_vm9 = vweird.f32 %v2677_v50  ;;  %2961 = vmatpush.bf16.msrb.mxu0 %v4621_v38 }
0x1021   :  { %v5165_v52 = vpop.eup %5164 }
0x1022   :  { %v2679_v6 = vmul.f32 %v5165_v52, %v2677_v50  ;;  %vm2685_vm8 = vweird.f32 %v5165_v52  ;;  %v4965_v50 = vld [vmem:[#allocation16 + $0x1c] sm:$0xf] }
0x1023   :  { %vm2686_vm15 = vmor %vm2684_vm9, %vm2685_vm8  ;;  %vm3529_vm9 = vcmask 1043456  }
0x1024   :  { %v2680_v8 = vmul.f32 %v5165_v52, %v2679_v6 }
0x1026   :  { %v2681_v39 = vmul.f32 0.5, %v2680_v8 }
0x1028   :  { %v2682_v40 = vsub.f32 1.5, %v2681_v39 }
0x102a   :  { %v2683_v42 = vmul.f32 %v5165_v52, %v2682_v40 }
0x102c   :  { %v2687_v43 = vsel %vm2686_vm15, %v5165_v52, %v2683_v42  ;;  %v4610_v52 = vld [vmem:[#allocation16 + $0x24] sm:$0xf0] }
0x102d   :  { %2689 = vst [vmem:[#allocation1] sm:$0xff] %v2687_v43  ;;  %v4613_v6 = vor.u32 %v4965_v50, %v4610_v52  ;;  %v4640_v43 = vld [vmem:[#allocation16 + $0x50] sm:$0xf] }
0x1034   :  { %v2691_v47 = vld [vmem:[#allocation1 + $0x1] ss:$9 sm:$0xff] }
0x1035   :  { %v2693_v34 = vmul.f32 %v2691_v47, %v2418_v46  ;;  %v4973_v46 = vld [vmem:[#allocation16 + $0x58] sm:$0xf0] }
0x1037   :  { %v2694_v49 = vmul.f32 %v2693_v34, %v2670_v24  ;;  %v2697_v30 = vperm.slane %v2693_v34, 0  ;;  %v4622_v24 = vld [vmem:[#allocation16 + $0x3c] sm:$0xf0] }
0x1038   :  { %v4625_v36 = vor.u32 %v4968_v31, %v4622_v24 }
0x1039   :  { %2698 = vrot.lane.b32.xlu0 %v2697_v30, %s5959_s18  ;;  %v2695_v54 = vsub.f32 %v2419_v21, %v2694_v49  ;;  %v4641_v30 = vor.u32 %v4973_v46, %v4640_v43 }
0x103b   :  { %v2713_v55 = vperm.slane %v2695_v54, 0 }
0x103d   :  { %2714 = vrot.lane.b32.xlu1 %v2713_v55, %s5959_s18  ;;  %v4628_v55 = vld [vmem:[#allocation16 + $0x38] sm:$0xf] }
0x10ab   :  { %v2699_v37 = vpop.permute.xlu0 %2698 }
0x10ac   :  { %v2701_v56 = vsel %vm1214_vm12, %v2693_v34, %v2699_v37  ;;  %v4970_v37 = vld [vmem:[#allocation16 + $0x40] sm:$0xf0] }
0x10ad   :  { %2703 = vrot.lane.b32.xlu2 %v2701_v56, %s5960_s23 }
0x10af   :  { %v2715_v27 = vpop.permute.xlu1 %2714 }
0x10b0   :  { %v2717_v57 = vsel %vm1214_vm12, %v2695_v54, %v2715_v27  ;;  %v4629_v27 = vor.u32 %v4970_v37, %v4628_v55 }
0x10b1   :  { %2719 = vrot.lane.b32.xlu0 %v2717_v57, %s5960_s23 }
0x1107   :  { %v2704_v45 = vpop.permute.xlu2 %2703 }
0x1108   :  { %v2706_v58 = vsel %vm1220_vm13, %v2701_v56, %v2704_v45  ;;  %v2752_v56 = vld [vmem:[%s7240_s19] sm:$0xf]  ;;  %v4967_v45 = vld [vmem:[#allocation16 + $0x28] sm:$0xf0] }
0x1109   :  { %2708 = vrot.lane.b32.xlu1 %v2706_v58, %s5926_s22 }
0x1123   :  { %v2720_v32 = vpop.permute.xlu0 %2719 }
0x1124   :  { %v2722_v59 = vsel %vm1220_vm13, %v2717_v57, %v2720_v32  ;;  %v4616_v57 = vld [vmem:[#allocation16 + $0x20] sm:$0xf]  ;;  %v4608_v32 = vld [vmem:[#allocation16 + $0x18] sm:$0xf] }
0x1125   :  { %2724 = vrot.lane.b32.xlu2 %v2722_v59, %s5926_s22 }
0x117b   :  { %v2709_v0 = vpop.permute.xlu1 %2708 }
0x117c   :  { %v2711_v51 = vsel %vm1226_vm14, %v2706_v58, %v2709_v0  ;;  %v4617_v58 = vor.u32 %v4967_v45, %v4616_v57  ;;  %v4598_v0 = vld [vmem:[#allocation16 + $0xc] sm:$0xf0]  ;;  %v5966_v57 = vmov 32.0  }
0x117d   :  { %v2728_v22 = vperm.slane %v2711_v51, 0  ;;  %v4963_v51 = vld [vmem:[#allocation16 + $0x8] sm:$0xf0]  ;;  %5166 = vrcp.f32 %v5966_v57  ;;  %v4695_v57 = vld [vmem:[%s7245_s10 + $0x60] sm:$0xf] }
0x117f   :  { %v2725_v63 = vpop.permute.xlu2 %2724  ;;  %v2729_v13 = vmul.f32 %v2728_v22, %v6918_v12  ;;  %v2730_v53 = vmul.f32 %v2728_v22, %v6922_v48  ;;  %v4971_v12 = vld [vmem:[#allocation16 + $0x4c] sm:$0xf]  ;;  %v4634_v48 = vld [vmem:[#allocation16 + $0x54] sm:$0xf0]  ;;  %v4601_v22 = vor.u32 %v4962_v11, %v4598_v0 }
0x1180   :  { %v2727_v10 = vsel %vm1226_vm14, %v2722_v59, %v2725_v63  ;;  %v4637_v28 = vor.u32 %v4971_v12, %v4634_v48  ;;  %v4966_v59 = vld [vmem:[#allocation16 + $0x20] sm:$0xf0]  ;;  %v4597_v63 = vor.u32 %v4963_v51, %v4596_v3  ;;  %v2873_v12 = vld [vmem:[#allocation20 + $0x8] sm:$0xff] }
0x1181   :  { %v2731_v4 = vperm.slane %v2727_v10, 0  ;;  %v4609_v5 = vor.u32 %v4966_v59, %v4608_v32  ;;  %v2886_v10 = vld [vmem:[#allocation20 + $0x70] sm:$0xff]  ;;  %v2872_v48 = vld [vmem:[#allocation20] sm:$0xff] }
0x1182   :  { %2973 = vmatpush.bf16.msrb.mxu2 %v4637_v28 }
0x1183   :  { %v2732_v41 = vadd.f32 %v2731_v4, %v2729_v13  ;;  %v2733_v60 = vadd.f32 %v2731_v4, %v2730_v53  ;;  %2962 = vmatpush.bf16.msrb.mxu0 %v4609_v5  ;;  %v2885_v13 = vld [vmem:[#allocation20 + $0x68] sm:$0xff]  ;;  %v2884_v53 = vld [vmem:[#allocation20 + $0x60] sm:$0xff]  ;;  %v5167_v45 = vpop.eup %5166 }
0x1184   :  { %vm3064_vm2 = vweird.f32 %v5167_v45 }
0x1185   :  { %v2734_v14 = vmax.f32 %v2732_v41, 0.0  ;;  %v2735_v61 = vmax.f32 %v2733_v60, 0.0 }
0x1186   :  { %2974 = vmatpush.bf16.msrb.mxu2 %v4625_v36 }
0x1187   :  { %v5146_v15 = vpack.i.bf16 %v2735_v61, %v2734_v14  ;;  %2963 = vmatpush.bf16.msrb.mxu0 %v4597_v63 }
0x1189   :  { %5147 = vrot.lane.b32.xlu0 %v5146_v15, %s5965_s1  ;;  %v2881_v15 = vld [vmem:[#allocation20 + $0x48] sm:$0xff] }
0x118a   :  { %2975 = vmatpush.bf16.msrb.mxu2 %v4613_v6 }
0x118b   :  { %3039 = vmatpush.msra.mxu0 %v2887_v9 }
0x118d   :  { %3040 = vmatpush.msra.mxu0 %v2886_v10 }
0x118e   :  { %2976 = vmatpush.bf16.msrb.mxu2 %v4601_v22 }
0x118f   :  { %3041 = vmatpush.msra.mxu0 %v2885_v13 }
0x1191   :  { %3042 = vmatpush.msra.mxu0 %v2884_v53 }
0x11fb   :  { %v5148_v17 = vpop.permute.xlu0 %5147 }
0x11fc   :  { %v5150_v18 = vunpack.i.h.bf16 %v5148_v17  ;;  %v5149_v19 = vunpack.i.l.bf16 %v5148_v17  ;;  %v2879_v17 = vld [vmem:[#allocation20 + $0x38] sm:$0xff] }
0x11fe   :  { %v2762_v7 = vmax.f32 %v2735_v61, %v5150_v18  ;;  %v2761_v20 = vmax.f32 %v2734_v14, %v5149_v19  ;;  %v2883_v14 = vld [vmem:[#allocation20 + $0x58] sm:$0xff]  ;;  %v2882_v61 = vld [vmem:[#allocation20 + $0x50] sm:$0xff]  ;;  %v2877_v19 = vld [vmem:[#allocation20 + $0x28] sm:$0xff] }
0x11ff   :  { %3043 = vmatpush.msra.mxu0 %v2883_v14  ;;  %v2878_v18 = vld [vmem:[#allocation20 + $0x30] sm:$0xff] }
0x1200   :  { %v2763_v23 = vpack.c.bf16 %v2762_v7, %v2761_v20  ;;  %v2876_v7 = vld [vmem:[#allocation20 + $0x20] sm:$0xff]  ;;  %v2875_v20 = vld [vmem:[#allocation20 + $0x18] sm:$0xff] }
0x1201   :  { %3044 = vmatpush.msra.mxu0 %v2882_v61 }
0x1202   :  { %2820 = vmatmul.bf16.vlgmr.msrb.gmra.mxu1 %v2763_v23  ;;  %v2874_v23 = vld [vmem:[#allocation20 + $0x10] sm:$0xff] }
0x1203   :  { %3045 = vmatpush.msra.mxu0 %v2881_v15  ;;  %v2871_v15 = vld [vmem:[#allocation19] sm:$0x1] }
0x1205   :  { %3046 = vmatpush.msra.mxu0 %v2880_v16 }
0x1207   :  { %3047 = vmatpush.msra.mxu0 %v2879_v17 }
0x1209   :  { %3048 = vmatpush.msra.mxu0 %v2878_v18 }
0x120b   :  { %3049 = vmatpush.msra.mxu0 %v2877_v19 }
0x120d   :  { %3050 = vmatpush.msra.mxu0 %v2876_v7 }
0x120f   :  { %3051 = vmatpush.msra.mxu0 %v2875_v20 }
0x1211   :  { %3052 = vmatpush.msra.mxu0 %v2874_v23 }
0x1213   :  { %3053 = vmatpush.msra.mxu0 %v2873_v12 }
0x1215   :  { %3054 = vmatpush.msra.mxu0 %v2872_v48  ;;  %v4731_v48 = vld [vmem:[%s7245_s10 + $0xa8] sm:$0xf] }
0x127f   :  { %v2821_v8 = vpop.f32.mrf.mxu1 }
0x1280   :  { %v2828_v40 = vrot.slane %v2821_v8, 1 }
0x1287   :  { %v2823_v39 = vpop.f32.mrf.mxu1 }
0x1288   :  { %v2829_v42 = vrot.slane %v2823_v39, 1 }
0x128a   :  { %v2830_v47 = vsel %vm1051_vm1, %v2828_v40, %v2829_v42  ;;  %v2834_v34 = vsel %vm1051_vm1, %v2829_v42, %v2828_v40  ;;  %vm6954_vm1 = vcmp.ne.s32.totalorder %v2999_v25, 0 }
0x128b   :  { %v2835_v21 = vmax.f32 %v2821_v8, %v2830_v47  ;;  %v2836_v49 = vmax.f32 %v2823_v39, %v2834_v34 }
0x128d   :  { %v2837_v54 = vpack.c.bf16 %v2836_v49, %v2835_v21 }
0x128f   :  { %2848 = vmatpush.bf16.msrb.mxu3 %v2837_v54 }
0x1292   :  { %4593 = vmatmul.msk.bf16.vlgmr.msrb.gmra.mxu3 %vm1214_vm12, %v2752_v56  ;;  %vm6958_vm12 = vcmp.ne.s32.totalorder %v2999_v25, 3  ;;  %v4996_v25 = vld [vmem:[%s7245_s10 + $0xb0] sm:$0xf0] }
0x1293   :  { %2986 = vmatpush.bf16.msra.mxu3 %v4641_v30 }
0x1297   :  { %2987 = vmatpush.bf16.msra.mxu3 %v4629_v27 }
0x129b   :  { %2988 = vmatpush.bf16.msra.mxu3 %v4617_v58  ;;  %v3060_v58 = vmul.f32 32.0, %v5167_v45 }
0x129d   :  { %v3061_v32 = vsub.f32 1.0, %v3060_v58  ;;  %v4986_v58 = vld [vmem:[%s7245_s10 + $0x64] sm:$0xf] }
0x129f   :  { %2989 = vmatpush.bf16.msra.mxu3 %v4605_v2  ;;  %v3062_v59 = vmul.f32 %v5167_v45, %v3061_v32  ;;  %v4697_v32 = vld [vmem:[%s7245_s10 + $0x6c] sm:$0xf0] }
0x12a1   :  { %v3063_v5 = vadd.f32 %v5167_v45, %v3062_v59  ;;  %v4703_v59 = vld [vmem:[%s7245_s10 + $0x68] sm:$0xf] }
0x12a3   :  { %v6973_v62 = vsel %vm3064_vm2, %v5167_v45, %v3063_v5  ;;  %v4987_v45 = vld [vmem:[%s7245_s10 + $0x68] sm:$0xf0]  ;;  %v4988_v5 = vld [vmem:[%s7245_s10 + $0x70] sm:$0xf0] }
0x1315   :  { %v2850_v4 = vpop.f32.mrf.mxu3 }
0x1316   :  { %v2888_v41 = vpack.c.bf16 %v2850_v4, %v2850_v4 }
0x1318   :  { %4644 = vmatmul.msk.bf16.vlgmr.msra.gmra.mxu3 %vm1226_vm14, %v2888_v41  ;;  %4643 = vmatmul.msk.bf16.vlgmr.msrb.gmra.mxu2 %vm1226_vm14, %v2888_v41 }
0x1319   :  { %4642 = vmatmul.msk.bf16.vlgmr.msrb.gmra.mxu0 %vm1226_vm14, %v2888_v41 }
0x131d   :  { %v2852_v60 = vpop.f32.mrf.mxu3 }
0x131e   :  { %v2870_v60 = vld [vmem:[#allocation17] sm:$0x1] }
0x1396   :  { %v2965_v26 = vpop.f32.mrf.mxu0 }
0x1397   :  { %v3010_v28 = vrot.slane %v2965_v26, 7  ;;  %v4995_v26 = vld [vmem:[%s7245_s10 + $0xac] sm:$0xf] }
0x1399   :  { %v3015_v35 = vsel %vm6954_vm1, %v3010_v28, 0.0  ;;  %v4732_v28 = vor.u32 %v4996_v25, %v4731_v48  ;;  %v4661_v25 = vld [vmem:[%s7245_s10 + $0x24] sm:$0xf0] }
0x139b   :  { %v2991_v31 = vpop.f32.mrf.mxu3  ;;  %v2978_v33 = vpop.f32.mrf.mxu2  ;;  %3298 = vmatpush.bf16.msra.mxu1 %v4732_v28  ;;  %v4979_v28 = vld [vmem:[%s7245_s10 + $0x28] sm:$0xf0] }
0x139c   :  { %v3018_v36 = vrot.slane %v2991_v31, 1  ;;  %v3016_v38 = vadd.f32 %v3015_v35, %v2978_v33  ;;  %v4733_v31 = vld [vmem:[%s7245_s10 + $0xb4] sm:$0xf0]  ;;  %v4739_v33 = vld [vmem:[%s7245_s10 + $0xb0] sm:$0xf] }
0x139d   :  { %v4997_v35 = vld [vmem:[%s7245_s10 + $0xb8] sm:$0xf0] }
0x139e   :  { %v3023_v50 = vsel %vm6958_vm12, %v3018_v36, 0.0  ;;  %v2967_v52 = vpop.f32.mrf.mxu0  ;;  %v4736_v36 = vor.u32 %v4995_v26, %v4733_v31  ;;  %v4667_v26 = vld [vmem:[%s7245_s10 + $0x20] sm:$0xf] }
0x139f   :  { %v6966_v6 = vadd.f32 %v3023_v50, %v3016_v38  ;;  %v4740_v38 = vor.u32 %v4997_v35, %v4739_v33  ;;  %v4719_v50 = vld [vmem:[%s7245_s10 + $0x90] sm:$0xf]  ;;  %v4993_v52 = vld [vmem:[%s7245_s10 + $0x98] sm:$0xf0]  ;;  %v4668_v33 = vor.u32 %v4979_v28, %v4667_v26  ;;  %v4647_v35 = vld [vmem:[%s7245_s10] sm:$0xf] }
0x13a0   :  { %3311 = vmatpush.bf16.msra.mxu2 %v4736_v36  ;;  %v4975_v36 = vld [vmem:[%s7245_s10 + $0x8] sm:$0xf0] }
0x13a1   :  { %v3025_v8 = vrot.slane %v6966_v6, 4  ;;  %v3031_v39 = vmul.f32 %v6966_v6, %v6966_v6  ;;  %3324 = vmatpush.bf16.msrb.mxu3 %v4740_v38  ;;  %v4974_v38 = vld [vmem:[%s7245_s10 + $0x4] sm:$0xf] }
0x13a3   :  { %v3026_v40 = vadd.f32 %v3025_v8, %v6966_v6  ;;  %v3032_v42 = vrot.slane %v3031_v39, 4  ;;  %v2980_v43 = vpop.f32.mrf.mxu2  ;;  %v2993_v46 = vpop.f32.mrf.mxu3  ;;  %v4992_v8 = vld [vmem:[%s7245_s10 + $0x94] sm:$0xf] }
0x13a4   :  { %v4994_v43 = vld [vmem:[%s7245_s10 + $0xa0] sm:$0xf0] }
0x13a5   :  { %v3027_v47 = vrot.slane %v3026_v40, 2  ;;  %v3033_v34 = vadd.f32 %v3032_v42, %v3031_v39  ;;  %v4720_v39 = vor.u32 %v4993_v52, %v4719_v50  ;;  %v4727_v42 = vld [vmem:[%s7245_s10 + $0x98] sm:$0xf]  ;;  %v4648_v50 = vor.u32 %v4975_v36, %v4647_v35  ;;  %v4649_v52 = vld [vmem:[%s7245_s10 + $0xc] sm:$0xf0] }
0x13a7   :  { %v3028_v21 = vadd.f32 %v3027_v47, %v3026_v40  ;;  %v3034_v49 = vrot.slane %v3033_v34, 2  ;;  %v4721_v40 = vld [vmem:[%s7245_s10 + $0x9c] sm:$0xf0]  ;;  %v4728_v47 = vor.u32 %v4994_v43, %v4727_v42  ;;  %3299 = vmatpush.bf16.msra.mxu1 %v4720_v39  ;;  %v4976_v39 = vld [vmem:[%s7245_s10 + $0x10] sm:$0xf0] }
0x13a8   :  { %v4724_v46 = vor.u32 %v4992_v8, %v4721_v40  ;;  %v4655_v8 = vld [vmem:[%s7245_s10 + $0x8] sm:$0xf]  ;;  %v4652_v40 = vor.u32 %v4974_v38, %v4649_v52  ;;  %v3168_v43 = vld [vmem:[#allocation25 + $0x78] sm:$0xff] }
0x13a9   :  { %v3029_v30 = vrot.slane %v3028_v21, 1  ;;  %v3035_v54 = vadd.f32 %v3034_v49, %v3033_v34  ;;  %v4707_v34 = vld [vmem:[%s7245_s10 + $0x78] sm:$0xf]  ;;  %v4989_v49 = vld [vmem:[%s7245_s10 + $0x7c] sm:$0xf]  ;;  %3325 = vmatpush.bf16.msrb.mxu3 %v4728_v47  ;;  %v4656_v42 = vor.u32 %v4976_v39, %v4655_v8  ;;  %3363 = vmatpush.msrb.mxu0 %v3168_v43 }
0x13aa   :  { %3312 = vmatpush.bf16.msra.mxu2 %v4724_v46  ;;  %v3167_v46 = vld [vmem:[#allocation25 + $0x70] sm:$0xff] }
0x13ab   :  { %v3036_v55 = vrot.slane %v3035_v54, 1  ;;  %v3030_v37 = vadd.f32 %v3029_v30, %v3028_v21  ;;  %v4990_v21 = vld [vmem:[%s7245_s10 + $0x80] sm:$0xf0]  ;;  %v4709_v30 = vld [vmem:[%s7245_s10 + $0x84] sm:$0xf0]  ;;  %3364 = vmatpush.msrb.mxu0 %v3167_v46 }
0x13ad   :  { %v3037_v56 = vadd.f32 %v3036_v55, %v3035_v54  ;;  %v4715_v54 = vld [vmem:[%s7245_s10 + $0x80] sm:$0xf]  ;;  %v4991_v55 = vld [vmem:[%s7245_s10 + $0x88] sm:$0xf0] }
0x13af   :  { %v3038_v27 = vsel %vm987_vm0, %v3030_v37, %v3037_v56  ;;  %v4708_v37 = vor.u32 %v4990_v21, %v4707_v34  ;;  %v4712_v56 = vor.u32 %v4989_v49, %v4709_v30 }
0x13b0   :  { %3055 = vmatmul.f32.vlgmr.msra.gmra.mxu0 %v3038_v27  ;;  %v4716_v27 = vor.u32 %v4991_v55, %v4715_v54 }
0x13b1   :  { %3300 = vmatpush.bf16.msra.mxu1 %v4708_v37  ;;  %3313 = vmatpush.bf16.msra.mxu2 %v4712_v56 }
0x13b2   :  { %3326 = vmatpush.bf16.msrb.mxu3 %v4716_v27 }
0x142d   :  { %v3056_v1 = vpop.f32.mrf.mxu0 }
0x142e   :  { %v3066_v11 = vmul.f32 %v6973_v62, %v3056_v1  ;;  %v4696_v1 = vor.u32 %v4987_v45, %v4695_v57  ;;  %v3166_v57 = vld [vmem:[#allocation25 + $0x68] sm:$0xff]  ;;  %v3165_v45 = vld [vmem:[#allocation25 + $0x60] sm:$0xff] }
0x142f   :  { %3365 = vmatpush.msrb.mxu0 %v3166_v57 }
0x1430   :  { %v3067_v2 = vmul.f32 %v3066_v11, %v3066_v11  ;;  %3301 = vmatpush.bf16.msra.mxu1 %v4696_v1  ;;  %v3157_v1 = vld [vmem:[#allocation25 + $0x20] sm:$0xff] }
0x1431   :  { %3366 = vmatpush.msrb.mxu0 %v3165_v45 }
0x1432   :  { %v3069_v0 = vrot.slane %v3067_v2, 7  ;;  %v4704_v2 = vor.u32 %v4988_v5, %v4703_v59  ;;  %v3160_v59 = vld [vmem:[#allocation25 + $0x38] sm:$0xff]  ;;  %v3158_v5 = vld [vmem:[#allocation25 + $0x28] sm:$0xff] }
0x1434   :  { %v3071_v3 = vsub.f32 %v3066_v11, %v3069_v0  ;;  %v4683_v0 = vld [vmem:[%s7245_s10 + $0x48] sm:$0xf]  ;;  %3327 = vmatpush.bf16.msrb.mxu3 %v4704_v2 }
0x1435   :  { %v3155_v2 = vld [vmem:[#allocation25 + $0x10] sm:$0xff] }
0x1436   :  { %v3072_v51 = vmax.f32 %v3071_v3, 0.0  ;;  %v4984_v3 = vld [vmem:[%s7245_s10 + $0x50] sm:$0xf0] }
0x1438   :  { %v3073_v22 = vadd.f32 1e-05, %v3072_v51  ;;  %v4983_v51 = vld [vmem:[%s7245_s10 + $0x4c] sm:$0xf] }
0x143a   :  { %5168 = vrsqrt.f32 %v3073_v22  ;;  %vm3080_vm4 = vweird.f32 %v3073_v22 }
0x1440   :  { %v5169_v63 = vpop.eup %5168 }
0x1441   :  { %v3075_v9 = vmul.f32 %v5169_v63, %v3073_v22  ;;  %vm3081_vm3 = vweird.f32 %v5169_v63  ;;  %v4685_v22 = vld [vmem:[%s7245_s10 + $0x54] sm:$0xf0] }
0x1442   :  { %vm3082_vm5 = vmor %vm3080_vm4, %vm3081_vm3 }
0x1443   :  { %v3076_v10 = vmul.f32 %v5169_v63, %v3075_v9  ;;  %v4985_v9 = vld [vmem:[%s7245_s10 + $0x58] sm:$0xf0] }
0x1445   :  { %v3077_v13 = vmul.f32 0.5, %v3076_v10  ;;  %v4684_v10 = vor.u32 %v4984_v3, %v4683_v0  ;;  %v3154_v0 = vld [vmem:[#allocation25 + $0x8] sm:$0xff]  ;;  %v3153_v3 = vld [vmem:[#allocation25] sm:$0xff] }
0x1447   :  { %v3078_v53 = vsub.f32 1.5, %v3077_v13  ;;  %v4688_v13 = vor.u32 %v4983_v51, %v4685_v22  ;;  %3302 = vmatpush.bf16.msra.mxu1 %v4684_v10 }
0x1449   :  { %v3079_v4 = vmul.f32 %v5169_v63, %v3078_v53 }
0x144b   :  { %v3083_v41 = vsel %vm3082_vm5, %v5169_v63, %v3079_v4  ;;  %v4691_v63 = vld [vmem:[%s7245_s10 + $0x50] sm:$0xf] }
0x144c   :  { %3085 = vst [vmem:[#allocation1] sm:$0xff] %v3083_v41  ;;  %v4692_v53 = vor.u32 %v4985_v9, %v4691_v63  ;;  %v4671_v4 = vld [vmem:[%s7245_s10 + $0x30] sm:$0xf]  ;;  %v4981_v41 = vld [vmem:[%s7245_s10 + $0x38] sm:$0xf0] }
0x144e   :  { %3328 = vmatpush.bf16.msrb.mxu3 %v4692_v53 }
0x1453   :  { %v3087_v14 = vld [vmem:[#allocation1 + $0x1] ss:$9 sm:$0xff] }
0x1454   :  { %v3089_v61 = vmul.f32 %v3087_v14, %v2870_v60  ;;  %v4980_v60 = vld [vmem:[%s7245_s10 + $0x34] sm:$0xf]  ;;  %v4672_v14 = vor.u32 %v4981_v41, %v4671_v4 }
0x1456   :  { %v3090_v16 = vmul.f32 %v3089_v61, %v3066_v11  ;;  %v3093_v17 = vperm.slane %v3089_v61, 0  ;;  %v4700_v11 = vor.u32 %v4986_v58, %v4697_v32  ;;  %3303 = vmatpush.bf16.msra.mxu1 %v4672_v14  ;;  %v3164_v58 = vld [vmem:[#allocation25 + $0x58] sm:$0xff]  ;;  %v3162_v32 = vld [vmem:[#allocation25 + $0x48] sm:$0xff] }
0x1457   :  { %3367 = vmatpush.msrb.mxu0 %v3164_v58 }
0x1458   :  { %3094 = vrot.lane.b32.xlu1 %v3093_v17, %s5960_s23  ;;  %v3091_v18 = vsub.f32 %v2871_v15, %v3090_v16  ;;  %3314 = vmatpush.bf16.msra.mxu2 %v4700_v11  ;;  %v4679_v15 = vld [vmem:[%s7245_s10 + $0x38] sm:$0xf]  ;;  %v4982_v16 = vld [vmem:[%s7245_s10 + $0x40] sm:$0xf0]  ;;  %v3156_v11 = vld [vmem:[#allocation25 + $0x18] sm:$0xff] }
0x145a   :  { %v3104_v19 = vperm.slane %v3091_v18, 0 }
0x145c   :  { %3105 = vrot.lane.b32.xlu2 %v3104_v19, %s5960_s23  ;;  %3315 = vmatpush.bf16.msra.mxu2 %v4688_v13  ;;  %v4659_v19 = vld [vmem:[%s7245_s10 + $0x18] sm:$0xf] }
0x14b6   :  { %v3106_v7 = vpop.permute.xlu2 %3105 }
0x14b7   :  { %v6979_v20 = vsel %vm1220_vm13, %v3091_v18, %v3106_v7  ;;  %v4680_v18 = vor.u32 %v4982_v16, %v4679_v15  ;;  %v4978_v7 = vld [vmem:[%s7245_s10 + $0x20] sm:$0xf0] }
0x14b8   :  { %3110 = vrot.lane.b32.xlu1 %v6979_v20, %s5926_s22  ;;  %v4660_v48 = vor.u32 %v4978_v7, %v4659_v19 }
0x14b9   :  { %3329 = vmatpush.bf16.msrb.mxu3 %v4680_v18 }
0x14ba   :  { %3304 = vmatpush.bf16.msra.mxu1 %v4660_v48 }
0x14bd   :  { %3330 = vmatpush.bf16.msrb.mxu3 %v4668_v33 }
0x14be   :  { %3305 = vmatpush.bf16.msra.mxu1 %v4648_v50 }
0x14c1   :  { %3331 = vmatpush.bf16.msrb.mxu3 %v4656_v42 }
0x14ca   :  { %v3095_v23 = vpop.permute.xlu1 %3094 }
0x14cb   :  { %v6984_v12 = vsel %vm1220_vm13, %v3089_v61, %v3095_v23  ;;  %v4673_v61 = vld [vmem:[%s7245_s10 + $0x3c] sm:$0xf0]  ;;  %v4977_v23 = vld [vmem:[%s7245_s10 + $0x1c] sm:$0xf] }
0x14cc   :  { %3099 = vrot.lane.b32.xlu0 %v6984_v12, %s5926_s22  ;;  %v4676_v17 = vor.u32 %v4980_v60, %v4673_v61  ;;  %v4664_v31 = vor.u32 %v4977_v23, %v4661_v25 }
0x14ce   :  { %3316 = vmatpush.bf16.msra.mxu2 %v4676_v17 }
0x14d2   :  { %3317 = vmatpush.bf16.msra.mxu2 %v4664_v31 }
0x14d6   :  { %3318 = vmatpush.bf16.msra.mxu2 %v4652_v40 }
0x152a   :  { %v3111_v47 = vpop.permute.xlu1 %3110 }
0x152b   :  { %v3113_v21 = vsel %vm1226_vm14, %v6979_v20, %v3111_v47  ;;  %v3163_v20 = vld [vmem:[#allocation25 + $0x50] sm:$0xff] }
0x152c   :  { %v3116_v54 = vperm.slane %v3113_v21, 0  ;;  %3368 = vmatpush.msrb.mxu0 %v3163_v20  ;;  %v3151_v21 = vld [vmem:[#allocation22] sm:$0x1] }
0x152d   :  { %v5005_v20 = vld [vmem:[#allocation26 + $0x38] sm:$0xff] }
0x152e   :  { %3369 = vmatpush.msrb.mxu0 %v3162_v32  ;;  %3507 = vmatpush.bf16.msrb.mxu1 %v5005_v20  ;;  %v5004_v32 = vld [vmem:[#allocation26 + $0x30] sm:$0xff] }
0x1532   :  { %3508 = vmatpush.bf16.msrb.mxu1 %v5004_v32 }
0x153e   :  { %v3100_v34 = vpop.permute.xlu0 %3099 }
0x153f   :  { %v3102_v49 = vsel %vm1226_vm14, %v6984_v12, %v3100_v34  ;;  %v3161_v12 = vld [vmem:[#allocation25 + $0x40] sm:$0xff] }
0x1540   :  { %v3114_v30 = vperm.slane %v3102_v49, 0  ;;  %3370 = vmatpush.msrb.mxu0 %v3161_v12  ;;  %v5003_v12 = vld [vmem:[#allocation26 + $0x28] sm:$0xff] }
0x1541   :  { %3509 = vmatpush.bf16.msrb.mxu1 %v5003_v12 }
0x1542   :  { %v3115_v55 = vmul.f32 %v3114_v30, %v6966_v6  ;;  %3371 = vmatpush.msrb.mxu0 %v3160_v59  ;;  %v3159_v6 = vld [vmem:[#allocation25 + $0x30] sm:$0xff]  ;;  %v3152_v30 = vld [vmem:[#allocation23] sm:$0x1]  ;;  %v5002_v59 = vld [vmem:[#allocation26 + $0x20] sm:$0xff] }
0x1544   :  { %v3117_v37 = vadd.f32 %v3116_v54, %v3115_v55  ;;  %3372 = vmatpush.msrb.mxu0 %v3159_v6  ;;  %v5001_v6 = vld [vmem:[#allocation26 + $0x18] sm:$0xff] }
0x1545   :  { %3510 = vmatpush.bf16.msrb.mxu1 %v5002_v59 }
0x1546   :  { %v3118_v56 = vmax.f32 %v3117_v37, 0.0  ;;  %3373 = vmatpush.msrb.mxu0 %v3158_v5  ;;  %v5000_v5 = vld [vmem:[#allocation26 + $0x10] sm:$0xff] }
0x1548   :  { %v3169_v27 = vpack.c.bf16 %v3118_v56, %v3118_v56  ;;  %3374 = vmatpush.msrb.mxu0 %v3157_v1 }
0x1549   :  { %3511 = vmatpush.bf16.msrb.mxu1 %v5001_v6 }
0x154a   :  { %3306 = vmatmul.bf16.vlgmr.msra.gmra.mxu1 %v3169_v27  ;;  %3319 = vmatmul.bf16.vlgmr.msra.gmra.mxu2 %v3169_v27 }
0x154b   :  { %3332 = vmatmul.bf16.vlgmr.msrb.gmra.mxu3 %v3169_v27  ;;  %3375 = vmatpush.msrb.mxu0 %v3156_v11 }
0x154d   :  { %3376 = vmatpush.msrb.mxu0 %v3155_v2  ;;  %3512 = vmatpush.bf16.msrb.mxu1 %v5000_v5  ;;  %v3563_v5 = vld [vmem:[#allocation34 + $0x38] sm:$0xff] }
0x154f   :  { %3377 = vmatpush.msrb.mxu0 %v3154_v0  ;;  %v4999_v0 = vld [vmem:[#allocation26 + $0x8] sm:$0xff] }
0x1551   :  { %3378 = vmatpush.msrb.mxu0 %v3153_v3  ;;  %3513 = vmatpush.bf16.msrb.mxu1 %v4999_v0  ;;  %v3559_v0 = vld [vmem:[#allocation34 + $0x18] sm:$0xff] }
0x15c7   :  { %v3307_v51 = vpop.f32.mrf.mxu1 }
0x15c8   :  { %v3338_v22 = vrot.slane %v3307_v51, 7 }
0x15ca   :  { %v3341_v9 = vsel %vm6954_vm1, %v3338_v22, 0.0  ;;  %vm3667_vm1 = vcmask 1042432  }
0x15cd   :  { %v3320_v63 = vpop.f32.mrf.mxu2 }
0x15ce   :  { %v3342_v10 = vadd.f32 %v3341_v9, %v3320_v63  ;;  %v3333_v13 = vpop.f32.mrf.mxu3 }
0x15cf   :  { %v3344_v53 = vrot.slane %v3333_v13, 1  ;;  %v3309_v4 = vpop.f32.mrf.mxu1  ;;  %v4998_v13 = vld [vmem:[#allocation26] sm:$0xff] }
0x15d0   :  { %3514 = vmatpush.bf16.msrb.mxu1 %v4998_v13 }
0x15d1   :  { %v3347_v41 = vsel %vm6958_vm12, %v3344_v53, 0.0  ;;  %vm3677_vm12 = vcmask 1043968  }
0x15d2   :  { %v7045_v60 = vadd.f32 %v3347_v41, %v3342_v10 }
0x15d4   :  { %v3349_v14 = vrot.slane %v7045_v60, 4  ;;  %v3355_v61 = vmul.f32 %v7045_v60, %v7045_v60 }
0x15d5   :  { %v3322_v15 = vpop.f32.mrf.mxu2 }
0x15d6   :  { %v3350_v16 = vadd.f32 %v3349_v14, %v7045_v60  ;;  %v3356_v17 = vrot.slane %v3355_v61, 4  ;;  %v3335_v29 = vpop.f32.mrf.mxu3  ;;  %v4800_v14 = vld [vmem:[#allocation29 + $0x30] sm:$0xf]  ;;  %v4792_v15 = vld [vmem:[#allocation29 + $0x20] sm:$0xf] }
0x15d7   :  { %v4784_v29 = vld [vmem:[#allocation29 + $0x10] sm:$0xf] }
0x15d8   :  { %v3351_v18 = vrot.slane %v3350_v16, 2  ;;  %v3357_v19 = vadd.f32 %v3356_v17, %v3355_v61  ;;  %v5013_v61 = vld [vmem:[#allocation29 + $0x34] sm:$0xf0]  ;;  %v5011_v17 = vld [vmem:[#allocation29 + $0x24] sm:$0xf0] }
0x15da   :  { %v3352_v7 = vadd.f32 %v3351_v18, %v3350_v16  ;;  %v3358_v23 = vrot.slane %v3357_v19, 2  ;;  %v4801_v16 = vor.u32 %v5013_v61, %v4800_v14  ;;  %v5009_v18 = vld [vmem:[#allocation29 + $0x14] sm:$0xf0] }
0x15dc   :  { %v3353_v48 = vrot.slane %v3352_v7, 1  ;;  %v3359_v25 = vadd.f32 %v3358_v23, %v3357_v19  ;;  %3612 = vmatpush.bf16.msra.mxu3 %v4801_v16  ;;  %v4785_v19 = vor.u32 %v5009_v18, %v4784_v29 }
0x15de   :  { %v3360_v24 = vrot.slane %v3359_v25, 1  ;;  %v3354_v26 = vadd.f32 %v3353_v48, %v3352_v7 }
0x15e0   :  { %v3361_v28 = vadd.f32 %v3360_v24, %v3359_v25 }
0x15e2   :  { %v3362_v31 = vsel %vm987_vm0, %v3354_v26, %v3361_v28  ;;  %v3452_v28 = vld [vmem:[#allocation28] sm:$0x3] }
0x15e3   :  { %3379 = vmatmul.f32.vlgmr.msrb.gmra.mxu0 %v3362_v31  ;;  %v5012_v31 = vld [vmem:[#allocation29 + $0x34] sm:$0xf] }
0x1660   :  { %v3380_v33 = vpop.f32.mrf.mxu0 }
0x1661   :  { %v3383_v35 = vmul.f32 %v3380_v33, %v6973_v62  ;;  %v4802_v33 = vld [vmem:[#allocation29 + $0x38] sm:$0xf0] }
0x1663   :  { %v3384_v36 = vmul.f32 %v3383_v35, %v3383_v35 }
0x1665   :  { %v3386_v38 = vrot.slane %v3384_v36, 7  ;;  %v5010_v36 = vld [vmem:[#allocation29 + $0x24] sm:$0xf] }
0x1667   :  { %v3388_v50 = vsub.f32 %v3383_v35, %v3386_v38  ;;  %v4794_v38 = vld [vmem:[#allocation29 + $0x28] sm:$0xf0] }
0x1669   :  { %v3389_v52 = vmax.f32 %v3388_v50, 0.0  ;;  %v4797_v50 = vor.u32 %v5010_v36, %v4794_v38 }
0x166b   :  { %v3390_v8 = vadd.f32 1e-05, %v3389_v52  ;;  %v5008_v52 = vld [vmem:[#allocation29 + $0x14] sm:$0xf] }
0x166d   :  { %5170 = vrsqrt.f32 %v3390_v8  ;;  %vm3397_vm7 = vweird.f32 %v3390_v8 }
0x1673   :  { %v5171_v39 = vpop.eup %5170 }
0x1674   :  { %v3392_v40 = vmul.f32 %v5171_v39, %v3390_v8  ;;  %vm3398_vm6 = vweird.f32 %v5171_v39  ;;  %v4786_v8 = vld [vmem:[#allocation29 + $0x18] sm:$0xf0] }
0x1675   :  { %vm3399_vm8 = vmor %vm3397_vm7, %vm3398_vm6 }
0x1676   :  { %v3393_v42 = vmul.f32 %v5171_v39, %v3392_v40  ;;  %v4776_v40 = vld [vmem:[#allocation29] sm:$0xf] }
0x1678   :  { %v3394_v43 = vmul.f32 0.5, %v3393_v42  ;;  %v5007_v42 = vld [vmem:[#allocation29 + $0x4] sm:$0xf0] }
0x167a   :  { %v3395_v46 = vsub.f32 1.5, %v3394_v43  ;;  %v5006_v43 = vld [vmem:[#allocation29 + $0x4] sm:$0xf] }
0x167c   :  { %v3396_v47 = vmul.f32 %v5171_v39, %v3395_v46  ;;  %v4777_v46 = vor.u32 %v5007_v42, %v4776_v40 }
0x167e   :  { %v3400_v34 = vsel %vm3399_vm8, %v5171_v39, %v3396_v47  ;;  %v4789_v39 = vor.u32 %v5008_v52, %v4786_v8  ;;  %v4778_v47 = vld [vmem:[#allocation29 + $0x8] sm:$0xf0]  ;;  %vm4061_vm8 = vcmask 1041408  }
0x167f   :  { %3402 = vst [vmem:[#allocation1] sm:$0xff] %v3400_v34  ;;  %v4781_v34 = vor.u32 %v5006_v43, %v4778_v47 }
0x1686   :  { %v3404_v49 = vld [vmem:[#allocation1 + $0x1] ss:$9 sm:$0xff] }
0x1687   :  { %v3406_v62 = vmul.f32 %v3404_v49, %v3151_v21 }
0x1689   :  { %v3407_v54 = vmul.f32 %v3406_v62, %v3383_v35  ;;  %v3410_v55 = vperm.slane %v3406_v62, 0  ;;  %v4805_v35 = vor.u32 %v5012_v31, %v4802_v33 }
0x168b   :  { %3411 = vrot.lane.b32.xlu2 %v3410_v55, %s5960_s23  ;;  %v3408_v37 = vsub.f32 %v3152_v30, %v3407_v54  ;;  %v3638_v30 = vand.u32 1, %v6464_v44 }
0x168d   :  { %v3421_v56 = vperm.slane %v3408_v37, 0  ;;  %vm7071_vm15 = vcmp.ne.s32.totalorder %v3638_v30, 1 }
0x168f   :  { %3422 = vrot.lane.b32.xlu0 %v3421_v56, %s5960_s23  ;;  %v3789_v56 = vld [vmem:[#allocation40 + $0x10] sm:$0xff] }
0x16e5   :  { %v3412_v27 = vpop.permute.xlu2 %3411 }
0x16e6   :  { %v3414_v57 = vsel %vm1220_vm13, %v3406_v62, %v3412_v27 }
0x16e7   :  { %3416 = vrot.lane.b32.xlu1 %v3414_v57, %s5926_s22 }
0x1701   :  { %v3423_v45 = vpop.permute.xlu0 %3422 }
0x1702   :  { %v3425_v58 = vsel %vm1220_vm13, %v3408_v37, %v3423_v45 }
0x1703   :  { %3427 = vrot.lane.b32.xlu2 %v3425_v58, %s5926_s22 }
0x1759   :  { %v3417_v1 = vpop.permute.xlu1 %3416 }
0x175a   :  { %v3419_v11 = vsel %vm1226_vm14, %v3414_v57, %v3417_v1  ;;  %v3562_v1 = vld [vmem:[#allocation34 + $0x30] sm:$0xff] }
0x175b   :  { %v3431_v2 = vperm.slane %v3419_v11, 0  ;;  %v3561_v11 = vld [vmem:[#allocation34 + $0x28] sm:$0xff] }
0x175d   :  { %v3428_v3 = vpop.permute.xlu2 %3427  ;;  %v3432_v22 = vmul.f32 %v3431_v2, %v7045_v60  ;;  %v4793_v60 = vor.u32 %v5011_v17, %v4792_v15  ;;  %v3560_v2 = vld [vmem:[#allocation34 + $0x20] sm:$0xff] }
0x175e   :  { %v3430_v51 = vsel %vm1226_vm14, %v3425_v58, %v3428_v3  ;;  %v3558_v3 = vld [vmem:[#allocation34 + $0x10] sm:$0xff] }
0x175f   :  { %v3433_v63 = vperm.slane %v3430_v51, 0  ;;  %3613 = vmatpush.bf16.msra.mxu3 %v4793_v60  ;;  %v3557_v51 = vld [vmem:[#allocation34 + $0x8] sm:$0xff] }
0x1761   :  { %v3434_v9 = vadd.f32 %v3433_v63, %v3432_v22 }
0x1763   :  { %v3435_v10 = vmax.f32 %v3434_v9, 0.0  ;;  %3614 = vmatpush.bf16.msra.mxu3 %v4785_v19  ;;  %v3556_v9 = vld [vmem:[#allocation34] sm:$0xff] }
0x1765   :  { %3454 = vrot.lane.b32.xlu0 %v3435_v10, %s5967_s11 }
0x1767   :  { %3615 = vmatpush.bf16.msra.mxu3 %v4777_v46 }
0x176b   :  { %3707 = vmatpush.msrb.mxu3 %v3563_v5 }
0x176d   :  { %3708 = vmatpush.msrb.mxu3 %v3562_v1 }
0x176f   :  { %3709 = vmatpush.msrb.mxu3 %v3561_v11  ;;  %v4835_v11 = vld [vmem:[#allocation35 + $0x30] sm:$0xf] }
0x1771   :  { %3710 = vmatpush.msrb.mxu3 %v3560_v2  ;;  %v5021_v2 = vld [vmem:[#allocation35 + $0x34] sm:$0xf0] }
0x1773   :  { %3711 = vmatpush.msrb.mxu3 %v3559_v0  ;;  %v5020_v0 = vld [vmem:[#allocation35 + $0x34] sm:$0xf] }
0x1775   :  { %3712 = vmatpush.msrb.mxu3 %v3558_v3  ;;  %v4836_v3 = vor.u32 %v5021_v2, %v4835_v11 }
0x1777   :  { %3713 = vmatpush.msrb.mxu3 %v3557_v51  ;;  %v4837_v51 = vld [vmem:[#allocation35 + $0x38] sm:$0xf0]  ;;  %3846 = vmatpush.bf16.msra.mxu0 %v4836_v3 }
0x1779   :  { %3714 = vmatpush.msrb.mxu3 %v3556_v9  ;;  %v4840_v9 = vor.u32 %v5020_v0, %v4837_v51 }
0x177b   :  { %3859 = vmatpush.bf16.msra.mxu1 %v4840_v9 }
0x17d7   :  { %v3455_v53 = vpop.permute.xlu0 %3454 }
0x17d8   :  { %v3457_v4 = vmax.f32 %v3435_v10, %v3455_v53 }
0x17da   :  { %v3458_v41 = vpack.c.bf16 %v3457_v4, %v3457_v4 }
0x17dc   :  { %3515 = vmatmul.bf16.vlgmr.msrb.gmra.mxu1 %v3458_v41 }
0x1859   :  { %v3516_v7 = vpop.f32.mrf.mxu1 }
0x185a   :  { %v3521_v23 = vrot.slane %v3516_v7, 1 }
0x185c   :  { %v3524_v48 = vmax.f32 %v3516_v7, %v3521_v23 }
0x185e   :  { %v3525_v25 = vpack.c.bf16 %v3524_v48, %v3524_v48 }
0x1860   :  { %v3531_v24 = vsel %vm3529_vm9, %v3525_v25, 0 }
0x1861   :  { %v3518_v26 = vpop.f32.mrf.mxu1  ;;  %3540 = vmatpush.bf16.msrb.mxu2 %v3531_v24 }
0x1862   :  { %v5968_v26 = vmov 8.0  }
0x1863   :  { %5172 = vrcp.f32 %v5968_v26 }
0x1864   :  { %4773 = vmatmul.msk.bf16.vlgmr.msrb.gmra.mxu2 %vm1208_vm11, %v3452_v28  ;;  %vm7067_vm11 = vcmp.ne.s32.totalorder %v3638_v30, 0 }
0x1865   :  { %3625 = vmatpush.bf16.msra.mxu2 %v4805_v35 }
0x1869   :  { %3626 = vmatpush.bf16.msra.mxu2 %v4797_v50  ;;  %v5173_v28 = vpop.eup %5172 }
0x186a   :  { %v3720_v31 = vmul.f32 8.0, %v5173_v28  ;;  %vm3724_vm2 = vweird.f32 %v5173_v28 }
0x186c   :  { %v3721_v33 = vsub.f32 1.0, %v3720_v31 }
0x186d   :  { %3627 = vmatpush.bf16.msra.mxu2 %v4789_v39 }
0x186e   :  { %v3722_v35 = vmul.f32 %v5173_v28, %v3721_v33 }
0x1870   :  { %v3723_v36 = vadd.f32 %v5173_v28, %v3722_v35 }
0x1871   :  { %3628 = vmatpush.bf16.msra.mxu2 %v4781_v34 }
0x1872   :  { %v7093_v38 = vsel %vm3724_vm2, %v5173_v28, %v3723_v36 }
0x18e7   :  { %v3542_v21 = vpop.f32.mrf.mxu2 }
0x18e8   :  { %v3564_v49 = vpack.c.bf16 %v3542_v21, %v3542_v21 }
0x18ea   :  { %4806 = vmatmul.msk.bf16.vlgmr.msra.gmra.mxu3 %vm1226_vm14, %v3564_v49  ;;  %4807 = vmatmul.msk.bf16.vlgmr.msra.gmra.mxu2 %vm1226_vm14, %v3564_v49 }
0x18ef   :  { %v3544_v62 = vpop.f32.mrf.mxu2 }
0x196d   :  { %v3617_v54 = vpop.f32.mrf.mxu3  ;;  %v3630_v37 = vpop.f32.mrf.mxu2 }
0x196e   :  { %v3649_v27 = vrot.slane %v3617_v54, 3  ;;  %v3651_v57 = vrot.slane %v3617_v54, 7  ;;  %v3663_v45 = vrot.slane %v3630_v37, 1  ;;  %v3665_v58 = vrot.slane %v3630_v37, 5 }
0x1970   :  { %v3653_v20 = vsel %vm987_vm0, %v3649_v27, %v3651_v57  ;;  %v3668_v32 = vsel %vm3667_vm1, %v3663_v45, %v3665_v58  ;;  %v3555_v57 = vld [vmem:[#allocation32] sm:$0x1] }
0x1971   :  { %v3656_v44 = vsel %vm7067_vm11, %v3653_v20, 0.0  ;;  %v3671_v12 = vsel %vm7071_vm15, %v3668_v32, 0.0 }
0x1972   :  { %3658 = vrot.lane.b32.xlu1 %v3656_v44, %s5926_s22  ;;  %3673 = vrot.lane.b32.xlu2 %v3671_v12, %s5926_s22 }
0x1975   :  { %v3619_v59 = vpop.f32.mrf.mxu3  ;;  %v3632_v6 = vpop.f32.mrf.mxu2 }
0x19cc   :  { %v3674_v10 = vpop.permute.xlu2 %3673 }
0x19e4   :  { %v3659_v22 = vpop.permute.xlu1 %3658 }
0x19e5   :  { %v3661_v63 = vadd.f32 %v3659_v22, %v3617_v54  ;;  %v3554_v54 = vld [vmem:[#allocation31] sm:$0x1]  ;;  %v4827_v22 = vld [vmem:[#allocation35 + $0x20] sm:$0xf] }
0x19e7   :  { %v7083_v13 = vadd.f32 %v3674_v10, %v3661_v63  ;;  %v5019_v63 = vld [vmem:[#allocation35 + $0x24] sm:$0xf0]  ;;  %v5018_v10 = vld [vmem:[#allocation35 + $0x24] sm:$0xf] }
0x19e9   :  { %v3678_v53 = vsel %vm3677_vm12, %v7083_v13, 0.0  ;;  %v3685_v4 = vmul.f32 %v7083_v13, %v7083_v13 }
0x19ea   :  { %v3679_v41 = vrot.slane %v3678_v53, 4 }
0x19eb   :  { %v3686_v14 = vsel %vm3677_vm12, %v3685_v4, 0.0  ;;  %v4828_v4 = vor.u32 %v5019_v63, %v4827_v22 }
0x19ec   :  { %v3680_v61 = vadd.f32 %v3679_v41, %v3678_v53  ;;  %v3687_v15 = vrot.slane %v3686_v14, 4  ;;  %v4829_v53 = vld [vmem:[#allocation35 + $0x28] sm:$0xf0] }
0x19ed   :  { %v4832_v41 = vor.u32 %v5018_v10, %v4829_v53  ;;  %3847 = vmatpush.bf16.msra.mxu0 %v4828_v4 }
0x19ee   :  { %v3681_v16 = vrot.slane %v3680_v61, 2  ;;  %v3688_v17 = vadd.f32 %v3687_v15, %v3686_v14  ;;  %v4819_v14 = vld [vmem:[#allocation35 + $0x10] sm:$0xf]  ;;  %v5016_v15 = vld [vmem:[#allocation35 + $0x14] sm:$0xf] }
0x19ef   :  { %3860 = vmatpush.bf16.msra.mxu1 %v4832_v41 }
0x19f0   :  { %v3682_v60 = vadd.f32 %v3681_v16, %v3680_v61  ;;  %v3689_v29 = vrot.slane %v3688_v17, 2  ;;  %v5017_v61 = vld [vmem:[#allocation35 + $0x14] sm:$0xf0]  ;;  %v4821_v16 = vld [vmem:[#allocation35 + $0x18] sm:$0xf0] }
0x19f2   :  { %v3683_v18 = vrot.slane %v3682_v60, 1  ;;  %v3690_v19 = vadd.f32 %v3689_v29, %v3688_v17  ;;  %v4820_v17 = vor.u32 %v5017_v61, %v4819_v14  ;;  %v4811_v29 = vld [vmem:[#allocation35] sm:$0xf] }
0x19f4   :  { %v3691_v7 = vrot.slane %v3690_v19, 1  ;;  %v3684_v23 = vadd.f32 %v3683_v18, %v3682_v60  ;;  %v4824_v60 = vor.u32 %v5016_v15, %v4821_v16  ;;  %v5015_v18 = vld [vmem:[#allocation35 + $0x4] sm:$0xf0]  ;;  %3848 = vmatpush.bf16.msra.mxu0 %v4820_v17 }
0x19f6   :  { %v3692_v48 = vadd.f32 %v3691_v7, %v3690_v19  ;;  %v5014_v19 = vld [vmem:[#allocation35 + $0x4] sm:$0xf]  ;;  %v4813_v7 = vld [vmem:[#allocation35 + $0x8] sm:$0xf0]  ;;  %3861 = vmatpush.bf16.msra.mxu1 %v4824_v60 }
0x19f8   :  { %v3693_v25 = vsel %vm987_vm0, %v3684_v23, %v3692_v48  ;;  %v4812_v23 = vor.u32 %v5015_v18, %v4811_v29  ;;  %v4816_v48 = vor.u32 %v5014_v19, %v4813_v7 }
0x19f9   :  { %3695 = vrot.lane.b32.xlu0 %v3693_v25, %s5926_s22 }
0x19fa   :  { %3849 = vmatpush.bf16.msra.mxu0 %v4812_v23  ;;  %3862 = vmatpush.bf16.msra.mxu1 %v4816_v48  ;;  %v3785_v48 = vld [vmem:[#allocation37] sm:$0x1] }
0x1a6b   :  { %v3696_v24 = vpop.permute.xlu0 %3695 }
0x1a6c   :  { %4808 = vmatmul.msk.f32.vlgmr.msrb.gmra.mxu3 %vm1226_vm14, %v3696_v24 }
0x1aef   :  { %v3716_v50 = vpop.f32.mrf.mxu3 }
0x1af0   :  { %v3726_v52 = vmul.f32 %v7093_v38, %v3716_v50 }
0x1af2   :  { %v3727_v8 = vmul.f32 %v3726_v52, %v3726_v52 }
0x1af4   :  { %v3729_v39 = vrot.slane %v3727_v8, 7 }
0x1af6   :  { %v3731_v40 = vsub.f32 %v3726_v52, %v3729_v39 }
0x1af8   :  { %v3732_v42 = vmax.f32 %v3731_v40, 0.0 }
0x1afa   :  { %v3733_v43 = vadd.f32 1e-05, %v3732_v42 }
0x1afc   :  { %5174 = vrsqrt.f32 %v3733_v43  ;;  %vm3740_vm4 = vweird.f32 %v3733_v43 }
0x1b02   :  { %v5175_v46 = vpop.eup %5174 }
0x1b03   :  { %v3735_v47 = vmul.f32 %v5175_v46, %v3733_v43  ;;  %vm3741_vm3 = vweird.f32 %v5175_v46 }
0x1b04   :  { %vm3742_vm5 = vmor %vm3740_vm4, %vm3741_vm3 }
0x1b05   :  { %v3736_v34 = vmul.f32 %v5175_v46, %v3735_v47 }
0x1b07   :  { %v3737_v21 = vmul.f32 0.5, %v3736_v34 }
0x1b09   :  { %v3738_v49 = vsub.f32 1.5, %v3737_v21  ;;  %v3794_v21 = vld [vmem:[#allocation40 + $0x38] sm:$0xff] }
0x1b0a   :  { %3921 = vmatpush.msrb.mxu2 %v3794_v21 }
0x1b0b   :  { %v3739_v62 = vmul.f32 %v5175_v46, %v3738_v49  ;;  %v3793_v49 = vld [vmem:[#allocation40 + $0x30] sm:$0xff] }
0x1b0c   :  { %3922 = vmatpush.msrb.mxu2 %v3793_v49  ;;  %v5025_v49 = vld [vmem:[#allocation41 + $0x18] sm:$0xff] }
0x1b0d   :  { %v3743_v30 = vsel %vm3742_vm5, %v5175_v46, %v3739_v62  ;;  %v3792_v62 = vld [vmem:[#allocation40 + $0x28] sm:$0xff]  ;;  %4041 = vmatpush.bf16.msra.mxu3 %v5025_v49 }
0x1b0e   :  { %3745 = vst [vmem:[#allocation1] sm:$0xff] %v3743_v30  ;;  %v3791_v30 = vld [vmem:[#allocation40 + $0x20] sm:$0xff]  ;;  %3923 = vmatpush.msrb.mxu2 %v3792_v62  ;;  %v5024_v62 = vld [vmem:[#allocation41 + $0x10] sm:$0xff] }
0x1b10   :  { %3924 = vmatpush.msrb.mxu2 %v3791_v30  ;;  %v5023_v30 = vld [vmem:[#allocation41 + $0x8] sm:$0xff] }
0x1b11   :  { %4042 = vmatpush.bf16.msra.mxu3 %v5024_v62 }
0x1b15   :  { %v3747_v37 = vld [vmem:[#allocation1 + $0x1] ss:$9 sm:$0xff]  ;;  %4043 = vmatpush.bf16.msra.mxu3 %v5023_v30 }
0x1b16   :  { %v3749_v27 = vmul.f32 %v3747_v37, %v3554_v54  ;;  %v3790_v54 = vld [vmem:[#allocation40 + $0x18] sm:$0xff]  ;;  %v3788_v37 = vld [vmem:[#allocation40 + $0x8] sm:$0xff] }
0x1b17   :  { %3925 = vmatpush.msrb.mxu2 %v3790_v54  ;;  %v5022_v54 = vld [vmem:[#allocation41] sm:$0xff] }
0x1b18   :  { %v3750_v45 = vmul.f32 %v3749_v27, %v3726_v52  ;;  %v3753_v58 = vperm.slane %v3749_v27, 0 }
0x1b19   :  { %3926 = vmatpush.msrb.mxu2 %v3789_v56  ;;  %4044 = vmatpush.bf16.msra.mxu3 %v5022_v54 }
0x1b1a   :  { %3754 = vrot.lane.b32.xlu1 %v3753_v58, %s5960_s23  ;;  %v3751_v20 = vsub.f32 %v3555_v57, %v3750_v45  ;;  %v3787_v57 = vld [vmem:[#allocation40] sm:$0xff] }
0x1b1b   :  { %3927 = vmatpush.msrb.mxu2 %v3788_v37 }
0x1b1c   :  { %v3759_v32 = vperm.slane %v3751_v20, 0 }
0x1b1d   :  { %3928 = vmatpush.msrb.mxu2 %v3787_v57  ;;  %v4081_v57 = vld [vmem:[%s6193_s20 + $0x18] sm:$0xff] }
0x1b1e   :  { %3760 = vrot.lane.b32.xlu2 %v3759_v32, %s5960_s23  ;;  %4101 = vmatpush.msrb.mxu0 %v4081_v57 }
0x1b78   :  { %v3761_v44 = vpop.permute.xlu2 %3760 }
0x1b79   :  { %v3763_v12 = vsel %vm1220_vm13, %v3751_v20, %v3761_v44 }
0x1b7a   :  { %v3770_v59 = vperm.slane %v3763_v12, 0 }
0x1b7c   :  { %3772 = vrot.lane.b32.xlu1 %v3770_v59, %s5926_s22 }
0x1b8c   :  { %v3755_v6 = vpop.permute.xlu1 %3754 }
0x1b8d   :  { %v3757_v5 = vsel %vm1220_vm13, %v3749_v27, %v3755_v6 }
0x1b8e   :  { %v3764_v1 = vperm.slane %v3757_v5, 0 }
0x1b90   :  { %3766 = vrot.lane.b32.xlu0 %v3764_v1, %s5926_s22 }
0x1bee   :  { %v3773_v26 = vpop.permute.xlu1 %3772 }
0x1c02   :  { %v3767_v25 = vpop.permute.xlu0 %3766 }
0x1c03   :  { %v3769_v24 = vmul.f32 %v3767_v25, %v7083_v13 }
0x1c05   :  { %v3775_v28 = vadd.f32 %v3773_v26, %v3769_v24  ;;  %v3786_v24 = vld [vmem:[#allocation38] sm:$0x1] }
0x1c07   :  { %v3776_v31 = vmax.f32 %v3775_v28, 0.0 }
0x1c09   :  { %v3795_v33 = vpack.c.bf16 %v3776_v31, %v3776_v31 }
0x1c0b   :  { %3797 = vrot.lane.b32.xlu2 %v3795_v33, %s5926_s22 }
0x1c65   :  { %v3798_v35 = vpop.permute.xlu2 %3797 }
0x1c66   :  { %4841 = vmatmul.msk.bf16.vlgmr.msra.gmra.mxu0 %vm1226_vm14, %v3798_v35  ;;  %4842 = vmatmul.msk.bf16.vlgmr.msra.gmra.mxu1 %vm1226_vm14, %v3798_v35 }
0x1ce3   :  { %v3851_v36 = vpop.f32.mrf.mxu0  ;;  %v3864_v50 = vpop.f32.mrf.mxu1 }
0x1ce4   :  { %v3869_v52 = vrot.slane %v3851_v36, 3  ;;  %v3871_v8 = vrot.slane %v3851_v36, 7  ;;  %v3881_v39 = vrot.slane %v3864_v50, 1  ;;  %v3883_v40 = vrot.slane %v3864_v50, 5 }
0x1ce6   :  { %v3885_v42 = vsel %vm3667_vm1, %v3881_v39, %v3883_v40  ;;  %v3873_v13 = vsel %vm987_vm0, %v3869_v52, %v3871_v8 }
0x1ce7   :  { %v3886_v43 = vsel %vm7071_vm15, %v3885_v42, 0.0  ;;  %v3874_v46 = vsel %vm7067_vm11, %v3873_v13, 0.0 }
0x1ce8   :  { %3888 = vrot.lane.b32.xlu1 %v3886_v43, %s5926_s22  ;;  %3876 = vrot.lane.b32.xlu0 %v3874_v46, %s5926_s22 }
0x1ceb   :  { %v3853_v47 = vpop.f32.mrf.mxu0  ;;  %v3866_v34 = vpop.f32.mrf.mxu1 }
0x1d5a   :  { %v3877_v55 = vpop.permute.xlu0 %3876  ;;  %v3889_v45 = vpop.permute.xlu1 %3888 }
0x1d5b   :  { %v3879_v27 = vadd.f32 %v3877_v55, %v3851_v36 }
0x1d5d   :  { %v3891_v58 = vadd.f32 %v3889_v45, %v3879_v27  ;;  %v4080_v45 = vld [vmem:[%s6193_s20 + $0x10] sm:$0xff] }
0x1d5e   :  { %4102 = vmatpush.msrb.mxu0 %v4080_v45 }
0x1d5f   :  { %v3892_v20 = vsel %vm3677_vm12, %v3891_v58, 0.0  ;;  %v3899_v32 = vmul.f32 %v3891_v58, %v3891_v58 }
0x1d60   :  { %v3893_v44 = vrot.slane %v3892_v20, 4 }
0x1d61   :  { %v3900_v12 = vsel %vm3677_vm12, %v3899_v32, 0.0 }
0x1d62   :  { %v3894_v59 = vadd.f32 %v3893_v44, %v3892_v20  ;;  %v3901_v6 = vrot.slane %v3900_v12, 4 }
0x1d64   :  { %v3895_v5 = vrot.slane %v3894_v59, 2  ;;  %v3902_v1 = vadd.f32 %v3901_v6, %v3900_v12 }
0x1d66   :  { %v3896_v11 = vadd.f32 %v3895_v5, %v3894_v59  ;;  %v3903_v2 = vrot.slane %v3902_v1, 2 }
0x1d68   :  { %v3897_v0 = vrot.slane %v3896_v11, 1  ;;  %v3904_v3 = vadd.f32 %v3903_v2, %v3902_v1  ;;  %v3992_v1 = vld [vmem:[#allocation43] sm:$0x1] }
0x1d69   :  { %v4078_v2 = vld [vmem:[%s6193_s20] sm:$0xff] }
0x1d6a   :  { %v3905_v51 = vrot.slane %v3904_v3, 1  ;;  %v3898_v22 = vadd.f32 %v3897_v0, %v3896_v11  ;;  %v4079_v11 = vld [vmem:[%s6193_s20 + $0x8] sm:$0xff]  ;;  %s5842_s20 = scalar_lea.hbm %s6203_s6, 2 }
0x1d6b   :  { %4103 = vmatpush.msrb.mxu0 %v4079_v11  ;;  %p5844_p11 = scmp.lt.s32.totalorder %s5842_s20, %s5840_s30 }
0x1d6c   :  { %v3906_v63 = vadd.f32 %v3905_v51, %v3904_v3  ;;  %v5151_v51 = vld [vmem:[%s6198_s5] ss:$0 sm:$0xff] }
0x1d6d   :  { %4104 = vmatpush.msrb.mxu0 %v4078_v2  ;;  %p5845_p12 = por %p5844_p11, %p5843_p10 }
0x1d6e   :  { %v3907_v9 = vsel %vm987_vm0, %v3898_v22, %v3906_v63 }
0x1d6f   :  { %3909 = vrot.lane.b32.xlu2 %v3907_v9, %s5926_s22  ;;  %p5846_p13 = pnand %p5845_p12, %p5841_p9 }
0x1dc9   :  { %v3910_v10 = vpop.permute.xlu2 %3909 }
0x1dca   :  { %4843 = vmatmul.msk.f32.vlgmr.msrb.gmra.mxu2 %vm1226_vm14, %v3910_v10 }
0x1e4d   :  { %v3930_v53 = vpop.f32.mrf.mxu2 }
0x1e4e   :  { %v3933_v4 = vmul.f32 %v3930_v53, %v7093_v38 }
0x1e50   :  { %v3934_v41 = vmul.f32 %v3933_v4, %v3933_v4 }
0x1e52   :  { %v3936_v14 = vrot.slane %v3934_v41, 7 }
0x1e54   :  { %v3938_v61 = vsub.f32 %v3933_v4, %v3936_v14 }
0x1e56   :  { %v3939_v15 = vmax.f32 %v3938_v61, 0.0 }
0x1e58   :  { %v3940_v16 = vadd.f32 1e-05, %v3939_v15 }
0x1e5a   :  { %5176 = vrsqrt.f32 %v3940_v16  ;;  %vm3947_vm6 = vweird.f32 %v3940_v16 }
0x1e60   :  { %v5177_v17 = vpop.eup %5176 }
0x1e61   :  { %v3942_v60 = vmul.f32 %v5177_v17, %v3940_v16  ;;  %vm3948_vm0 = vweird.f32 %v5177_v17 }
0x1e62   :  { %vm3949_vm7 = vmor %vm3947_vm6, %vm3948_vm0 }
0x1e63   :  { %v3943_v29 = vmul.f32 %v5177_v17, %v3942_v60 }
0x1e65   :  { %v3944_v18 = vmul.f32 0.5, %v3943_v29 }
0x1e67   :  { %v3945_v19 = vsub.f32 1.5, %v3944_v18 }
0x1e69   :  { %v3946_v7 = vmul.f32 %v5177_v17, %v3945_v19 }
0x1e6b   :  { %v3950_v23 = vsel %vm3949_vm7, %v5177_v17, %v3946_v7 }
0x1e6c   :  { %3952 = vst [vmem:[#allocation1] sm:$0xff] %v3950_v23 }
0x1e73   :  { %v3954_v25 = vld [vmem:[#allocation1 + $0x1] ss:$9 sm:$0xff] }
0x1e74   :  { %v3956_v38 = vmul.f32 %v3954_v25, %v3785_v48 }
0x1e76   :  { %v3957_v26 = vmul.f32 %v3956_v38, %v3933_v4  ;;  %v3960_v28 = vperm.slane %v3956_v38, 0 }
0x1e78   :  { %3961 = vrot.lane.b32.xlu0 %v3960_v28, %s5960_s23  ;;  %v3958_v31 = vsub.f32 %v3786_v24, %v3957_v26 }
0x1e7a   :  { %v3966_v33 = vperm.slane %v3958_v31, 0 }
0x1e7c   :  { %3967 = vrot.lane.b32.xlu1 %v3966_v33, %s5960_s23 }
0x1eea   :  { %v3962_v35 = vpop.permute.xlu0 %3961 }
0x1eeb   :  { %v3964_v36 = vsel %vm1220_vm13, %v3956_v38, %v3962_v35 }
0x1eec   :  { %v3971_v50 = vperm.slane %v3964_v36, 0 }
0x1eee   :  { %3973 = vrot.lane.b32.xlu2 %v3971_v50, %s5926_s22  ;;  %v3968_v52 = vpop.permute.xlu1 %3967 }
0x1eef   :  { %v3970_v8 = vsel %vm1220_vm13, %v3958_v31, %v3968_v52 }
0x1ef0   :  { %v3977_v39 = vperm.slane %v3970_v8, 0 }
0x1ef2   :  { %3979 = vrot.lane.b32.xlu0 %v3977_v39, %s5926_s22 }
0x1f48   :  { %v3974_v40 = vpop.permute.xlu2 %3973 }
0x1f49   :  { %v3976_v42 = vmul.f32 %v3974_v40, %v3891_v58 }
0x1f64   :  { %v3980_v13 = vpop.permute.xlu0 %3979 }
0x1f65   :  { %v3982_v43 = vadd.f32 %v3980_v13, %v3976_v42 }
0x1f67   :  { %v3983_v46 = vmax.f32 %v3982_v43, 0.0 }
0x1f69   :  { %3997 = vrot.lane.b32.xlu2 %v3983_v46, %s5967_s11  ;;  %3994 = vrot.lane.b32.xlu1 %v3983_v46, %s5960_s23 }
0x1fc3   :  { %v3998_v47 = vpop.permute.xlu2 %3997 }
0x1fdb   :  { %v3995_v34 = vpop.permute.xlu1 %3994 }
0x1fdc   :  { %v4000_v21 = vsel %vm1220_vm13, %v3995_v34, %v3998_v47 }
0x1fdd   :  { %4002 = vrot.lane.b32.xlu0 %v4000_v21, %s5926_s22 }
0x204f   :  { %v4003_v56 = vpop.permute.xlu0 %4002 }
0x2050   :  { %v4005_v37 = vmax.f32 %v3983_v46, %v4003_v56 }
0x2052   :  { %v4006_v55 = vpack.c.bf16 %v4005_v37, %v4005_v37 }
0x2054   :  { %4008 = vrot.lane.b32.xlu1 %v4006_v55, %s5926_s22  ;;  %s5969_s22 = smov [#allocation44]  }
0x2055   :  { %s4115_s24 = sshll.u32 %s5969_s22, 4  ;;  %s4116_s24 = int_to_ptr.vmem [resolvable:$true] %s4115_s24 }
0x20c6   :  { %v4009_v27 = vpop.permute.xlu1 %4008 }
0x20c7   :  { %4860 = vmatmul.msk.bf16.vlgmr.msra.gmra.mxu3 %vm1226_vm14, %v4009_v27 }
0x214a   :  { %v4046_v58 = vpop.f32.mrf.mxu3 }
0x214b   :  { %v4051_v20 = vrot.slane %v4046_v58, 1  ;;  %v4053_v32 = vrot.slane %v4046_v58, 5 }
0x214d   :  { %v4055_v44 = vsel %vm3667_vm1, %v4051_v20, %v4053_v32 }
0x214e   :  { %v4056_v12 = vmax.f32 %v4046_v58, %v4055_v44 }
0x2150   :  { %v4057_v59 = vpack.c.bf16 %v4056_v12, %v4056_v12 }
0x2152   :  { %v4048_v6 = vpop.f32.mrf.mxu3  ;;  %v4063_v5 = vsel %vm4061_vm8, %v4057_v59, 0 }
0x2153   :  { %4072 = vmatpush.bf16.msra.mxu2 %v4063_v5 }
0x2156   :  { %4861 = vmatmul.msk.bf16.vlgmr.msra.gmra.mxu2 %vm1202_vm10, %v3992_v1 }
0x21d9   :  { %v4074_v0 = vpop.f32.mrf.mxu2 }
0x21da   :  { %4862 = vmatmul.msk.f32.vlgmr.msrb.gmra.mxu0 %vm1220_vm13, %v4074_v0 }
0x21e1   :  { %v4076_v3 = vpop.f32.mrf.mxu2 }
0x2257   :  { %v4106_v22 = vpop.f32.mrf.mxu0 }
0x2258   :  { %v4107_v63 = vadd.f32 %v5151_v51, %v4106_v22 }
0x225a   :  { %4109 = vst [vmem:[#allocation44] sm:$0x3] %v4107_v63 }
0x225b   :  { %5849 = shalt.err (!%p5846_p13)
}
0x225c   :  { %4120 = dma.vmem_to_hbm [thread:$0]  %s4116_s24, 32, %s4118_s9, [#allocation4]  }
0x225d   :  { %5878 = dma.done.wait [#allocation4], 32  }
0x225e   :  { %5879 = vsyncadd [#allocation4], 4294967264 }
0x225f   :  { %4125 = vsyncpa [#allocation3], 1 }
0x2260   :  { %4126 = vsyncpa [#allocation6], 1 }
0x2261   :  { %4127 = vsyncpa [#allocation9], 1 }
0x2262   :  { %4128 = vsyncpa [#allocation12], 1 }
0x2263   :  { %4129 = vsyncpa [#allocation15], 1 }
0x2264   :  { %4130 = vsyncpa [#allocation18], 1 }
0x2265   :  { %4131 = vsyncpa [#allocation21], 1 }
0x2266   :  { %4132 = vsyncpa [#allocation24], 1 }
0x2267   :  { %4133 = vsyncpa [#allocation27], 1 }
0x2268   :  { %4134 = vsyncpa [#allocation30], 1 }
0x2269   :  { %4135 = vsyncpa [#allocation33], 1 }
0x226a   :  { %4136 = vsyncpa [#allocation36], 1 }
0x226b   :  { %4137 = vsyncpa [#allocation39], 1 }
0x226c   :  { %4138 = vsyncpa [#allocation42], 1 }
0x226d   :  { %4139 = vsyncpa [#allocation4], 1 }

</bundles_post_ra>
